<compile_context>
chip_gen: v6e
topology: v6e:2x2x1
jax: 0.10.0
libtpu: 0.0.40
codegen_flags: <defaults>
</compile_context>

<pallas_src>
import functools

import numpy as np
import jax
import jax.numpy as jnp
from jax.experimental import pallas as pl
from jax.experimental.pallas import tpu as pltpu

BN_EPS = 1e-5


# ----------------------------------------------------------------------------
# Fused kernel: reflection pad -> im2col conv -> bias -> BatchNorm -> NCHW store
# ----------------------------------------------------------------------------
def convlayer_kernel(x_ref, w_ref, b_ref, g_ref, beta_ref, out_ref,
                     xpad_ref, col_ref, *, K, stride, pad):
    """
    x_ref    : (N, H, W, Cin)          f32   channels-last input
    w_ref    : (K*K*Cin, Cout)         f32   im2col-ordered conv weights
    b_ref    : (1, Cout)               f32   conv bias
    g_ref    : (1, Cout)               f32   BN gamma
    beta_ref : (1, Cout)               f32   BN beta
    out_ref  : (N, Cout, Hout*Wout)    f32   lane-dense, NCHW-ordered output
    xpad_ref : (N, H+2p, W+2p, Cin)    f32   VMEM scratch: reflection-padded input
    col_ref  : (N*Hout*Wout, K*K*Cin)  f32   VMEM scratch: im2col matrix
    """
    N, H, W, Cin = x_ref.shape
    _, Cout, _ = out_ref.shape
    Hp, Wp = H + 2 * pad, W + 2 * pad
    Hout = (Hp - K) // stride + 1
    Wout = (Wp - K) // stride + 1
    rows = N * Hout * Wout
    HW = Hout * Wout

    # ---- Reflection padding, entirely inside VMEM (no HBM round trip) ----
    x = x_ref[...]
    xpad_ref[:, pad:pad + H, pad:pad + W, :] = x
    for j in range(pad):
        # rows: padded row j mirrors original row (pad - j); bottom is symmetric.
        xpad_ref[:, j:j + 1, pad:pad + W, :] = x[:, pad - j:pad - j + 1, :, :]
        xpad_ref[:, pad + H + j:pad + H + j + 1, pad:pad + W, :] = (
            x[:, H - 2 - j:H - 1 - j, :, :])
    for j in range(pad):
        # cols: reflect from the already row-padded buffer (corners come out right).
        xpad_ref[:, :, j:j + 1, :] = xpad_ref[:, :, 2 * pad - j:2 * pad - j + 1, :]
        xpad_ref[:, :, pad + W + j:pad + W + j + 1, :] = (
            xpad_ref[:, :, pad + W - 2 - j:pad + W - 1 - j, :])

    # ---- im2col: build one (rows, K*K*Cin) matrix -> a single MXU matmul ----
    for kh in range(K):
        for kw in range(K):
            patch = xpad_ref[:, kh:kh + (Hout - 1) * stride + 1,
                             kw:kw + (Wout - 1) * stride + 1, :]
            if stride > 1:
                patch = patch[:, ::stride, ::stride, :]
            t = kh * K + kw
            col_ref[:, t * Cin:(t + 1) * Cin] = patch.reshape(rows, Cin)

    acc = jnp.dot(col_ref[...], w_ref[...], preferred_element_type=jnp.float32)
    acc = acc + b_ref[...]                                  # conv bias

    # ---- BatchNorm2d (training-mode batch stats), single pass ----
    inv_n = 1.0 / float(rows)
    mean = jnp.sum(acc, axis=0, keepdims=True) * inv_n
    ex2 = jnp.sum(acc * acc, axis=0, keepdims=True) * inv_n
    var = ex2 - mean * mean                                 # biased variance
    scale = jax.lax.rsqrt(var + BN_EPS) * g_ref[...]
    shift = beta_ref[...] - mean * scale
    y = acc * scale + shift                                 # (rows, Cout)

    # ---- lane-dense store, already NCHW-ordered: (Cout, Hout*Wout) per image ----
    for n in range(N):
        out_ref[n] = y[n * HW:(n + 1) * HW, :].T.astype(out_ref.dtype)


# ----------------------------------------------------------------------------
# Wrapper (NCHW in / NCHW out, like the PyTorch module)
# ----------------------------------------------------------------------------
def conv_layer(params, x_nchw, *, kernel_size, stride):
    N, Cin, H, W = x_nchw.shape
    K, pad = kernel_size, kernel_size // 2
    Cout = params["w"].shape[0]
    Hout = (H + 2 * pad - K) // stride + 1
    Wout = (W + 2 * pad - K) // stride + 1

    # NCHW -> NHWC for the kernel (tiny one-off transpose; conv math is channels-last).
    x_nhwc = jnp.transpose(x_nchw, (0, 2, 3, 1))
    # Torch (Cout, Cin, K, K) -> im2col-ordered (K*K*Cin, Cout): col (kh*K+kw)*Cin + ci.
    w_col = jnp.transpose(params["w"], (2, 3, 1, 0)).reshape(K * K * Cin, Cout)
    b = params["b"].reshape(1, Cout)
    gamma = params["gamma"].reshape(1, Cout)
    beta = params["beta"].reshape(1, Cout)

    kern = functools.partial(convlayer_kernel, K=K, stride=stride, pad=pad)
    out = pl.pallas_call(
        kern,
        out_shape=jax.ShapeDtypeStruct((N, Cout, Hout * Wout), jnp.float32),
        in_specs=[pl.BlockSpec(memory_space=pltpu.MemorySpace.VMEM)] * 5,
        out_specs=pl.BlockSpec(memory_space=pltpu.MemorySpace.VMEM),
        scratch_shapes=[
            pltpu.VMEM((N, H + 2 * pad, W + 2 * pad, Cin), jnp.float32),  # xpad halo
            pltpu.VMEM((N * Hout * Wout, K * K * Cin), jnp.float32),      # im2col
        ],
    )(x_nhwc, w_col, b, gamma, beta)
    # (N, Cout, Hout*Wout) is already NCHW memory order -> free reshape.
    return out.reshape(N, Cout, Hout, Wout)


# ----------------------------------------------------------------------------
# Pure-JAX reference (independent check of the fused kernel)
# ----------------------------------------------------------------------------
def conv_layer_reference(params, x_nchw, *, kernel_size, stride):
    pad = kernel_size // 2
    xp = jnp.pad(x_nchw, ((0, 0), (0, 0), (pad, pad), (pad, pad)), mode="reflect")
    y = jax.lax.conv_general_dilated(
        xp, params["w"], window_strides=(stride, stride), padding="VALID",
        dimension_numbers=("NCHW", "OIHW", "NCHW"),
        precision=jax.lax.Precision.HIGHEST)
    y = y + params["b"][None, :, None, None]
    mean = jnp.mean(y, axis=(0, 2, 3), keepdims=True)
    var = jnp.mean(jnp.square(y - mean), axis=(0, 2, 3), keepdims=True)
    y = (y - mean) * jax.lax.rsqrt(var + BN_EPS)
    return y * params["gamma"][None, :, None, None] + params["beta"][None, :, None, None]


def init_params(key, cin, cout, k):
    k1, k2, k3, k4 = jax.random.split(key, 4)
    bound = 1.0 / np.sqrt(cin * k * k)
    return {
        "w": jax.random.uniform(k1, (cout, cin, k, k), jnp.float32, -bound, bound),
        "b": jax.random.uniform(k2, (cout,), jnp.float32, -bound, bound),
        # nn.BatchNorm2d init is gamma=1, beta=0; perturb slightly so the affine path
        # is actually exercised by the correctness check.
        "gamma": 1.0 + 0.1 * jax.random.normal(k3, (cout,), jnp.float32),
        "beta": 0.1 * jax.random.normal(k4, (cout,), jnp.float32),
    }


# ----------------------------------------------------------------------------
if __name__ == "__main__":
    # ConvLayer(in_channels=4, out_channels=16, kernel_size=3, stride=1)
    N, CIN, H, W = 2, 4, 16, 16
    COUT, K, STRIDE = 16, 3, 1

    root = jax.random.PRNGKey(0)
    kx, kp = jax.random.split(root)
    x = jax.random.normal(kx, (N, CIN, H, W), jnp.float32)
    params = init_params(kp, CIN, COUT, K)

    fwd = jax.jit(functools.partial(conv_layer, kernel_size=K, stride=STRIDE))
    out = fwd(params, x)
    jax.block_until_ready(out)

    assert out.shape == (N, COUT, H, W), out.shape
    ref = conv_layer_reference(params, x, kernel_size=K, stride=STRIDE)
    err = float(jnp.max(jnp.abs(out - ref)))
    assert np.isfinite(err) and err < 2e-3, f"max |err| = {err}"
    print("KERNEL_OK")
</pallas_src>

<mosaic_0001>
module attributes {stable_mosaic.version = 11 : i64} {
  func.func @convlayer_kernel(%arg0: memref<2x16x16x4xf32, #tpu.memory_space<vmem>>, %arg1: memref<36x16xf32, #tpu.memory_space<vmem>>, %arg2: memref<1x16xf32, #tpu.memory_space<vmem>>, %arg3: memref<1x16xf32, #tpu.memory_space<vmem>>, %arg4: memref<1x16xf32, #tpu.memory_space<vmem>>, %arg5: memref<2x16x256xf32, #tpu.memory_space<vmem>>, %arg6: memref<2x18x18x4xf32, #tpu.memory_space<vmem>>, %arg7: memref<512x36xf32, #tpu.memory_space<vmem>>) attributes {dimension_semantics = [], scalar_prefetch = 0 : i64, scratch_operands = 2 : i64, tpu.core_type = #tpu.core_type<tc>} {
    %c0 = arith.constant 0 : index
    %c0_0 = arith.constant 0 : index
    %c0_1 = arith.constant 0 : index
    %c0_2 = arith.constant 0 : index
    %0 = vector.load %arg0[%c0, %c0_0, %c0_1, %c0_2] : memref<2x16x16x4xf32, #tpu.memory_space<vmem>>, vector<2x16x16x4xf32>
    %c0_3 = arith.constant 0 : index
    %c1 = arith.constant 1 : index
    %c1_4 = arith.constant 1 : index
    %c0_5 = arith.constant 0 : index
    %1 = vector.load %arg6[%c0_3, %c1, %c1_4, %c0_5] : memref<2x18x18x4xf32, #tpu.memory_space<vmem>>, vector<2x16x16x4xf32>
    tpu.vector_store %arg6[%c0_3, %c1, %c1_4, %c0_5], %0 {strides = array<i32>} : memref<2x18x18x4xf32, #tpu.memory_space<vmem>>, vector<2x16x16x4xf32>,
    %2 = vector.extract_strided_slice %0 {offsets = [0, 1, 0, 0], sizes = [2, 1, 16, 4], strides = [1, 1, 1, 1]} : vector<2x16x16x4xf32> to vector<2x1x16x4xf32>
    %c0_6 = arith.constant 0 : index
    %c0_7 = arith.constant 0 : index
    %c1_8 = arith.constant 1 : index
    %c0_9 = arith.constant 0 : index
    %3 = vector.load %arg6[%c0_6, %c0_7, %c1_8, %c0_9] : memref<2x18x18x4xf32, #tpu.memory_space<vmem>>, vector<2x1x16x4xf32>
    tpu.vector_store %arg6[%c0_6, %c0_7, %c1_8, %c0_9], %2 {strides = array<i32>} : memref<2x18x18x4xf32, #tpu.memory_space<vmem>>, vector<2x1x16x4xf32>,
    %4 = vector.extract_strided_slice %0 {offsets = [0, 14, 0, 0], sizes = [2, 1, 16, 4], strides = [1, 1, 1, 1]} : vector<2x16x16x4xf32> to vector<2x1x16x4xf32>
    %c0_10 = arith.constant 0 : index
    %c17 = arith.constant 17 : index
    %c1_11 = arith.constant 1 : index
    %c0_12 = arith.constant 0 : index
    %5 = vector.load %arg6[%c0_10, %c17, %c1_11, %c0_12] : memref<2x18x18x4xf32, #tpu.memory_space<vmem>>, vector<2x1x16x4xf32>
    tpu.vector_store %arg6[%c0_10, %c17, %c1_11, %c0_12], %4 {strides = array<i32>} : memref<2x18x18x4xf32, #tpu.memory_space<vmem>>, vector<2x1x16x4xf32>,
    %c0_13 = arith.constant 0 : index
    %c0_14 = arith.constant 0 : index
    %c2 = arith.constant 2 : index
    %c0_15 = arith.constant 0 : index
    %6 = vector.load %arg6[%c0_13, %c0_14, %c2, %c0_15] : memref<2x18x18x4xf32, #tpu.memory_space<vmem>>, vector<2x18x1x4xf32>
    %c0_16 = arith.constant 0 : index
    %c0_17 = arith.constant 0 : index
    %c0_18 = arith.constant 0 : index
    %c0_19 = arith.constant 0 : index
    %7 = vector.load %arg6[%c0_16, %c0_17, %c0_18, %c0_19] : memref<2x18x18x4xf32, #tpu.memory_space<vmem>>, vector<2x18x1x4xf32>
    tpu.vector_store %arg6[%c0_16, %c0_17, %c0_18, %c0_19], %6 {strides = array<i32>} : memref<2x18x18x4xf32, #tpu.memory_space<vmem>>, vector<2x18x1x4xf32>,
    %c0_20 = arith.constant 0 : index
    %c0_21 = arith.constant 0 : index
    %c15 = arith.constant 15 : index
    %c0_22 = arith.constant 0 : index
    %8 = vector.load %arg6[%c0_20, %c0_21, %c15, %c0_22] : memref<2x18x18x4xf32, #tpu.memory_space<vmem>>, vector<2x18x1x4xf32>
    %c0_23 = arith.constant 0 : index
    %c0_24 = arith.constant 0 : index
    %c17_25 = arith.constant 17 : index
    %c0_26 = arith.constant 0 : index
    %9 = vector.load %arg6[%c0_23, %c0_24, %c17_25, %c0_26] : memref<2x18x18x4xf32, #tpu.memory_space<vmem>>, vector<2x18x1x4xf32>
    tpu.vector_store %arg6[%c0_23, %c0_24, %c17_25, %c0_26], %8 {strides = array<i32>} : memref<2x18x18x4xf32, #tpu.memory_space<vmem>>, vector<2x18x1x4xf32>,
    %c0_27 = arith.constant 0 : index
    %c0_28 = arith.constant 0 : index
    %c0_29 = arith.constant 0 : index
    %c0_30 = arith.constant 0 : index
    %10 = vector.load %arg6[%c0_27, %c0_28, %c0_29, %c0_30] : memref<2x18x18x4xf32, #tpu.memory_space<vmem>>, vector<2x16x16x4xf32>
    %11 = vector.shape_cast %10 : vector<2x16x16x4xf32> to vector<512x4xf32>
    %c0_31 = arith.constant 0 : index
    %c0_32 = arith.constant 0 : index
    %12 = vector.load %arg7[%c0_31, %c0_32] : memref<512x36xf32, #tpu.memory_space<vmem>>, vector<512x4xf32>
    tpu.vector_store %arg7[%c0_31, %c0_32], %11 {strides = array<i32>} : memref<512x36xf32, #tpu.memory_space<vmem>>, vector<512x4xf32>,
    %c0_33 = arith.constant 0 : index
    %c0_34 = arith.constant 0 : index
    %c1_35 = arith.constant 1 : index
    %c0_36 = arith.constant 0 : index
    %13 = vector.load %arg6[%c0_33, %c0_34, %c1_35, %c0_36] : memref<2x18x18x4xf32, #tpu.memory_space<vmem>>, vector<2x16x16x4xf32>
    %14 = vector.shape_cast %13 : vector<2x16x16x4xf32> to vector<512x4xf32>
    %c0_37 = arith.constant 0 : index
    %c4 = arith.constant 4 : index
    %15 = vector.load %arg7[%c0_37, %c4] : memref<512x36xf32, #tpu.memory_space<vmem>>, vector<512x4xf32>
    tpu.vector_store %arg7[%c0_37, %c4], %14 {strides = array<i32>} : memref<512x36xf32, #tpu.memory_space<vmem>>, vector<512x4xf32>,
    %c0_38 = arith.constant 0 : index
    %c0_39 = arith.constant 0 : index
    %c2_40 = arith.constant 2 : index
    %c0_41 = arith.constant 0 : index
    %16 = vector.load %arg6[%c0_38, %c0_39, %c2_40, %c0_41] : memref<2x18x18x4xf32, #tpu.memory_space<vmem>>, vector<2x16x16x4xf32>
    %17 = vector.shape_cast %16 : vector<2x16x16x4xf32> to vector<512x4xf32>
    %c0_42 = arith.constant 0 : index
    %c8 = arith.constant 8 : index
    %18 = vector.load %arg7[%c0_42, %c8] : memref<512x36xf32, #tpu.memory_space<vmem>>, vector<512x4xf32>
    tpu.vector_store %arg7[%c0_42, %c8], %17 {strides = array<i32>} : memref<512x36xf32, #tpu.memory_space<vmem>>, vector<512x4xf32>,
    %c0_43 = arith.constant 0 : index
    %c1_44 = arith.constant 1 : index
    %c0_45 = arith.constant 0 : index
    %c0_46 = arith.constant 0 : index
    %19 = vector.load %arg6[%c0_43, %c1_44, %c0_45, %c0_46] : memref<2x18x18x4xf32, #tpu.memory_space<vmem>>, vector<2x16x16x4xf32>
    %20 = vector.shape_cast %19 : vector<2x16x16x4xf32> to vector<512x4xf32>
    %c0_47 = arith.constant 0 : index
    %c12 = arith.constant 12 : index
    %21 = vector.load %arg7[%c0_47, %c12] : memref<512x36xf32, #tpu.memory_space<vmem>>, vector<512x4xf32>
    tpu.vector_store %arg7[%c0_47, %c12], %20 {strides = array<i32>} : memref<512x36xf32, #tpu.memory_space<vmem>>, vector<512x4xf32>,
    %c0_48 = arith.constant 0 : index
    %c1_49 = arith.constant 1 : index
    %c1_50 = arith.constant 1 : index
    %c0_51 = arith.constant 0 : index
    %22 = vector.load %arg6[%c0_48, %c1_49, %c1_50, %c0_51] : memref<2x18x18x4xf32, #tpu.memory_space<vmem>>, vector<2x16x16x4xf32>
    %23 = vector.shape_cast %22 : vector<2x16x16x4xf32> to vector<512x4xf32>
    %c0_52 = arith.constant 0 : index
    %c16 = arith.constant 16 : index
    %24 = vector.load %arg7[%c0_52, %c16] : memref<512x36xf32, #tpu.memory_space<vmem>>, vector<512x4xf32>
    tpu.vector_store %arg7[%c0_52, %c16], %23 {strides = array<i32>} : memref<512x36xf32, #tpu.memory_space<vmem>>, vector<512x4xf32>,
    %c0_53 = arith.constant 0 : index
    %c1_54 = arith.constant 1 : index
    %c2_55 = arith.constant 2 : index
    %c0_56 = arith.constant 0 : index
    %25 = vector.load %arg6[%c0_53, %c1_54, %c2_55, %c0_56] : memref<2x18x18x4xf32, #tpu.memory_space<vmem>>, vector<2x16x16x4xf32>
    %26 = vector.shape_cast %25 : vector<2x16x16x4xf32> to vector<512x4xf32>
    %c0_57 = arith.constant 0 : index
    %c20 = arith.constant 20 : index
    %27 = vector.load %arg7[%c0_57, %c20] : memref<512x36xf32, #tpu.memory_space<vmem>>, vector<512x4xf32>
    tpu.vector_store %arg7[%c0_57, %c20], %26 {strides = array<i32>} : memref<512x36xf32, #tpu.memory_space<vmem>>, vector<512x4xf32>,
    %c0_58 = arith.constant 0 : index
    %c2_59 = arith.constant 2 : index
    %c0_60 = arith.constant 0 : index
    %c0_61 = arith.constant 0 : index
    %28 = vector.load %arg6[%c0_58, %c2_59, %c0_60, %c0_61] : memref<2x18x18x4xf32, #tpu.memory_space<vmem>>, vector<2x16x16x4xf32>
    %29 = vector.shape_cast %28 : vector<2x16x16x4xf32> to vector<512x4xf32>
    %c0_62 = arith.constant 0 : index
    %c24 = arith.constant 24 : index
    %30 = vector.load %arg7[%c0_62, %c24] : memref<512x36xf32, #tpu.memory_space<vmem>>, vector<512x4xf32>
    tpu.vector_store %arg7[%c0_62, %c24], %29 {strides = array<i32>} : memref<512x36xf32, #tpu.memory_space<vmem>>, vector<512x4xf32>,
    %c0_63 = arith.constant 0 : index
    %c2_64 = arith.constant 2 : index
    %c1_65 = arith.constant 1 : index
    %c0_66 = arith.constant 0 : index
    %31 = vector.load %arg6[%c0_63, %c2_64, %c1_65, %c0_66] : memref<2x18x18x4xf32, #tpu.memory_space<vmem>>, vector<2x16x16x4xf32>
    %32 = vector.shape_cast %31 : vector<2x16x16x4xf32> to vector<512x4xf32>
    %c0_67 = arith.constant 0 : index
    %c28 = arith.constant 28 : index
    %33 = vector.load %arg7[%c0_67, %c28] : memref<512x36xf32, #tpu.memory_space<vmem>>, vector<512x4xf32>
    tpu.vector_store %arg7[%c0_67, %c28], %32 {strides = array<i32>} : memref<512x36xf32, #tpu.memory_space<vmem>>, vector<512x4xf32>,
    %c0_68 = arith.constant 0 : index
    %c2_69 = arith.constant 2 : index
    %c2_70 = arith.constant 2 : index
    %c0_71 = arith.constant 0 : index
    %34 = vector.load %arg6[%c0_68, %c2_69, %c2_70, %c0_71] : memref<2x18x18x4xf32, #tpu.memory_space<vmem>>, vector<2x16x16x4xf32>
    %35 = vector.shape_cast %34 : vector<2x16x16x4xf32> to vector<512x4xf32>
    %c0_72 = arith.constant 0 : index
    %c32 = arith.constant 32 : index
    %36 = vector.load %arg7[%c0_72, %c32] : memref<512x36xf32, #tpu.memory_space<vmem>>, vector<512x4xf32>
    tpu.vector_store %arg7[%c0_72, %c32], %35 {strides = array<i32>} : memref<512x36xf32, #tpu.memory_space<vmem>>, vector<512x4xf32>,
    %c0_73 = arith.constant 0 : index
    %c0_74 = arith.constant 0 : index
    %37 = vector.load %arg7[%c0_73, %c0_74] : memref<512x36xf32, #tpu.memory_space<vmem>>, vector<512x36xf32>
    %c0_75 = arith.constant 0 : index
    %c0_76 = arith.constant 0 : index
    %38 = vector.load %arg1[%c0_75, %c0_76] : memref<36x16xf32, #tpu.memory_space<vmem>>, vector<36x16xf32>
    %cst = arith.constant dense<0.000000e+00> : vector<512x16xf32>
    %39 = tpu.matmul %37, %38, %cst {dimension_numbers = #tpu.dot_dimension_numbers<[1], [0], [0], [1], [0, 0, 1, 1], [], []>} : vector<512x36xf32>, vector<36x16xf32>, vector<512x16xf32> -> vector<512x16xf32>
    %c0_77 = arith.constant 0 : index
    %c0_78 = arith.constant 0 : index
    %40 = vector.load %arg2[%c0_77, %c0_78] : memref<1x16xf32, #tpu.memory_space<vmem>>, vector<1x16xf32>
    %41 = vector.broadcast %40 : vector<1x16xf32> to vector<512x16xf32>
    %42 = arith.addf %39, %41 : vector<512x16xf32>
    %cst_79 = arith.constant dense<0.000000e+00> : vector<16xf32>
    %43 = vector.multi_reduction <add>, %42, %cst_79 [0] : vector<512x16xf32> to vector<16xf32>
    %44 = vector.shape_cast %43 : vector<16xf32> to vector<1x16xf32>
    %cst_80 = arith.constant 0.001953125 : f32
    %45 = vector.broadcast %cst_80 : f32 to vector<1x16xf32>
    %46 = arith.mulf %44, %45 : vector<1x16xf32>
    %47 = arith.mulf %42, %42 : vector<512x16xf32>
    %cst_81 = arith.constant dense<0.000000e+00> : vector<16xf32>
    %48 = vector.multi_reduction <add>, %47, %cst_81 [0] : vector<512x16xf32> to vector<16xf32>
    %49 = vector.shape_cast %48 : vector<16xf32> to vector<1x16xf32>
    %cst_82 = arith.constant 0.001953125 : f32
    %50 = vector.broadcast %cst_82 : f32 to vector<1x16xf32>
    %51 = arith.mulf %49, %50 : vector<1x16xf32>
    %52 = arith.mulf %46, %46 : vector<1x16xf32>
    %53 = arith.subf %51, %52 : vector<1x16xf32>
    %cst_83 = arith.constant 9.99999974E-6 : f32
    %54 = vector.broadcast %cst_83 : f32 to vector<1x16xf32>
    %55 = arith.addf %53, %54 : vector<1x16xf32>
    %56 = math.rsqrt %55 : vector<1x16xf32>
    %c0_84 = arith.constant 0 : index
    %c0_85 = arith.constant 0 : index
    %57 = vector.load %arg3[%c0_84, %c0_85] : memref<1x16xf32, #tpu.memory_space<vmem>>, vector<1x16xf32>
    %58 = arith.mulf %56, %57 : vector<1x16xf32>
    %c0_86 = arith.constant 0 : index
    %c0_87 = arith.constant 0 : index
    %59 = vector.load %arg4[%c0_86, %c0_87] : memref<1x16xf32, #tpu.memory_space<vmem>>, vector<1x16xf32>
    %60 = arith.mulf %46, %58 : vector<1x16xf32>
    %61 = arith.subf %59, %60 : vector<1x16xf32>
    %62 = vector.broadcast %58 : vector<1x16xf32> to vector<512x16xf32>
    %63 = arith.mulf %42, %62 : vector<512x16xf32>
    %64 = vector.broadcast %61 : vector<1x16xf32> to vector<512x16xf32>
    %65 = arith.addf %63, %64 : vector<512x16xf32>
    %66 = vector.extract_strided_slice %65 {offsets = [0, 0], sizes = [256, 16], strides = [1, 1]} : vector<512x16xf32> to vector<256x16xf32>
    %67 = tpu.transpose %66, [1, 0] : vector<256x16xf32> -> vector<16x256xf32>
    %c0_88 = arith.constant 0 : index
    %c0_89 = arith.constant 0 : index
    %c0_90 = arith.constant 0 : index
    %68 = vector.load %arg5[%c0_88, %c0_89, %c0_90] : memref<2x16x256xf32, #tpu.memory_space<vmem>>, vector<1x16x256xf32>
    %69 = vector.shape_cast %68 : vector<1x16x256xf32> to vector<16x256xf32>
    %70 = vector.shape_cast %67 : vector<16x256xf32> to vector<1x16x256xf32>
    tpu.vector_store %arg5[%c0_88, %c0_89, %c0_90], %70 {strides = array<i32>} : memref<2x16x256xf32, #tpu.memory_space<vmem>>, vector<1x16x256xf32>,
    %71 = vector.extract_strided_slice %65 {offsets = [256, 0], sizes = [256, 16], strides = [1, 1]} : vector<512x16xf32> to vector<256x16xf32>
    %72 = tpu.transpose %71, [1, 0] : vector<256x16xf32> -> vector<16x256xf32>
    %c1_91 = arith.constant 1 : index
    %c0_92 = arith.constant 0 : index
    %c0_93 = arith.constant 0 : index
    %73 = vector.load %arg5[%c1_91, %c0_92, %c0_93] : memref<2x16x256xf32, #tpu.memory_space<vmem>>, vector<1x16x256xf32>
    %74 = vector.shape_cast %73 : vector<1x16x256xf32> to vector<16x256xf32>
    %75 = vector.shape_cast %72 : vector<16x256xf32> to vector<1x16x256xf32>
    tpu.vector_store %arg5[%c1_91, %c0_92, %c0_93], %75 {strides = array<i32>} : memref<2x16x256xf32, #tpu.memory_space<vmem>>, vector<1x16x256xf32>,
    return
  }
}

</mosaic_0001>

<bundles_post_ra>
// kernel: conv_layer.1
= control target key start
LH: loop header
LB: loop body
LE: loop exit
PB: predicated region body
PF: predicated region fallthrough
CT: control target
= control target key end

     0   :  { %vm85_vm0 = vcmask 31744   ;;  %s5057_s16 = smov 4   ;;  %vm195_vm1 = vcmask 24576   ;;  %vm752_vm2 = vcmask 64544   ;;  %s5058_s17 = smov 8   ;;  %vm1137_vm3 = vcmask 97344   ;;  %s7765_s0 = inlined_call_operand.vmem [shape: f32[2,16,16,4], index: 0, kind: input, shape index: {}]   ;;  %s7766_s1 = inlined_call_operand.vmem [shape: f32[36,16], index: 1, kind: input, shape index: {}]   ;;  %s7767_s2 = inlined_call_operand.vmem [shape: f32[1,16], index: 2, kind: input, shape index: {}]   ;;  %s7768_s3 = inlined_call_operand.vmem [shape: f32[1,16], index: 3, kind: input, shape index: {}]   ;;  %s7769_s4 = inlined_call_operand.vmem [shape: f32[1,16], index: 4, kind: input, shape index: {}]   ;;  %s7770_s5 = inlined_call_operand.vmem [shape: f32[2,16,256], index: 5, kind: output, shape index: {}]  }
   0x1   :  { %v22_v0 = vld [vmem:[%s7765_s0 + $0x10] sm:$0xff]  ;;  %v20_v1 = vld [vmem:[%s7765_s0] sm:$0xff]  ;;  %v23_v2 = vld [vmem:[%s7765_s0 + $0x18] sm:$0xff]  ;;  %vm1522_vm4 = vcmask 130144   ;;  %s5060_s25 = smov 16   ;;  %vm1907_vm5 = vcmask 162944  }
   0x2   :  { %150 = vst.msk [vmem:[#allocation2 + $0x1] sm:$0xff] %vm85_vm0, %v22_v0  ;;  %88 = vst.msk [vmem:[#allocation2 + $0x31] sm:$0xff] %vm85_vm0, %v22_v0  ;;  %v21_v3 = vld [vmem:[%s7765_s0 + $0x8] sm:$0xff]  ;;  %v24_v4 = vld [vmem:[%s7765_s0 + $0x20] sm:$0xff]  ;;  %s5061_s26 = smov 20   ;;  %vm2292_vm6 = vcmask 195744  }
   0x3   :  { %86 = vst.msk [vmem:[#allocation2 + $0x19] sm:$0xff] %vm85_vm0, %v20_v1  ;;  %151 = vst.msk [vmem:[#allocation2 + $0x9] sm:$0xff] %vm85_vm0, %v23_v2  ;;  %v25_v5 = vld [vmem:[%s7765_s0 + $0x28] sm:$0xff]  ;;  %v26_v6 = vld [vmem:[%s7765_s0 + $0x30] sm:$0xff]  ;;  %s5062_s27 = smov 24   ;;  %vm3782_vm7 = vcmask 1043456  }
   0x4   :  { %89 = vst.msk [vmem:[#allocation2 + $0x39] sm:$0xff] %vm85_vm0, %v23_v2  ;;  %87 = vst.msk [vmem:[#allocation2 + $0x21] sm:$0xff] %vm85_vm0, %v21_v3  ;;  %v27_v7 = vld [vmem:[%s7765_s0 + $0x38] sm:$0xff]  ;;  %v28_v8 = vld [vmem:[%s7765_s0 + $0x40] sm:$0xff]  ;;  %s5063_s11 = smov 28   ;;  %s5064_s14 = smov 32  }
   0x5   :  { %90 = vst.msk [vmem:[#allocation2 + $0x49] sm:$0xff] %vm85_vm0, %v24_v4  ;;  %91 = vst.msk [vmem:[#allocation2 + $0x51] sm:$0xff] %vm85_vm0, %v25_v5  ;;  %v29_v9 = vld [vmem:[%s7765_s0 + $0x48] sm:$0xff]  ;;  %v30_v10 = vld [vmem:[%s7765_s0 + $0x50] sm:$0xff]  ;;  %vm2678_vm8 = vcmask 228544   ;;  %vm3063_vm9 = vcmask 261344  }
   0x6   :  { %92 = vst.msk [vmem:[#allocation2 + $0x61] sm:$0xff] %vm85_vm0, %v26_v6  ;;  %93 = vst.msk [vmem:[#allocation2 + $0x69] sm:$0xff] %vm85_vm0, %v27_v7  ;;  %v31_v11 = vld [vmem:[%s7765_s0 + $0x58] sm:$0xff]  ;;  %v32_v12 = vld [vmem:[%s7765_s0 + $0x60] sm:$0xff]  ;;  %vm3448_vm10 = vcmask 294144   ;;  %vm3589_vm11 = vcmask 293888  }
   0x7   :  { %94 = vst.msk [vmem:[#allocation2 + $0x79] sm:$0xff] %vm85_vm0, %v28_v8  ;;  %95 = vst.msk [vmem:[#allocation2 + $0x81] sm:$0xff] %vm85_vm0, %v29_v9  ;;  %v33_v13 = vld [vmem:[%s7765_s0 + $0x68] sm:$0xff]  ;;  %v34_v14 = vld [vmem:[%s7765_s0 + $0x70] sm:$0xff]  ;;  %vm4171_vm12 = vcmask 130048  }
   0x8   :  { %96 = vst.msk [vmem:[#allocation2 + $0x91] sm:$0xff] %vm85_vm0, %v30_v10  ;;  %97 = vst.msk [vmem:[#allocation2 + $0x99] sm:$0xff] %vm85_vm0, %v31_v11  ;;  %v35_v15 = vld [vmem:[%s7765_s0 + $0x78] sm:$0xff]  ;;  %v36_v16 = vld [vmem:[%s7765_s0 + $0x80] sm:$0xff] }
   0x9   :  { %98 = vst.msk [vmem:[#allocation2 + $0xa9] sm:$0xff] %vm85_vm0, %v32_v12  ;;  %99 = vst.msk [vmem:[#allocation2 + $0xb1] sm:$0xff] %vm85_vm0, %v33_v13  ;;  %v37_v17 = vld [vmem:[%s7765_s0 + $0x88] sm:$0xff]  ;;  %v38_v18 = vld [vmem:[%s7765_s0 + $0x90] sm:$0xff] }
   0xa   :  { %100 = vst.msk [vmem:[#allocation2 + $0xc1] sm:$0xff] %vm85_vm0, %v34_v14  ;;  %101 = vst.msk [vmem:[#allocation2 + $0xc9] sm:$0xff] %vm85_vm0, %v35_v15  ;;  %v39_v19 = vld [vmem:[%s7765_s0 + $0x98] sm:$0xff]  ;;  %v40_v20 = vld [vmem:[%s7765_s0 + $0xa0] sm:$0xff] }
   0xb   :  { %102 = vst.msk [vmem:[#allocation2 + $0xd9] sm:$0xff] %vm85_vm0, %v36_v16  ;;  %103 = vst.msk [vmem:[#allocation2 + $0xe1] sm:$0xff] %vm85_vm0, %v37_v17  ;;  %v41_v21 = vld [vmem:[%s7765_s0 + $0xa8] sm:$0xff]  ;;  %v42_v22 = vld [vmem:[%s7765_s0 + $0xb0] sm:$0xff] }
   0xc   :  { %104 = vst.msk [vmem:[#allocation2 + $0xf1] sm:$0xff] %vm85_vm0, %v38_v18  ;;  %105 = vst.msk [vmem:[#allocation2 + $0xf9] sm:$0xff] %vm85_vm0, %v39_v19  ;;  %v43_v23 = vld [vmem:[%s7765_s0 + $0xb8] sm:$0xff]  ;;  %v432_v24 = vld [vmem:[#allocation2 + $0x1] sm:$0xff] }
   0xd   :  { %106 = vst.msk [vmem:[#allocation2 + $0x109] sm:$0xff] %vm85_vm0, %v40_v20  ;;  %v434_v25 = vld [vmem:[#allocation2 + $0x19] sm:$0xff]  ;;  %107 = vst.msk [vmem:[#allocation2 + $0x111] sm:$0xff] %vm85_vm0, %v41_v21  ;;  %560 = vrot.lane.b32.xlu0 %v432_v24, %s5057_s16  ;;  %v433_v26 = vld [vmem:[#allocation2 + $0x9] sm:$0xff] }
   0xe   :  { %108 = vst.msk [vmem:[#allocation2 + $0x121] sm:$0xff] %vm85_vm0, %v42_v22  ;;  %109 = vst.msk [vmem:[#allocation2 + $0x129] sm:$0xff] %vm85_vm0, %v43_v23  ;;  %564 = vrot.lane.b32.xlu1 %v434_v25, %s5057_s16  ;;  %v435_v27 = vld [vmem:[#allocation2 + $0x21] sm:$0xff]  ;;  %v436_v28 = vld [vmem:[#allocation2 + $0x31] sm:$0xff] }
   0xf   :  { %v437_v29 = vld [vmem:[#allocation2 + $0x39] sm:$0xff]  ;;  %v438_v30 = vld [vmem:[#allocation2 + $0x49] sm:$0xff]  ;;  %v439_v31 = vld [vmem:[#allocation2 + $0x51] sm:$0xff] }
  0x10   :  { %v44_v32 = vld [vmem:[%s7765_s0 + $0xc0] sm:$0xff]  ;;  %v45_v33 = vld [vmem:[%s7765_s0 + $0xc8] sm:$0xff]  ;;  %v46_v34 = vld [vmem:[%s7765_s0 + $0xd0] sm:$0xff] }
  0x11   :  { %562 = vrot.lane.b32.xlu0 %v433_v26, %s5057_s16  ;;  %110 = vst.msk [vmem:[#allocation2 + $0x139] sm:$0xff] %vm85_vm0, %v44_v32  ;;  %v159_v35 = vld [vmem:[#allocation2 + $0x2] sm:$0x1]  ;;  %111 = vst.msk [vmem:[#allocation2 + $0x141] sm:$0xff] %vm85_vm0, %v45_v33  ;;  %v47_v36 = vld [vmem:[%s7765_s0 + $0xd8] sm:$0xff] }
  0x12   :  { %566 = vrot.lane.b32.xlu1 %v435_v27, %s5057_s16  ;;  %112 = vst.msk [vmem:[#allocation2 + $0x151] sm:$0xff] %vm85_vm0, %v46_v34  ;;  %v48_v37 = vld [vmem:[%s7765_s0 + $0xe0] sm:$0xff]  ;;  %v49_v38 = vld [vmem:[%s7765_s0 + $0xe8] sm:$0xff]  ;;  %113 = vst.msk [vmem:[#allocation2 + $0x159] sm:$0xff] %vm85_vm0, %v47_v36 }
  0x13   :  { %196 = vst.msk [vmem:[#allocation2] sm:$0x1] %vm195_vm1, %v159_v35  ;;  %v54_v39 = vld [vmem:[%s7765_s0 + $0x110] sm:$0xff]  ;;  %v55_v40 = vld [vmem:[%s7765_s0 + $0x118] sm:$0xff]  ;;  %v52_v41 = vld [vmem:[%s7765_s0 + $0x100] sm:$0xff] }
  0x14   :  { %114 = vst.msk [vmem:[#allocation2 + $0x169] sm:$0xff] %vm85_vm0, %v48_v37  ;;  %155 = vst.msk [vmem:[#allocation2 + $0x199] sm:$0xff] %vm85_vm0, %v48_v37  ;;  %v440_v42 = vld [vmem:[#allocation2 + $0x61] sm:$0xff]  ;;  %v441_v43 = vld [vmem:[#allocation2 + $0x69] sm:$0xff] }
  0x15   :  { %568 = vrot.lane.b32.xlu0 %v436_v28, %s5057_s16  ;;  %115 = vst.msk [vmem:[#allocation2 + $0x171] sm:$0xff] %vm85_vm0, %v49_v38  ;;  %156 = vst.msk [vmem:[#allocation2 + $0x1a1] sm:$0xff] %vm85_vm0, %v49_v38  ;;  %v53_v44 = vld [vmem:[%s7765_s0 + $0x108] sm:$0xff]  ;;  %v56_v45 = vld [vmem:[%s7765_s0 + $0x120] sm:$0xff] }
  0x16   :  { %570 = vrot.lane.b32.xlu1 %v437_v29, %s5057_s16  ;;  %152 = vst.msk [vmem:[#allocation2 + $0x1b1] sm:$0xff] %vm85_vm0, %v54_v39  ;;  %120 = vst.msk [vmem:[#allocation2 + $0x1e1] sm:$0xff] %vm85_vm0, %v54_v39  ;;  %v57_v46 = vld [vmem:[%s7765_s0 + $0x128] sm:$0xff]  ;;  %v58_v47 = vld [vmem:[%s7765_s0 + $0x130] sm:$0xff] }
  0x17   :  { %153 = vst.msk [vmem:[#allocation2 + $0x1b9] sm:$0xff] %vm85_vm0, %v55_v40  ;;  %121 = vst.msk [vmem:[#allocation2 + $0x1e9] sm:$0xff] %vm85_vm0, %v55_v40  ;;  %v59_v48 = vld [vmem:[%s7765_s0 + $0x138] sm:$0xff]  ;;  %v60_v50 = vld [vmem:[%s7765_s0 + $0x140] sm:$0xff] }
  0x18   :  { %118 = vst.msk [vmem:[#allocation2 + $0x1c9] sm:$0xff] %vm85_vm0, %v52_v41  ;;  %119 = vst.msk [vmem:[#allocation2 + $0x1d1] sm:$0xff] %vm85_vm0, %v53_v44  ;;  %v160_v49 = vld [vmem:[#allocation2 + $0x1a] sm:$0x1]  ;;  %v61_v51 = vld [vmem:[%s7765_s0 + $0x148] sm:$0xff] }
  0x19   :  { %572 = vrot.lane.b32.xlu0 %v438_v30, %s5057_s16  ;;  %122 = vst.msk [vmem:[#allocation2 + $0x1f9] sm:$0xff] %vm85_vm0, %v56_v45  ;;  %123 = vst.msk [vmem:[#allocation2 + $0x201] sm:$0xff] %vm85_vm0, %v57_v46  ;;  %v62_v52 = vld [vmem:[%s7765_s0 + $0x150] sm:$0xff]  ;;  %v63_v53 = vld [vmem:[%s7765_s0 + $0x158] sm:$0xff] }
  0x1a   :  { %574 = vrot.lane.b32.xlu1 %v439_v31, %s5057_s16  ;;  %124 = vst.msk [vmem:[#allocation2 + $0x211] sm:$0xff] %vm85_vm0, %v58_v47  ;;  %125 = vst.msk [vmem:[#allocation2 + $0x219] sm:$0xff] %vm85_vm0, %v59_v48  ;;  %v64_v54 = vld [vmem:[%s7765_s0 + $0x160] sm:$0xff]  ;;  %v65_v55 = vld [vmem:[%s7765_s0 + $0x168] sm:$0xff] }
  0x1b   :  { %197 = vst.msk [vmem:[#allocation2 + $0x18] sm:$0x1] %vm195_vm1, %v160_v49  ;;  %v66_v56 = vld [vmem:[%s7765_s0 + $0x170] sm:$0xff]  ;;  %v67_v57 = vld [vmem:[%s7765_s0 + $0x178] sm:$0xff]  ;;  %v68_v58 = vld [vmem:[%s7765_s0 + $0x180] sm:$0xff] }
  0x1c   :  { %126 = vst.msk [vmem:[#allocation2 + $0x229] sm:$0xff] %vm85_vm0, %v60_v50  ;;  %127 = vst.msk [vmem:[#allocation2 + $0x231] sm:$0xff] %vm85_vm0, %v61_v51  ;;  %v442_v59 = vld [vmem:[#allocation2 + $0x79] sm:$0xff]  ;;  %v443_v60 = vld [vmem:[#allocation2 + $0x81] sm:$0xff] }
  0x1d   :  { %128 = vst.msk [vmem:[#allocation2 + $0x241] sm:$0xff] %vm85_vm0, %v62_v52  ;;  %129 = vst.msk [vmem:[#allocation2 + $0x249] sm:$0xff] %vm85_vm0, %v63_v53  ;;  %576 = vrot.lane.b32.xlu0 %v440_v42, %s5057_s16  ;;  %v444_v61 = vld [vmem:[#allocation2 + $0x91] sm:$0xff]  ;;  %v445_v62 = vld [vmem:[#allocation2 + $0x99] sm:$0xff] }
  0x1e   :  { %130 = vst.msk [vmem:[#allocation2 + $0x259] sm:$0xff] %vm85_vm0, %v64_v54  ;;  %131 = vst.msk [vmem:[#allocation2 + $0x261] sm:$0xff] %vm85_vm0, %v65_v55  ;;  %578 = vrot.lane.b32.xlu1 %v441_v43, %s5057_s16  ;;  %v446_v63 = vld [vmem:[#allocation2 + $0xa9] sm:$0xff]  ;;  %v447_v0 = vld [vmem:[#allocation2 + $0xb1] sm:$0xff] }
  0x1f   :  { %132 = vst.msk [vmem:[#allocation2 + $0x271] sm:$0xff] %vm85_vm0, %v66_v56  ;;  %133 = vst.msk [vmem:[#allocation2 + $0x279] sm:$0xff] %vm85_vm0, %v67_v57  ;;  %v69_v1 = vld [vmem:[%s7765_s0 + $0x188] sm:$0xff]  ;;  %v70_v2 = vld [vmem:[%s7765_s0 + $0x190] sm:$0xff] }
  0x20   :  { %134 = vst.msk [vmem:[#allocation2 + $0x289] sm:$0xff] %vm85_vm0, %v68_v58  ;;  %135 = vst.msk [vmem:[#allocation2 + $0x291] sm:$0xff] %vm85_vm0, %v69_v1  ;;  %v71_v3 = vld [vmem:[%s7765_s0 + $0x198] sm:$0xff]  ;;  %v72_v4 = vld [vmem:[%s7765_s0 + $0x1a0] sm:$0xff] }
  0x21   :  { %580 = vrot.lane.b32.xlu0 %v442_v59, %s5057_s16  ;;  %136 = vst.msk [vmem:[#allocation2 + $0x2a1] sm:$0xff] %vm85_vm0, %v70_v2  ;;  %v73_v5 = vld [vmem:[%s7765_s0 + $0x1a8] sm:$0xff]  ;;  %137 = vst.msk [vmem:[#allocation2 + $0x2a9] sm:$0xff] %vm85_vm0, %v71_v3  ;;  %v74_v6 = vld [vmem:[%s7765_s0 + $0x1b0] sm:$0xff] }
  0x22   :  { %582 = vrot.lane.b32.xlu1 %v443_v60, %s5057_s16  ;;  %138 = vst.msk [vmem:[#allocation2 + $0x2b9] sm:$0xff] %vm85_vm0, %v72_v4  ;;  %139 = vst.msk [vmem:[#allocation2 + $0x2c1] sm:$0xff] %vm85_vm0, %v73_v5  ;;  %v75_v7 = vld [vmem:[%s7765_s0 + $0x1b8] sm:$0xff]  ;;  %v304_v8 = vld [vmem:[#allocation2] sm:$0xff] }
  0x23   :  { %v448_v9 = vld [vmem:[#allocation2 + $0xc1] sm:$0xff]  ;;  %v449_v10 = vld [vmem:[#allocation2 + $0xc9] sm:$0xff]  ;;  %140 = vst.msk [vmem:[#allocation2 + $0x2d1] sm:$0xff] %vm85_vm0, %v74_v6  ;;  %141 = vst.msk [vmem:[#allocation2 + $0x2d9] sm:$0xff] %vm85_vm0, %v75_v7 }
  0x24   :  { %368 = vst.msk [vmem:[#allocation3] sm:$0xff] %vm85_vm0, %v304_v8  ;;  %v306_v11 = vld [vmem:[#allocation2 + $0x18] sm:$0xff]  ;;  %v76_v12 = vld [vmem:[%s7765_s0 + $0x1c0] sm:$0xff]  ;;  %v77_v13 = vld [vmem:[%s7765_s0 + $0x1c8] sm:$0xff] }
  0x25   :  { %584 = vrot.lane.b32.xlu0 %v444_v61, %s5057_s16  ;;  %370 = vst.msk [vmem:[#allocation3 + $0x10] sm:$0xff] %vm85_vm0, %v306_v11  ;;  %142 = vst.msk [vmem:[#allocation2 + $0x2e9] sm:$0xff] %vm85_vm0, %v76_v12  ;;  %v305_v14 = vld [vmem:[#allocation2 + $0x8] sm:$0xff]  ;;  %v307_v15 = vld [vmem:[#allocation2 + $0x20] sm:$0xff] }
  0x26   :  { %586 = vrot.lane.b32.xlu1 %v445_v62, %s5057_s16  ;;  %143 = vst.msk [vmem:[#allocation2 + $0x2f1] sm:$0xff] %vm85_vm0, %v77_v13  ;;  %v78_v16 = vld [vmem:[%s7765_s0 + $0x1d0] sm:$0xff]  ;;  %369 = vst.msk [vmem:[#allocation3 + $0x8] sm:$0xff] %vm85_vm0, %v305_v14  ;;  %v79_v17 = vld [vmem:[%s7765_s0 + $0x1d8] sm:$0xff] }
  0x27   :  { %371 = vst.msk [vmem:[#allocation3 + $0x18] sm:$0xff] %vm85_vm0, %v307_v15  ;;  %144 = vst.msk [vmem:[#allocation2 + $0x301] sm:$0xff] %vm85_vm0, %v78_v16  ;;  %v161_v18 = vld [vmem:[#allocation2 + $0x32] sm:$0x1]  ;;  %v309_v19 = vld [vmem:[#allocation2 + $0x38] sm:$0xff] }
  0x28   :  { %145 = vst.msk [vmem:[#allocation2 + $0x309] sm:$0xff] %vm85_vm0, %v79_v17  ;;  %373 = vst.msk [vmem:[#allocation3 + $0x28] sm:$0xff] %vm85_vm0, %v309_v19  ;;  %v80_v20 = vld [vmem:[%s7765_s0 + $0x1e0] sm:$0xff]  ;;  %v81_v21 = vld [vmem:[%s7765_s0 + $0x1e8] sm:$0xff] }
  0x29   :  { %588 = vrot.lane.b32.xlu0 %v446_v63, %s5057_s16  ;;  %198 = vst.msk [vmem:[#allocation2 + $0x30] sm:$0x1] %vm195_vm1, %v161_v18  ;;  %v162_v22 = vld [vmem:[#allocation2 + $0x4a] sm:$0x1]  ;;  %v311_v23 = vld [vmem:[#allocation2 + $0x50] sm:$0xff]  ;;  %v450_v26 = vld [vmem:[#allocation2 + $0xd9] sm:$0xff] }
  0x2a   :  { %590 = vrot.lane.b32.xlu1 %v447_v0, %s5057_s16  ;;  %146 = vst.msk [vmem:[#allocation2 + $0x319] sm:$0xff] %vm85_vm0, %v80_v20  ;;  %157 = vst.msk [vmem:[#allocation2 + $0x349] sm:$0xff] %vm85_vm0, %v80_v20  ;;  %v232_v24 = vld [vmem:[#allocation2 + $0xf] sm:$0x1]  ;;  %v163_v25 = vld [vmem:[#allocation2 + $0x62] sm:$0x1] }
  0x2b   :  { %147 = vst.msk [vmem:[#allocation2 + $0x321] sm:$0xff] %vm85_vm0, %v81_v21  ;;  %158 = vst.msk [vmem:[#allocation2 + $0x351] sm:$0xff] %vm85_vm0, %v81_v21  ;;  %v451_v27 = vld [vmem:[#allocation2 + $0xe1] sm:$0xff]  ;;  %v452_v29 = vld [vmem:[#allocation2 + $0xf1] sm:$0xff] }
  0x2c   :  { %199 = vst.msk [vmem:[#allocation2 + $0x48] sm:$0x1] %vm195_vm1, %v162_v22  ;;  %268 = vst.msk [vmem:[#allocation2 + $0x11] sm:$0x1] %vm195_vm1, %v232_v24  ;;  %v5373_v28 = vld [vmem:[#allocation2 + $0x68] sm:$0xff]  ;;  %v453_v32 = vld [vmem:[#allocation2 + $0xf9] sm:$0xff] }
  0x2d   :  { %592 = vrot.lane.b32.xlu0 %v448_v9, %s5057_s16  ;;  %375 = vst.msk [vmem:[#allocation3 + $0x38] sm:$0xff] %vm85_vm0, %v311_v23  ;;  %377 = vst.msk [vmem:[#allocation3 + $0x48] sm:$0xff] %vm85_vm0, %v5373_v28  ;;  %v233_v30 = vld [vmem:[#allocation2 + $0x27] sm:$0x1]  ;;  %v164_v31 = vld [vmem:[#allocation2 + $0x7a] sm:$0x1] }
  0x2e   :  { %594 = vrot.lane.b32.xlu1 %v449_v10, %s5057_s16  ;;  %200 = vst.msk [vmem:[#allocation2 + $0x60] sm:$0x1] %vm195_vm1, %v163_v25  ;;  %269 = vst.msk [vmem:[#allocation2 + $0x29] sm:$0x1] %vm195_vm1, %v233_v30  ;;  %v5381_v34 = vld [vmem:[#allocation2 + $0x80] sm:$0xff]  ;;  %v454_v36 = vld [vmem:[#allocation2 + $0x109] sm:$0xff] }
  0x2f   :  { %201 = vst.msk [vmem:[#allocation2 + $0x78] sm:$0x1] %vm195_vm1, %v164_v31  ;;  %v234_v37 = vld [vmem:[#allocation2 + $0x3f] sm:$0x1]  ;;  %v165_v39 = vld [vmem:[#allocation2 + $0x92] sm:$0x1] }
  0x30   :  { %v308_v33 = vld [vmem:[#allocation2 + $0x30] sm:$0xff]  ;;  %379 = vst.msk [vmem:[#allocation3 + $0x58] sm:$0xff] %vm85_vm0, %v5381_v34  ;;  %v5392_v40 = vld [vmem:[#allocation2 + $0x98] sm:$0xff]  ;;  %v166_v43 = vld [vmem:[#allocation2 + $0xaa] sm:$0x1] }
  0x31   :  { %596 = vrot.lane.b32.xlu0 %v450_v26, %s5057_s16  ;;  %372 = vst.msk [vmem:[#allocation3 + $0x20] sm:$0xff] %vm85_vm0, %v308_v33  ;;  %v455_v41 = vld [vmem:[#allocation2 + $0x111] sm:$0xff]  ;;  %381 = vst.msk [vmem:[#allocation3 + $0x68] sm:$0xff] %vm85_vm0, %v5392_v40  ;;  %v236_v45 = vld [vmem:[#allocation2 + $0x6f] sm:$0x1] }
  0x32   :  { %598 = vrot.lane.b32.xlu1 %v451_v27, %s5057_s16  ;;  %270 = vst.msk [vmem:[#allocation2 + $0x41] sm:$0x1] %vm195_vm1, %v234_v37  ;;  %202 = vst.msk [vmem:[#allocation2 + $0x90] sm:$0x1] %vm195_vm1, %v165_v39  ;;  %v235_v42 = vld [vmem:[#allocation2 + $0x57] sm:$0x1] }
  0x33   :  { %v310_v35 = vld [vmem:[#allocation2 + $0x48] sm:$0xff]  ;;  %271 = vst.msk [vmem:[#allocation2 + $0x59] sm:$0x1] %vm195_vm1, %v235_v42  ;;  %203 = vst.msk [vmem:[#allocation2 + $0xa8] sm:$0x1] %vm195_vm1, %v166_v43  ;;  %v5401_v44 = vld [vmem:[#allocation2 + $0xb0] sm:$0xff] }
  0x34   :  { %374 = vst.msk [vmem:[#allocation3 + $0x30] sm:$0xff] %vm85_vm0, %v310_v35  ;;  %383 = vst.msk [vmem:[#allocation3 + $0x78] sm:$0xff] %vm85_vm0, %v5401_v44  ;;  %v167_v46 = vld [vmem:[#allocation2 + $0xc2] sm:$0x1]  ;;  %v5406_v47 = vld [vmem:[#allocation2 + $0xc8] sm:$0xff] }
  0x35   :  { %600 = vrot.lane.b32.xlu0 %v452_v29, %s5057_s16  ;;  %v5389_v38 = vld [vmem:[#allocation2 + $0x60] sm:$0xff]  ;;  %272 = vst.msk [vmem:[#allocation2 + $0x71] sm:$0x1] %vm195_vm1, %v236_v45  ;;  %204 = vst.msk [vmem:[#allocation2 + $0xc0] sm:$0x1] %vm195_vm1, %v167_v46  ;;  %v457_v51 = vld [vmem:[#allocation2 + $0x129] sm:$0xff] }
  0x36   :  { %602 = vrot.lane.b32.xlu1 %v453_v32, %s5057_s16  ;;  %376 = vst.msk [vmem:[#allocation3 + $0x40] sm:$0xff] %vm85_vm0, %v5389_v38  ;;  %v456_v48 = vld [vmem:[#allocation2 + $0x121] sm:$0xff]  ;;  %v5410_v49 = vld [vmem:[#allocation2 + $0x78] sm:$0xff]  ;;  %385 = vst.msk [vmem:[#allocation3 + $0x88] sm:$0xff] %vm85_vm0, %v5406_v47 }
  0x37   :  { %v237_v50 = vld [vmem:[#allocation2 + $0x87] sm:$0x1]  ;;  %378 = vst.msk [vmem:[#allocation3 + $0x50] sm:$0xff] %vm85_vm0, %v5410_v49  ;;  %v168_v52 = vld [vmem:[#allocation2 + $0xda] sm:$0x1]  ;;  %v5434_v60 = vld [vmem:[#allocation2 + $0x110] sm:$0xff] }
  0x38   :  { %273 = vst.msk [vmem:[#allocation2 + $0x89] sm:$0x1] %vm195_vm1, %v237_v50  ;;  %v5418_v53 = vld [vmem:[#allocation2 + $0xe0] sm:$0xff]  ;;  %205 = vst.msk [vmem:[#allocation2 + $0xd8] sm:$0x1] %vm195_vm1, %v168_v52  ;;  %v5423_v56 = vld [vmem:[#allocation2 + $0xf8] sm:$0xff] }
  0x39   :  { %604 = vrot.lane.b32.xlu0 %v454_v36, %s5057_s16  ;;  %387 = vst.msk [vmem:[#allocation3 + $0x98] sm:$0xff] %vm85_vm0, %v5418_v53  ;;  %v238_v54 = vld [vmem:[#allocation2 + $0x9f] sm:$0x1]  ;;  %v169_v55 = vld [vmem:[#allocation2 + $0xf2] sm:$0x1]  ;;  %389 = vst.msk [vmem:[#allocation3 + $0xa8] sm:$0xff] %vm85_vm0, %v5423_v56 }
  0x3a   :  { %606 = vrot.lane.b32.xlu1 %v455_v41, %s5057_s16  ;;  %274 = vst.msk [vmem:[#allocation2 + $0xa1] sm:$0x1] %vm195_vm1, %v238_v54  ;;  %206 = vst.msk [vmem:[#allocation2 + $0xf0] sm:$0x1] %vm195_vm1, %v169_v55  ;;  %v239_v57 = vld [vmem:[#allocation2 + $0xb7] sm:$0x1] }
  0x3b   :  { %v5431_v58 = vld [vmem:[#allocation2 + $0x90] sm:$0xff]  ;;  %275 = vst.msk [vmem:[#allocation2 + $0xb9] sm:$0x1] %vm195_vm1, %v239_v57  ;;  %v170_v59 = vld [vmem:[#allocation2 + $0x10a] sm:$0x1]  ;;  %v458_v61 = vld [vmem:[#allocation2 + $0x139] sm:$0xff] }
  0x3c   :  { %v459_v62 = vld [vmem:[#allocation2 + $0x141] sm:$0xff]  ;;  %380 = vst.msk [vmem:[#allocation3 + $0x60] sm:$0xff] %vm85_vm0, %v5431_v58  ;;  %391 = vst.msk [vmem:[#allocation3 + $0xb8] sm:$0xff] %vm85_vm0, %v5434_v60  ;;  %v240_v0 = vld [vmem:[#allocation2 + $0xcf] sm:$0x1] }
  0x3d   :  { %608 = vrot.lane.b32.xlu0 %v456_v48, %s5057_s16  ;;  %v5438_v63 = vld [vmem:[#allocation2 + $0xa8] sm:$0xff]  ;;  %207 = vst.msk [vmem:[#allocation2 + $0x108] sm:$0x1] %vm195_vm1, %v170_v59  ;;  %v171_v1 = vld [vmem:[#allocation2 + $0x122] sm:$0x1]  ;;  %v460_v4 = vld [vmem:[#allocation2 + $0x151] sm:$0xff] }
  0x3e   :  { %610 = vrot.lane.b32.xlu1 %v457_v51, %s5057_s16  ;;  %382 = vst.msk [vmem:[#allocation3 + $0x70] sm:$0xff] %vm85_vm0, %v5438_v63  ;;  %v5445_v2 = vld [vmem:[#allocation2 + $0xc0] sm:$0xff]  ;;  %v5449_v3 = vld [vmem:[#allocation2 + $0x128] sm:$0xff]  ;;  %v172_v6 = vld [vmem:[#allocation2 + $0x13a] sm:$0x1] }
  0x3f   :  { %276 = vst.msk [vmem:[#allocation2 + $0xd1] sm:$0x1] %vm195_vm1, %v240_v0  ;;  %208 = vst.msk [vmem:[#allocation2 + $0x120] sm:$0x1] %vm195_vm1, %v171_v1  ;;  %v241_v5 = vld [vmem:[#allocation2 + $0xe7] sm:$0x1] }
  0x40   :  { %384 = vst.msk [vmem:[#allocation3 + $0x80] sm:$0xff] %vm85_vm0, %v5445_v2  ;;  %393 = vst.msk [vmem:[#allocation3 + $0xc8] sm:$0xff] %vm85_vm0, %v5449_v3  ;;  %v461_v7 = vld [vmem:[#allocation2 + $0x159] sm:$0xff]  ;;  %v173_v12 = vld [vmem:[#allocation2 + $0x152] sm:$0x1] }
  0x41   :  { %612 = vrot.lane.b32.xlu0 %v458_v61, %s5057_s16  ;;  %v5457_v8 = vld [vmem:[#allocation2 + $0xd8] sm:$0xff]  ;;  %277 = vst.msk [vmem:[#allocation2 + $0xe9] sm:$0x1] %vm195_vm1, %v241_v5  ;;  %209 = vst.msk [vmem:[#allocation2 + $0x138] sm:$0x1] %vm195_vm1, %v172_v6  ;;  %v5461_v9 = vld [vmem:[#allocation2 + $0x140] sm:$0xff] }
  0x42   :  { %614 = vrot.lane.b32.xlu1 %v459_v62, %s5057_s16  ;;  %386 = vst.msk [vmem:[#allocation3 + $0x90] sm:$0xff] %vm85_vm0, %v5457_v8  ;;  %v5465_v10 = vld [vmem:[#allocation2 + $0xf0] sm:$0xff]  ;;  %395 = vst.msk [vmem:[#allocation3 + $0xd8] sm:$0xff] %vm85_vm0, %v5461_v9  ;;  %v242_v11 = vld [vmem:[#allocation2 + $0xff] sm:$0x1] }
  0x43   :  { %388 = vst.msk [vmem:[#allocation3 + $0xa0] sm:$0xff] %vm85_vm0, %v5465_v10  ;;  %v5472_v13 = vld [vmem:[#allocation2 + $0x158] sm:$0xff]  ;;  %v462_v14 = vld [vmem:[#allocation2 + $0x169] sm:$0xff]  ;;  %v243_v16 = vld [vmem:[#allocation2 + $0x117] sm:$0x1] }
  0x44   :  { %278 = vst.msk [vmem:[#allocation2 + $0x101] sm:$0x1] %vm195_vm1, %v242_v11  ;;  %v5476_v15 = vld [vmem:[#allocation2 + $0x108] sm:$0xff]  ;;  %210 = vst.msk [vmem:[#allocation2 + $0x150] sm:$0x1] %vm195_vm1, %v173_v12  ;;  %v463_v17 = vld [vmem:[#allocation2 + $0x171] sm:$0xff] }
  0x45   :  { %616 = vrot.lane.b32.xlu0 %v460_v4, %s5057_s16  ;;  %397 = vst.msk [vmem:[#allocation3 + $0xe8] sm:$0xff] %vm85_vm0, %v5472_v13  ;;  %390 = vst.msk [vmem:[#allocation3 + $0xb0] sm:$0xff] %vm85_vm0, %v5476_v15  ;;  %v174_v18 = vld [vmem:[#allocation2 + $0x16a] sm:$0x1]  ;;  %v5484_v19 = vld [vmem:[#allocation2 + $0x170] sm:$0xff] }
  0x46   :  { %618 = vrot.lane.b32.xlu1 %v461_v7, %s5057_s16  ;;  %279 = vst.msk [vmem:[#allocation2 + $0x119] sm:$0x1] %vm195_vm1, %v243_v16  ;;  %v5486_v20 = vld [vmem:[#allocation2 + $0x120] sm:$0xff]  ;;  %211 = vst.msk [vmem:[#allocation2 + $0x168] sm:$0x1] %vm195_vm1, %v174_v18  ;;  %v337_v23 = vld [vmem:[#allocation2 + $0x1b8] sm:$0xff] }
  0x47   :  { %399 = vst.msk [vmem:[#allocation3 + $0xf8] sm:$0xff] %vm85_vm0, %v5484_v19  ;;  %v244_v21 = vld [vmem:[#allocation2 + $0x12f] sm:$0x1]  ;;  %392 = vst.msk [vmem:[#allocation3 + $0xc0] sm:$0xff] %vm85_vm0, %v5486_v20  ;;  %v177_v22 = vld [vmem:[#allocation2 + $0x1b2] sm:$0x1] }
  0x48   :  { %280 = vst.msk [vmem:[#allocation2 + $0x131] sm:$0x1] %vm195_vm1, %v244_v21  ;;  %v464_v24 = vld [vmem:[#allocation2 + $0x1b1] sm:$0xff]  ;;  %214 = vst.msk [vmem:[#allocation2 + $0x1b0] sm:$0x1] %vm195_vm1, %v177_v22  ;;  %v465_v27 = vld [vmem:[#allocation2 + $0x1b9] sm:$0xff] }
  0x49   :  { %620 = vrot.lane.b32.xlu0 %v462_v14, %s5057_s16  ;;  %v5496_v25 = vld [vmem:[#allocation2 + $0x138] sm:$0xff]  ;;  %401 = vst.msk [vmem:[#allocation3 + $0x108] sm:$0xff] %vm85_vm0, %v337_v23  ;;  %v245_v26 = vld [vmem:[#allocation2 + $0x147] sm:$0x1]  ;;  %v178_v29 = vld [vmem:[#allocation2 + $0x1ca] sm:$0x1] }
  0x4a   :  { %622 = vrot.lane.b32.xlu1 %v463_v17, %s5057_s16  ;;  %394 = vst.msk [vmem:[#allocation3 + $0xd0] sm:$0xff] %vm85_vm0, %v5496_v25  ;;  %v5503_v30 = vld [vmem:[#allocation2 + $0x1d0] sm:$0xff]  ;;  %v246_v31 = vld [vmem:[#allocation2 + $0x15f] sm:$0x1]  ;;  %v179_v32 = vld [vmem:[#allocation2 + $0x1e2] sm:$0x1] }
  0x4b   :  { %281 = vst.msk [vmem:[#allocation2 + $0x149] sm:$0x1] %vm195_vm1, %v245_v26  ;;  %215 = vst.msk [vmem:[#allocation2 + $0x1c8] sm:$0x1] %vm195_vm1, %v178_v29  ;;  %v5508_v33 = vld [vmem:[#allocation2 + $0x150] sm:$0xff]  ;;  %v5512_v35 = vld [vmem:[#allocation2 + $0x1e8] sm:$0xff] }
  0x4c   :  { %403 = vst.msk [vmem:[#allocation3 + $0x118] sm:$0xff] %vm85_vm0, %v5503_v30  ;;  %v466_v36 = vld [vmem:[#allocation2 + $0x1c9] sm:$0xff]  ;;  %396 = vst.msk [vmem:[#allocation3 + $0xe0] sm:$0xff] %vm85_vm0, %v5508_v33  ;;  %v247_v37 = vld [vmem:[#allocation2 + $0x177] sm:$0x1] }
  0x4d   :  { %282 = vst.msk [vmem:[#allocation2 + $0x161] sm:$0x1] %vm195_vm1, %v246_v31  ;;  %216 = vst.msk [vmem:[#allocation2 + $0x1e0] sm:$0x1] %vm195_vm1, %v179_v32  ;;  %624 = vrot.lane.b32.xlu0 %v464_v24, %s5057_s16  ;;  %v180_v39 = vld [vmem:[#allocation2 + $0x1fa] sm:$0x1] }
  0x4e   :  { %626 = vrot.lane.b32.xlu1 %v465_v27, %s5057_s16  ;;  %405 = vst.msk [vmem:[#allocation3 + $0x128] sm:$0xff] %vm85_vm0, %v5512_v35  ;;  %v467_v41 = vld [vmem:[#allocation2 + $0x1d1] sm:$0xff]  ;;  %v5520_v42 = vld [vmem:[#allocation2 + $0x168] sm:$0xff]  ;;  %v5524_v43 = vld [vmem:[#allocation2 + $0x200] sm:$0xff] }
  0x4f   :  { %283 = vst.msk [vmem:[#allocation2 + $0x179] sm:$0x1] %vm195_vm1, %v247_v37  ;;  %217 = vst.msk [vmem:[#allocation2 + $0x1f8] sm:$0x1] %vm195_vm1, %v180_v39  ;;  %v250_v45 = vld [vmem:[#allocation2 + $0x1bf] sm:$0x1] }
  0x50   :  { %398 = vst.msk [vmem:[#allocation3 + $0xf0] sm:$0xff] %vm85_vm0, %v5520_v42  ;;  %407 = vst.msk [vmem:[#allocation3 + $0x138] sm:$0xff] %vm85_vm0, %v5524_v43  ;;  %v181_v46 = vld [vmem:[#allocation2 + $0x212] sm:$0x1]  ;;  %v468_v48 = vld [vmem:[#allocation2 + $0x1e1] sm:$0xff] }
  0x51   :  { %v336_v50 = vld [vmem:[#allocation2 + $0x1b0] sm:$0xff]  ;;  %286 = vst.msk [vmem:[#allocation2 + $0x1c1] sm:$0x1] %vm195_vm1, %v250_v45  ;;  %218 = vst.msk [vmem:[#allocation2 + $0x210] sm:$0x1] %vm195_vm1, %v181_v46  ;;  %v5532_v51 = vld [vmem:[#allocation2 + $0x218] sm:$0xff]  ;;  %628 = vrot.lane.b32.xlu0 %v466_v36, %s5057_s16 }
  0x52   :  { %630 = vrot.lane.b32.xlu1 %v467_v41, %s5057_s16  ;;  %v469_v52 = vld [vmem:[#allocation2 + $0x1e9] sm:$0xff]  ;;  %400 = vst.msk [vmem:[#allocation3 + $0x100] sm:$0xff] %vm85_vm0, %v336_v50  ;;  %409 = vst.msk [vmem:[#allocation3 + $0x148] sm:$0xff] %vm85_vm0, %v5532_v51  ;;  %v251_v54 = vld [vmem:[#allocation2 + $0x1d7] sm:$0x1] }
  0x53   :  { %v182_v55 = vld [vmem:[#allocation2 + $0x22a] sm:$0x1]  ;;  %287 = vst.msk [vmem:[#allocation2 + $0x1d9] sm:$0x1] %vm195_vm1, %v251_v54  ;;  %v252_v59 = vld [vmem:[#allocation2 + $0x1ef] sm:$0x1] }
  0x54   :  { %v5539_v57 = vld [vmem:[#allocation2 + $0x1c8] sm:$0xff]  ;;  %219 = vst.msk [vmem:[#allocation2 + $0x228] sm:$0x1] %vm195_vm1, %v182_v55  ;;  %v183_v61 = vld [vmem:[#allocation2 + $0x242] sm:$0x1]  ;;  %v5547_v0 = vld [vmem:[#allocation2 + $0x230] sm:$0xff] }
  0x55   :  { %402 = vst.msk [vmem:[#allocation3 + $0x110] sm:$0xff] %vm85_vm0, %v5539_v57  ;;  %v5545_v62 = vld [vmem:[#allocation2 + $0x1e0] sm:$0xff]  ;;  %411 = vst.msk [vmem:[#allocation3 + $0x158] sm:$0xff] %vm85_vm0, %v5547_v0  ;;  %v184_v4 = vld [vmem:[#allocation2 + $0x25a] sm:$0x1]  ;;  %632 = vrot.lane.b32.xlu0 %v468_v48, %s5057_s16 }
  0x56   :  { %288 = vst.msk [vmem:[#allocation2 + $0x1f1] sm:$0x1] %vm195_vm1, %v252_v59  ;;  %220 = vst.msk [vmem:[#allocation2 + $0x240] sm:$0x1] %vm195_vm1, %v183_v61  ;;  %v253_v1 = vld [vmem:[#allocation2 + $0x207] sm:$0x1]  ;;  %634 = vrot.lane.b32.xlu1 %v469_v52, %s5057_s16 }
  0x57   :  { %404 = vst.msk [vmem:[#allocation3 + $0x120] sm:$0xff] %vm85_vm0, %v5545_v62  ;;  %v5557_v5 = vld [vmem:[#allocation2 + $0x1f8] sm:$0xff]  ;;  %v471_v11 = vld [vmem:[#allocation2 + $0x201] sm:$0xff]  ;;  %v185_v12 = vld [vmem:[#allocation2 + $0x272] sm:$0x1] }
  0x58   :  { %289 = vst.msk [vmem:[#allocation2 + $0x209] sm:$0x1] %vm195_vm1, %v253_v1  ;;  %221 = vst.msk [vmem:[#allocation2 + $0x258] sm:$0x1] %vm195_vm1, %v184_v4  ;;  %v254_v6 = vld [vmem:[#allocation2 + $0x21f] sm:$0x1] }
  0x59   :  { %v470_v7 = vld [vmem:[#allocation2 + $0x1f9] sm:$0xff]  ;;  %406 = vst.msk [vmem:[#allocation3 + $0x130] sm:$0xff] %vm85_vm0, %v5557_v5  ;;  %v5564_v14 = vld [vmem:[#allocation2 + $0x210] sm:$0xff]  ;;  %v5566_v16 = vld [vmem:[#allocation2 + $0x248] sm:$0xff] }
  0x5a   :  { %290 = vst.msk [vmem:[#allocation2 + $0x221] sm:$0x1] %vm195_vm1, %v254_v6  ;;  %222 = vst.msk [vmem:[#allocation2 + $0x270] sm:$0x1] %vm195_vm1, %v185_v12  ;;  %636 = vrot.lane.b32.xlu0 %v470_v7, %s5057_s16  ;;  %638 = vrot.lane.b32.xlu1 %v471_v11, %s5057_s16  ;;  %v472_v17 = vld [vmem:[#allocation2 + $0x211] sm:$0xff]  ;;  %v473_v22 = vld [vmem:[#allocation2 + $0x219] sm:$0xff] }
  0x5b   :  { %408 = vst.msk [vmem:[#allocation3 + $0x140] sm:$0xff] %vm85_vm0, %v5564_v14  ;;  %413 = vst.msk [vmem:[#allocation3 + $0x168] sm:$0xff] %vm85_vm0, %v5566_v16  ;;  %v5575_v18 = vld [vmem:[#allocation2 + $0x228] sm:$0xff]  ;;  %v255_v21 = vld [vmem:[#allocation2 + $0x237] sm:$0x1] }
  0x5c   :  { %410 = vst.msk [vmem:[#allocation3 + $0x150] sm:$0xff] %vm85_vm0, %v5575_v18  ;;  %v186_v24 = vld [vmem:[#allocation2 + $0x28a] sm:$0x1]  ;;  %v5584_v26 = vld [vmem:[#allocation2 + $0x260] sm:$0xff]  ;;  %v256_v31 = vld [vmem:[#allocation2 + $0x24f] sm:$0x1] }
  0x5d   :  { %v5579_v23 = vld [vmem:[#allocation2 + $0x240] sm:$0xff]  ;;  %291 = vst.msk [vmem:[#allocation2 + $0x239] sm:$0x1] %vm195_vm1, %v255_v21  ;;  %223 = vst.msk [vmem:[#allocation2 + $0x288] sm:$0x1] %vm195_vm1, %v186_v24  ;;  %v474_v29 = vld [vmem:[#allocation2 + $0x229] sm:$0xff] }
  0x5e   :  { %412 = vst.msk [vmem:[#allocation3 + $0x160] sm:$0xff] %vm85_vm0, %v5579_v23  ;;  %415 = vst.msk [vmem:[#allocation3 + $0x178] sm:$0xff] %vm85_vm0, %v5584_v26  ;;  %640 = vrot.lane.b32.xlu0 %v472_v17, %s5057_s16  ;;  %642 = vrot.lane.b32.xlu1 %v473_v22, %s5057_s16  ;;  %v475_v32 = vld [vmem:[#allocation2 + $0x231] sm:$0xff]  ;;  %v187_v37 = vld [vmem:[#allocation2 + $0x2a2] sm:$0x1] }
  0x5f   :  { %v5587_v27 = vld [vmem:[#allocation2 + $0x258] sm:$0xff]  ;;  %292 = vst.msk [vmem:[#allocation2 + $0x251] sm:$0x1] %vm195_vm1, %v256_v31  ;;  %224 = vst.msk [vmem:[#allocation2 + $0x2a0] sm:$0x1] %vm195_vm1, %v187_v37  ;;  %v476_v41 = vld [vmem:[#allocation2 + $0x241] sm:$0xff] }
  0x60   :  { %414 = vst.msk [vmem:[#allocation3 + $0x170] sm:$0xff] %vm85_vm0, %v5587_v27  ;;  %v5600_v39 = vld [vmem:[#allocation2 + $0x278] sm:$0xff]  ;;  %v257_v45 = vld [vmem:[#allocation2 + $0x267] sm:$0x1]  ;;  %v477_v46 = vld [vmem:[#allocation2 + $0x249] sm:$0xff] }
  0x61   :  { %v5595_v36 = vld [vmem:[#allocation2 + $0x270] sm:$0xff]  ;;  %417 = vst.msk [vmem:[#allocation3 + $0x188] sm:$0xff] %vm85_vm0, %v5600_v39  ;;  %v188_v50 = vld [vmem:[#allocation2 + $0x2ba] sm:$0x1]  ;;  %v258_v55 = vld [vmem:[#allocation2 + $0x27f] sm:$0x1] }
  0x62   :  { %416 = vst.msk [vmem:[#allocation3 + $0x180] sm:$0xff] %vm85_vm0, %v5595_v36  ;;  %644 = vrot.lane.b32.xlu0 %v474_v29, %s5057_s16  ;;  %646 = vrot.lane.b32.xlu1 %v475_v32, %s5057_s16  ;;  %v5612_v52 = vld [vmem:[#allocation2 + $0x290] sm:$0xff]  ;;  %v478_v54 = vld [vmem:[#allocation2 + $0x259] sm:$0xff]  ;;  %v479_v59 = vld [vmem:[#allocation2 + $0x261] sm:$0xff] }
  0x63   :  { %293 = vst.msk [vmem:[#allocation2 + $0x269] sm:$0x1] %vm195_vm1, %v257_v45  ;;  %225 = vst.msk [vmem:[#allocation2 + $0x2b8] sm:$0x1] %vm195_vm1, %v188_v50  ;;  %v189_v1 = vld [vmem:[#allocation2 + $0x2d2] sm:$0x1] }
  0x64   :  { %v5607_v48 = vld [vmem:[#allocation2 + $0x288] sm:$0xff]  ;;  %419 = vst.msk [vmem:[#allocation3 + $0x198] sm:$0xff] %vm85_vm0, %v5612_v52  ;;  %v480_v6 = vld [vmem:[#allocation2 + $0x271] sm:$0xff]  ;;  %v481_v11 = vld [vmem:[#allocation2 + $0x279] sm:$0xff] }
  0x65   :  { %418 = vst.msk [vmem:[#allocation3 + $0x190] sm:$0xff] %vm85_vm0, %v5607_v48  ;;  %v5624_v4 = vld [vmem:[#allocation2 + $0x2a8] sm:$0xff]  ;;  %v259_v7 = vld [vmem:[#allocation2 + $0x297] sm:$0x1]  ;;  %v5636_v21 = vld [vmem:[#allocation2 + $0x2c0] sm:$0xff] }
  0x66   :  { %648 = vrot.lane.b32.xlu0 %v476_v41, %s5057_s16  ;;  %650 = vrot.lane.b32.xlu1 %v477_v46, %s5057_s16  ;;  %v5619_v61 = vld [vmem:[#allocation2 + $0x2a0] sm:$0xff]  ;;  %294 = vst.msk [vmem:[#allocation2 + $0x281] sm:$0x1] %vm195_vm1, %v258_v55  ;;  %226 = vst.msk [vmem:[#allocation2 + $0x2d0] sm:$0x1] %vm195_vm1, %v189_v1  ;;  %v482_v22 = vld [vmem:[#allocation2 + $0x289] sm:$0xff] }
  0x67   :  { %420 = vst.msk [vmem:[#allocation3 + $0x1a0] sm:$0xff] %vm85_vm0, %v5619_v61  ;;  %421 = vst.msk [vmem:[#allocation3 + $0x1a8] sm:$0xff] %vm85_vm0, %v5624_v4  ;;  %v190_v17 = vld [vmem:[#allocation2 + $0x2ea] sm:$0x1]  ;;  %v260_v24 = vld [vmem:[#allocation2 + $0x2af] sm:$0x1] }
  0x68   :  { %295 = vst.msk [vmem:[#allocation2 + $0x299] sm:$0x1] %vm195_vm1, %v259_v7  ;;  %227 = vst.msk [vmem:[#allocation2 + $0x2e8] sm:$0x1] %vm195_vm1, %v190_v17  ;;  %v483_v29 = vld [vmem:[#allocation2 + $0x291] sm:$0xff]  ;;  %v484_v41 = vld [vmem:[#allocation2 + $0x2a1] sm:$0xff] }
  0x69   :  { %423 = vst.msk [vmem:[#allocation3 + $0x1b8] sm:$0xff] %vm85_vm0, %v5636_v21  ;;  %v191_v32 = vld [vmem:[#allocation2 + $0x302] sm:$0x1]  ;;  %v5648_v37 = vld [vmem:[#allocation2 + $0x2d8] sm:$0xff]  ;;  %v261_v45 = vld [vmem:[#allocation2 + $0x2c7] sm:$0x1] }
  0x6a   :  { %652 = vrot.lane.b32.xlu0 %v478_v54, %s5057_s16  ;;  %654 = vrot.lane.b32.xlu1 %v479_v59, %s5057_s16  ;;  %v5631_v12 = vld [vmem:[#allocation2 + $0x2b8] sm:$0xff]  ;;  %296 = vst.msk [vmem:[#allocation2 + $0x2b1] sm:$0x1] %vm195_vm1, %v260_v24  ;;  %228 = vst.msk [vmem:[#allocation2 + $0x300] sm:$0x1] %vm195_vm1, %v191_v32  ;;  %v485_v46 = vld [vmem:[#allocation2 + $0x2a9] sm:$0xff] }
  0x6b   :  { %422 = vst.msk [vmem:[#allocation3 + $0x1b0] sm:$0xff] %vm85_vm0, %v5631_v12  ;;  %425 = vst.msk [vmem:[#allocation3 + $0x1c8] sm:$0xff] %vm85_vm0, %v5648_v37  ;;  %v192_v54 = vld [vmem:[#allocation2 + $0x31a] sm:$0x1]  ;;  %v5660_v55 = vld [vmem:[#allocation2 + $0x2f0] sm:$0xff] }
  0x6c   :  { %297 = vst.msk [vmem:[#allocation2 + $0x2c9] sm:$0x1] %vm195_vm1, %v261_v45  ;;  %229 = vst.msk [vmem:[#allocation2 + $0x318] sm:$0x1] %vm195_vm1, %v192_v54  ;;  %v262_v59 = vld [vmem:[#allocation2 + $0x2df] sm:$0x1] }
  0x6d   :  { %v5643_v31 = vld [vmem:[#allocation2 + $0x2d0] sm:$0xff]  ;;  %427 = vst.msk [vmem:[#allocation3 + $0x1d8] sm:$0xff] %vm85_vm0, %v5660_v55  ;;  %v486_v1 = vld [vmem:[#allocation2 + $0x2b9] sm:$0xff] }
  0x6e   :  { %656 = vrot.lane.b32.xlu0 %v480_v6, %s5057_s16  ;;  %658 = vrot.lane.b32.xlu1 %v481_v11, %s5057_s16  ;;  %424 = vst.msk [vmem:[#allocation3 + $0x1c0] sm:$0xff] %vm85_vm0, %v5643_v31  ;;  %v487_v6 = vld [vmem:[#allocation2 + $0x2c1] sm:$0xff]  ;;  %v263_v17 = vld [vmem:[#allocation2 + $0x2f7] sm:$0x1]  ;;  %v489_v24 = vld [vmem:[#allocation2 + $0x2d9] sm:$0xff] }
  0x6f   :  { %v5655_v50 = vld [vmem:[#allocation2 + $0x2e8] sm:$0xff]  ;;  %298 = vst.msk [vmem:[#allocation2 + $0x2e1] sm:$0x1] %vm195_vm1, %v262_v59  ;;  %299 = vst.msk [vmem:[#allocation2 + $0x2f9] sm:$0x1] %vm195_vm1, %v263_v17  ;;  %v5683_v32 = vld [vmem:[#allocation2 + $0x320] sm:$0xff] }
  0x70   :  { %426 = vst.msk [vmem:[#allocation3 + $0x1d0] sm:$0xff] %vm85_vm0, %v5655_v50  ;;  %v5672_v11 = vld [vmem:[#allocation2 + $0x308] sm:$0xff]  ;;  %431 = vst.msk [vmem:[#allocation3 + $0x1f8] sm:$0xff] %vm85_vm0, %v5683_v32 }
  0x71   :  { %v5667_v7 = vld [vmem:[#allocation2 + $0x300] sm:$0xff]  ;;  %429 = vst.msk [vmem:[#allocation3 + $0x1e8] sm:$0xff] %vm85_vm0, %v5672_v11  ;;  %v490_v45 = vld [vmem:[#allocation2 + $0x2e9] sm:$0xff] }
  0x72   :  { %660 = vrot.lane.b32.xlu0 %v482_v22, %s5057_s16  ;;  %662 = vrot.lane.b32.xlu1 %v483_v29, %s5057_s16  ;;  %428 = vst.msk [vmem:[#allocation3 + $0x1e0] sm:$0xff] %vm85_vm0, %v5667_v7  ;;  %v488_v22 = vld [vmem:[#allocation2 + $0x2d1] sm:$0xff]  ;;  %v493_v17 = vld [vmem:[#allocation2 + $0x309] sm:$0xff] }
  0x73   :  { %v5678_v29 = vld [vmem:[#allocation2 + $0x318] sm:$0xff] }
  0x74   :  { %430 = vst.msk [vmem:[#allocation3 + $0x1f0] sm:$0xff] %vm85_vm0, %v5678_v29 }
  0x76   :  { %664 = vrot.lane.b32.xlu0 %v484_v41, %s5057_s16  ;;  %666 = vrot.lane.b32.xlu1 %v485_v46, %s5057_s16  ;;  %v264_v41 = vld [vmem:[#allocation2 + $0x30f] sm:$0x1]  ;;  %v491_v46 = vld [vmem:[#allocation2 + $0x2f1] sm:$0xff] }
  0x77   :  { %300 = vst.msk [vmem:[#allocation2 + $0x311] sm:$0x1] %vm195_vm1, %v264_v41  ;;  %v494_v41 = vld [vmem:[#allocation2 + $0x319] sm:$0xff] }
  0x7a   :  { %668 = vrot.lane.b32.xlu0 %v486_v1, %s5057_s16  ;;  %670 = vrot.lane.b32.xlu1 %v487_v6, %s5057_s16  ;;  %v265_v1 = vld [vmem:[#allocation2 + $0x327] sm:$0x1] }
  0x7b   :  { %v492_v6 = vld [vmem:[#allocation2 + $0x301] sm:$0xff]  ;;  %301 = vst.msk [vmem:[#allocation2 + $0x329] sm:$0x1] %vm195_vm1, %v265_v1  ;;  %v818_v1 = vld [vmem:[#allocation2 + $0xa] sm:$0xff] }
  0x7e   :  { %672 = vrot.lane.b32.xlu0 %v488_v22, %s5057_s16  ;;  %674 = vrot.lane.b32.xlu1 %v489_v24, %s5057_s16 }
  0x7f   :  { %v561_v54 = vpop.permute.xlu0 %560 }
  0x80   :  { %v565_v59 = vpop.permute.xlu1 %564  ;;  %753 = vst.msk [vmem:[#allocation3] sm:$0xff] %vm752_vm2, %v561_v54  ;;  %v495_v54 = vld [vmem:[#allocation2 + $0x321] sm:$0xff] }
  0x81   :  { %755 = vst.msk [vmem:[#allocation3 + $0x10] sm:$0xff] %vm752_vm2, %v565_v59 }
  0x82   :  { %676 = vrot.lane.b32.xlu0 %v490_v45, %s5057_s16  ;;  %678 = vrot.lane.b32.xlu1 %v491_v46, %s5057_s16  ;;  %v817_v46 = vld [vmem:[#allocation2 + $0x2] sm:$0xff] }
  0x83   :  { %v563_v22 = vpop.permute.xlu0 %562 }
  0x84   :  { %v567_v24 = vpop.permute.xlu1 %566  ;;  %754 = vst.msk [vmem:[#allocation3 + $0x8] sm:$0xff] %vm752_vm2, %v563_v22 }
  0x85   :  { %756 = vst.msk [vmem:[#allocation3 + $0x18] sm:$0xff] %vm752_vm2, %v567_v24 }
  0x86   :  { %680 = vrot.lane.b32.xlu0 %v492_v6, %s5057_s16  ;;  %682 = vrot.lane.b32.xlu1 %v493_v17, %s5057_s16  ;;  %v819_v6 = vld [vmem:[#allocation2 + $0x1a] sm:$0xff]  ;;  %v820_v17 = vld [vmem:[#allocation2 + $0x22] sm:$0xff] }
  0x87   :  { %v569_v45 = vpop.permute.xlu0 %568 }
  0x88   :  { %v571_v59 = vpop.permute.xlu1 %570  ;;  %757 = vst.msk [vmem:[#allocation3 + $0x20] sm:$0xff] %vm752_vm2, %v569_v45 }
  0x89   :  { %758 = vst.msk [vmem:[#allocation3 + $0x28] sm:$0xff] %vm752_vm2, %v571_v59 }
  0x8a   :  { %684 = vrot.lane.b32.xlu0 %v494_v41, %s5057_s16  ;;  %686 = vrot.lane.b32.xlu1 %v495_v54, %s5057_s16  ;;  %v821_v41 = vld [vmem:[#allocation2 + $0x32] sm:$0xff]  ;;  %v822_v54 = vld [vmem:[#allocation2 + $0x3a] sm:$0xff] }
  0x8b   :  { %v573_v22 = vpop.permute.xlu0 %572 }
  0x8c   :  { %v575_v24 = vpop.permute.xlu1 %574  ;;  %759 = vst.msk [vmem:[#allocation3 + $0x30] sm:$0xff] %vm752_vm2, %v573_v22 }
  0x8d   :  { %760 = vst.msk [vmem:[#allocation3 + $0x38] sm:$0xff] %vm752_vm2, %v575_v24 }
  0x8e   :  { %945 = vrot.lane.b32.xlu0 %v817_v46, %s5058_s17  ;;  %947 = vrot.lane.b32.xlu1 %v818_v1, %s5058_s17  ;;  %v823_v46 = vld [vmem:[#allocation2 + $0x4a] sm:$0xff]  ;;  %v824_v1 = vld [vmem:[#allocation2 + $0x52] sm:$0xff] }
  0x8f   :  { %v577_v45 = vpop.permute.xlu0 %576 }
  0x90   :  { %v579_v59 = vpop.permute.xlu1 %578  ;;  %761 = vst.msk [vmem:[#allocation3 + $0x40] sm:$0xff] %vm752_vm2, %v577_v45 }
  0x91   :  { %762 = vst.msk [vmem:[#allocation3 + $0x48] sm:$0xff] %vm752_vm2, %v579_v59 }
  0x92   :  { %949 = vrot.lane.b32.xlu0 %v819_v6, %s5058_s17  ;;  %951 = vrot.lane.b32.xlu1 %v820_v17, %s5058_s17  ;;  %v825_v6 = vld [vmem:[#allocation2 + $0x62] sm:$0xff]  ;;  %v826_v17 = vld [vmem:[#allocation2 + $0x6a] sm:$0xff] }
  0x93   :  { %v581_v22 = vpop.permute.xlu0 %580 }
  0x94   :  { %v583_v24 = vpop.permute.xlu1 %582  ;;  %763 = vst.msk [vmem:[#allocation3 + $0x50] sm:$0xff] %vm752_vm2, %v581_v22 }
  0x95   :  { %764 = vst.msk [vmem:[#allocation3 + $0x58] sm:$0xff] %vm752_vm2, %v583_v24 }
  0x96   :  { %953 = vrot.lane.b32.xlu0 %v821_v41, %s5058_s17  ;;  %955 = vrot.lane.b32.xlu1 %v822_v54, %s5058_s17  ;;  %v827_v41 = vld [vmem:[#allocation2 + $0x7a] sm:$0xff]  ;;  %v828_v54 = vld [vmem:[#allocation2 + $0x82] sm:$0xff] }
  0x97   :  { %v585_v45 = vpop.permute.xlu0 %584 }
  0x98   :  { %v587_v59 = vpop.permute.xlu1 %586  ;;  %765 = vst.msk [vmem:[#allocation3 + $0x60] sm:$0xff] %vm752_vm2, %v585_v45 }
  0x99   :  { %766 = vst.msk [vmem:[#allocation3 + $0x68] sm:$0xff] %vm752_vm2, %v587_v59 }
  0x9a   :  { %957 = vrot.lane.b32.xlu0 %v823_v46, %s5058_s17  ;;  %959 = vrot.lane.b32.xlu1 %v824_v1, %s5058_s17  ;;  %v829_v46 = vld [vmem:[#allocation2 + $0x92] sm:$0xff]  ;;  %v830_v1 = vld [vmem:[#allocation2 + $0x9a] sm:$0xff] }
  0x9b   :  { %v589_v22 = vpop.permute.xlu0 %588 }
  0x9c   :  { %v591_v24 = vpop.permute.xlu1 %590  ;;  %767 = vst.msk [vmem:[#allocation3 + $0x70] sm:$0xff] %vm752_vm2, %v589_v22 }
  0x9d   :  { %768 = vst.msk [vmem:[#allocation3 + $0x78] sm:$0xff] %vm752_vm2, %v591_v24 }
  0x9e   :  { %961 = vrot.lane.b32.xlu0 %v825_v6, %s5058_s17  ;;  %963 = vrot.lane.b32.xlu1 %v826_v17, %s5058_s17  ;;  %v831_v6 = vld [vmem:[#allocation2 + $0xaa] sm:$0xff]  ;;  %v832_v17 = vld [vmem:[#allocation2 + $0xb2] sm:$0xff] }
  0x9f   :  { %v593_v45 = vpop.permute.xlu0 %592 }
  0xa0   :  { %v595_v59 = vpop.permute.xlu1 %594  ;;  %769 = vst.msk [vmem:[#allocation3 + $0x80] sm:$0xff] %vm752_vm2, %v593_v45 }
  0xa1   :  { %770 = vst.msk [vmem:[#allocation3 + $0x88] sm:$0xff] %vm752_vm2, %v595_v59 }
  0xa2   :  { %965 = vrot.lane.b32.xlu0 %v827_v41, %s5058_s17  ;;  %967 = vrot.lane.b32.xlu1 %v828_v54, %s5058_s17  ;;  %v833_v41 = vld [vmem:[#allocation2 + $0xc2] sm:$0xff]  ;;  %v834_v54 = vld [vmem:[#allocation2 + $0xca] sm:$0xff] }
  0xa3   :  { %v597_v22 = vpop.permute.xlu0 %596 }
  0xa4   :  { %v599_v24 = vpop.permute.xlu1 %598  ;;  %771 = vst.msk [vmem:[#allocation3 + $0x90] sm:$0xff] %vm752_vm2, %v597_v22 }
  0xa5   :  { %772 = vst.msk [vmem:[#allocation3 + $0x98] sm:$0xff] %vm752_vm2, %v599_v24 }
  0xa6   :  { %969 = vrot.lane.b32.xlu0 %v829_v46, %s5058_s17  ;;  %971 = vrot.lane.b32.xlu1 %v830_v1, %s5058_s17  ;;  %v835_v46 = vld [vmem:[#allocation2 + $0xda] sm:$0xff]  ;;  %v836_v1 = vld [vmem:[#allocation2 + $0xe2] sm:$0xff] }
  0xa7   :  { %v601_v45 = vpop.permute.xlu0 %600 }
  0xa8   :  { %v603_v59 = vpop.permute.xlu1 %602  ;;  %773 = vst.msk [vmem:[#allocation3 + $0xa0] sm:$0xff] %vm752_vm2, %v601_v45 }
  0xa9   :  { %774 = vst.msk [vmem:[#allocation3 + $0xa8] sm:$0xff] %vm752_vm2, %v603_v59 }
  0xaa   :  { %973 = vrot.lane.b32.xlu0 %v831_v6, %s5058_s17  ;;  %975 = vrot.lane.b32.xlu1 %v832_v17, %s5058_s17  ;;  %v837_v6 = vld [vmem:[#allocation2 + $0xf2] sm:$0xff]  ;;  %v838_v17 = vld [vmem:[#allocation2 + $0xfa] sm:$0xff] }
  0xab   :  { %v605_v22 = vpop.permute.xlu0 %604 }
  0xac   :  { %v607_v24 = vpop.permute.xlu1 %606  ;;  %775 = vst.msk [vmem:[#allocation3 + $0xb0] sm:$0xff] %vm752_vm2, %v605_v22 }
  0xad   :  { %776 = vst.msk [vmem:[#allocation3 + $0xb8] sm:$0xff] %vm752_vm2, %v607_v24 }
  0xae   :  { %977 = vrot.lane.b32.xlu0 %v833_v41, %s5058_s17  ;;  %979 = vrot.lane.b32.xlu1 %v834_v54, %s5058_s17  ;;  %v839_v41 = vld [vmem:[#allocation2 + $0x10a] sm:$0xff]  ;;  %v840_v54 = vld [vmem:[#allocation2 + $0x112] sm:$0xff] }
  0xaf   :  { %v609_v45 = vpop.permute.xlu0 %608 }
  0xb0   :  { %v611_v59 = vpop.permute.xlu1 %610  ;;  %777 = vst.msk [vmem:[#allocation3 + $0xc0] sm:$0xff] %vm752_vm2, %v609_v45 }
  0xb1   :  { %778 = vst.msk [vmem:[#allocation3 + $0xc8] sm:$0xff] %vm752_vm2, %v611_v59 }
  0xb2   :  { %981 = vrot.lane.b32.xlu0 %v835_v46, %s5058_s17  ;;  %983 = vrot.lane.b32.xlu1 %v836_v1, %s5058_s17  ;;  %v50_v46 = vld [vmem:[%s7765_s0 + $0xf0] sm:$0xff]  ;;  %v841_v1 = vld [vmem:[#allocation2 + $0x122] sm:$0xff] }
  0xb3   :  { %v613_v22 = vpop.permute.xlu0 %612  ;;  %116 = vst.msk [vmem:[#allocation2 + $0x181] sm:$0xff] %vm85_vm0, %v50_v46  ;;  %v51_v46 = vld [vmem:[%s7765_s0 + $0xf8] sm:$0xff] }
  0xb4   :  { %v615_v24 = vpop.permute.xlu1 %614  ;;  %779 = vst.msk [vmem:[#allocation3 + $0xd0] sm:$0xff] %vm752_vm2, %v613_v22 }
  0xb5   :  { %780 = vst.msk [vmem:[#allocation3 + $0xd8] sm:$0xff] %vm752_vm2, %v615_v24  ;;  %v843_v24 = vld [vmem:[#allocation2 + $0x13a] sm:$0xff] }
  0xb6   :  { %985 = vrot.lane.b32.xlu0 %v837_v6, %s5058_s17  ;;  %987 = vrot.lane.b32.xlu1 %v838_v17, %s5058_s17  ;;  %v842_v6 = vld [vmem:[#allocation2 + $0x12a] sm:$0xff]  ;;  %117 = vst.msk [vmem:[#allocation2 + $0x189] sm:$0xff] %vm85_vm0, %v51_v46  ;;  %v850_v46 = vld [vmem:[#allocation2 + $0x1ba] sm:$0xff] }
  0xb7   :  { %v617_v45 = vpop.permute.xlu0 %616 }
  0xb8   :  { %v619_v59 = vpop.permute.xlu1 %618  ;;  %781 = vst.msk [vmem:[#allocation3 + $0xe0] sm:$0xff] %vm752_vm2, %v617_v45  ;;  %v844_v45 = vld [vmem:[#allocation2 + $0x142] sm:$0xff] }
  0xb9   :  { %782 = vst.msk [vmem:[#allocation3 + $0xe8] sm:$0xff] %vm752_vm2, %v619_v59 }
  0xba   :  { %989 = vrot.lane.b32.xlu0 %v839_v41, %s5058_s17  ;;  %991 = vrot.lane.b32.xlu1 %v840_v54, %s5058_s17  ;;  %v175_v54 = vld [vmem:[#allocation2 + $0x182] sm:$0x1] }
  0xbb   :  { %v621_v17 = vpop.permute.xlu0 %620  ;;  %212 = vst.msk [vmem:[#allocation2 + $0x180] sm:$0x1] %vm195_vm1, %v175_v54  ;;  %v849_v54 = vld [vmem:[#allocation2 + $0x1b2] sm:$0xff] }
  0xbc   :  { %v623_v22 = vpop.permute.xlu1 %622  ;;  %783 = vst.msk [vmem:[#allocation3 + $0xf0] sm:$0xff] %vm752_vm2, %v621_v17 }
  0xbd   :  { %784 = vst.msk [vmem:[#allocation3 + $0xf8] sm:$0xff] %vm752_vm2, %v623_v22 }
  0xbe   :  { %993 = vrot.lane.b32.xlu0 %v841_v1, %s5058_s17  ;;  %995 = vrot.lane.b32.xlu1 %v842_v6, %s5058_s17  ;;  %v845_v1 = vld [vmem:[#allocation2 + $0x152] sm:$0xff]  ;;  %v846_v6 = vld [vmem:[#allocation2 + $0x15a] sm:$0xff] }
  0xbf   :  { %v625_v59 = vpop.permute.xlu0 %624 }
  0xc0   :  { %v627_v41 = vpop.permute.xlu1 %626  ;;  %785 = vst.msk [vmem:[#allocation3 + $0x100] sm:$0xff] %vm752_vm2, %v625_v59 }
  0xc1   :  { %786 = vst.msk [vmem:[#allocation3 + $0x108] sm:$0xff] %vm752_vm2, %v627_v41 }
  0xc2   :  { %997 = vrot.lane.b32.xlu0 %v843_v24, %s5058_s17  ;;  %999 = vrot.lane.b32.xlu1 %v844_v45, %s5058_s17  ;;  %v847_v24 = vld [vmem:[#allocation2 + $0x16a] sm:$0xff]  ;;  %v848_v45 = vld [vmem:[#allocation2 + $0x172] sm:$0xff] }
  0xc3   :  { %v629_v17 = vpop.permute.xlu0 %628 }
  0xc4   :  { %v631_v22 = vpop.permute.xlu1 %630  ;;  %787 = vst.msk [vmem:[#allocation3 + $0x110] sm:$0xff] %vm752_vm2, %v629_v17 }
  0xc5   :  { %788 = vst.msk [vmem:[#allocation3 + $0x118] sm:$0xff] %vm752_vm2, %v631_v22 }
  0xc6   :  { %1001 = vrot.lane.b32.xlu0 %v845_v1, %s5058_s17  ;;  %1003 = vrot.lane.b32.xlu1 %v846_v6, %s5058_s17  ;;  %v851_v1 = vld [vmem:[#allocation2 + $0x1ca] sm:$0xff]  ;;  %v852_v6 = vld [vmem:[#allocation2 + $0x1d2] sm:$0xff] }
  0xc7   :  { %v633_v59 = vpop.permute.xlu0 %632 }
  0xc8   :  { %v635_v41 = vpop.permute.xlu1 %634  ;;  %789 = vst.msk [vmem:[#allocation3 + $0x120] sm:$0xff] %vm752_vm2, %v633_v59 }
  0xc9   :  { %790 = vst.msk [vmem:[#allocation3 + $0x128] sm:$0xff] %vm752_vm2, %v635_v41 }
  0xca   :  { %1005 = vrot.lane.b32.xlu0 %v847_v24, %s5058_s17  ;;  %1007 = vrot.lane.b32.xlu1 %v848_v45, %s5058_s17  ;;  %v853_v24 = vld [vmem:[#allocation2 + $0x1e2] sm:$0xff]  ;;  %v854_v45 = vld [vmem:[#allocation2 + $0x1ea] sm:$0xff] }
  0xcc   :  { %v637_v17 = vpop.permute.xlu0 %636  ;;  %v639_v22 = vpop.permute.xlu1 %638 }
  0xcd   :  { %791 = vst.msk [vmem:[#allocation3 + $0x130] sm:$0xff] %vm752_vm2, %v637_v17  ;;  %792 = vst.msk [vmem:[#allocation3 + $0x138] sm:$0xff] %vm752_vm2, %v639_v22 }
  0xce   :  { %1009 = vrot.lane.b32.xlu0 %v849_v54, %s5058_s17  ;;  %1011 = vrot.lane.b32.xlu1 %v850_v46, %s5058_s17  ;;  %v855_v54 = vld [vmem:[#allocation2 + $0x1fa] sm:$0xff]  ;;  %v856_v46 = vld [vmem:[#allocation2 + $0x202] sm:$0xff] }
  0xd0   :  { %v641_v59 = vpop.permute.xlu0 %640  ;;  %v643_v41 = vpop.permute.xlu1 %642 }
  0xd1   :  { %793 = vst.msk [vmem:[#allocation3 + $0x140] sm:$0xff] %vm752_vm2, %v641_v59  ;;  %794 = vst.msk [vmem:[#allocation3 + $0x148] sm:$0xff] %vm752_vm2, %v643_v41 }
  0xd2   :  { %1013 = vrot.lane.b32.xlu0 %v851_v1, %s5058_s17  ;;  %1015 = vrot.lane.b32.xlu1 %v852_v6, %s5058_s17  ;;  %v857_v1 = vld [vmem:[#allocation2 + $0x212] sm:$0xff]  ;;  %v858_v6 = vld [vmem:[#allocation2 + $0x21a] sm:$0xff] }
  0xd4   :  { %v645_v17 = vpop.permute.xlu0 %644  ;;  %v647_v22 = vpop.permute.xlu1 %646 }
  0xd5   :  { %795 = vst.msk [vmem:[#allocation3 + $0x150] sm:$0xff] %vm752_vm2, %v645_v17  ;;  %796 = vst.msk [vmem:[#allocation3 + $0x158] sm:$0xff] %vm752_vm2, %v647_v22 }
  0xd6   :  { %1017 = vrot.lane.b32.xlu0 %v853_v24, %s5058_s17  ;;  %1019 = vrot.lane.b32.xlu1 %v854_v45, %s5058_s17  ;;  %v859_v24 = vld [vmem:[#allocation2 + $0x22a] sm:$0xff]  ;;  %v860_v45 = vld [vmem:[#allocation2 + $0x232] sm:$0xff] }
  0xd8   :  { %v649_v59 = vpop.permute.xlu0 %648  ;;  %v651_v41 = vpop.permute.xlu1 %650 }
  0xd9   :  { %797 = vst.msk [vmem:[#allocation3 + $0x160] sm:$0xff] %vm752_vm2, %v649_v59  ;;  %798 = vst.msk [vmem:[#allocation3 + $0x168] sm:$0xff] %vm752_vm2, %v651_v41 }
  0xda   :  { %1021 = vrot.lane.b32.xlu0 %v855_v54, %s5058_s17  ;;  %1023 = vrot.lane.b32.xlu1 %v856_v46, %s5058_s17  ;;  %v861_v54 = vld [vmem:[#allocation2 + $0x242] sm:$0xff]  ;;  %v862_v46 = vld [vmem:[#allocation2 + $0x24a] sm:$0xff] }
  0xdc   :  { %v653_v17 = vpop.permute.xlu0 %652  ;;  %v655_v22 = vpop.permute.xlu1 %654 }
  0xdd   :  { %799 = vst.msk [vmem:[#allocation3 + $0x170] sm:$0xff] %vm752_vm2, %v653_v17  ;;  %800 = vst.msk [vmem:[#allocation3 + $0x178] sm:$0xff] %vm752_vm2, %v655_v22 }
  0xde   :  { %1025 = vrot.lane.b32.xlu0 %v857_v1, %s5058_s17  ;;  %1027 = vrot.lane.b32.xlu1 %v858_v6, %s5058_s17  ;;  %v863_v1 = vld [vmem:[#allocation2 + $0x25a] sm:$0xff]  ;;  %v864_v6 = vld [vmem:[#allocation2 + $0x262] sm:$0xff] }
  0xe0   :  { %v657_v59 = vpop.permute.xlu0 %656  ;;  %v659_v41 = vpop.permute.xlu1 %658 }
  0xe1   :  { %801 = vst.msk [vmem:[#allocation3 + $0x180] sm:$0xff] %vm752_vm2, %v657_v59  ;;  %802 = vst.msk [vmem:[#allocation3 + $0x188] sm:$0xff] %vm752_vm2, %v659_v41 }
  0xe2   :  { %1029 = vrot.lane.b32.xlu0 %v859_v24, %s5058_s17  ;;  %1031 = vrot.lane.b32.xlu1 %v860_v45, %s5058_s17  ;;  %v865_v24 = vld [vmem:[#allocation2 + $0x272] sm:$0xff]  ;;  %v866_v45 = vld [vmem:[#allocation2 + $0x27a] sm:$0xff] }
  0xe4   :  { %v661_v17 = vpop.permute.xlu0 %660  ;;  %v663_v22 = vpop.permute.xlu1 %662 }
  0xe5   :  { %803 = vst.msk [vmem:[#allocation3 + $0x190] sm:$0xff] %vm752_vm2, %v661_v17  ;;  %804 = vst.msk [vmem:[#allocation3 + $0x198] sm:$0xff] %vm752_vm2, %v663_v22 }
  0xe6   :  { %1033 = vrot.lane.b32.xlu0 %v861_v54, %s5058_s17  ;;  %1035 = vrot.lane.b32.xlu1 %v862_v46, %s5058_s17  ;;  %v867_v54 = vld [vmem:[#allocation2 + $0x28a] sm:$0xff]  ;;  %v868_v46 = vld [vmem:[#allocation2 + $0x292] sm:$0xff] }
  0xe8   :  { %v665_v59 = vpop.permute.xlu0 %664  ;;  %v667_v41 = vpop.permute.xlu1 %666 }
  0xe9   :  { %805 = vst.msk [vmem:[#allocation3 + $0x1a0] sm:$0xff] %vm752_vm2, %v665_v59  ;;  %806 = vst.msk [vmem:[#allocation3 + $0x1a8] sm:$0xff] %vm752_vm2, %v667_v41 }
  0xea   :  { %1037 = vrot.lane.b32.xlu0 %v863_v1, %s5058_s17  ;;  %1039 = vrot.lane.b32.xlu1 %v864_v6, %s5058_s17  ;;  %v869_v1 = vld [vmem:[#allocation2 + $0x2a2] sm:$0xff]  ;;  %v870_v6 = vld [vmem:[#allocation2 + $0x2aa] sm:$0xff] }
  0xec   :  { %v669_v17 = vpop.permute.xlu0 %668  ;;  %v671_v22 = vpop.permute.xlu1 %670 }
  0xed   :  { %807 = vst.msk [vmem:[#allocation3 + $0x1b0] sm:$0xff] %vm752_vm2, %v669_v17  ;;  %808 = vst.msk [vmem:[#allocation3 + $0x1b8] sm:$0xff] %vm752_vm2, %v671_v22 }
  0xee   :  { %1041 = vrot.lane.b32.xlu0 %v865_v24, %s5058_s17  ;;  %1043 = vrot.lane.b32.xlu1 %v866_v45, %s5058_s17  ;;  %v871_v24 = vld [vmem:[#allocation2 + $0x2ba] sm:$0xff]  ;;  %v872_v45 = vld [vmem:[#allocation2 + $0x2c2] sm:$0xff] }
  0xf0   :  { %v673_v59 = vpop.permute.xlu0 %672  ;;  %v675_v41 = vpop.permute.xlu1 %674 }
  0xf1   :  { %809 = vst.msk [vmem:[#allocation3 + $0x1c0] sm:$0xff] %vm752_vm2, %v673_v59  ;;  %810 = vst.msk [vmem:[#allocation3 + $0x1c8] sm:$0xff] %vm752_vm2, %v675_v41 }
  0xf2   :  { %1045 = vrot.lane.b32.xlu0 %v867_v54, %s5058_s17  ;;  %1047 = vrot.lane.b32.xlu1 %v868_v46, %s5058_s17  ;;  %v82_v54 = vld [vmem:[%s7765_s0 + $0x1f0] sm:$0xff] }
  0xf3   :  { %148 = vst.msk [vmem:[#allocation2 + $0x331] sm:$0xff] %vm85_vm0, %v82_v54  ;;  %v873_v46 = vld [vmem:[#allocation2 + $0x2d2] sm:$0xff] }
  0xf4   :  { %v677_v17 = vpop.permute.xlu0 %676  ;;  %v679_v22 = vpop.permute.xlu1 %678  ;;  %v83_v54 = vld [vmem:[%s7765_s0 + $0x1f8] sm:$0xff]  ;;  %s5059_s0 = smov 12  }
  0xf5   :  { %811 = vst.msk [vmem:[#allocation3 + $0x1d0] sm:$0xff] %vm752_vm2, %v677_v17  ;;  %812 = vst.msk [vmem:[#allocation3 + $0x1d8] sm:$0xff] %vm752_vm2, %v679_v22  ;;  %v875_v22 = vld [vmem:[#allocation2 + $0x2ea] sm:$0xff] }
  0xf6   :  { %1049 = vrot.lane.b32.xlu0 %v869_v1, %s5058_s17  ;;  %1051 = vrot.lane.b32.xlu1 %v870_v6, %s5058_s17  ;;  %v874_v1 = vld [vmem:[#allocation2 + $0x2da] sm:$0xff]  ;;  %149 = vst.msk [vmem:[#allocation2 + $0x339] sm:$0xff] %vm85_vm0, %v83_v54 }
  0xf7   :  { %v1203_v54 = vld [vmem:[#allocation2 + $0x20] sm:$0xff] }
  0xf8   :  { %v681_v59 = vpop.permute.xlu0 %680  ;;  %v683_v41 = vpop.permute.xlu1 %682 }
  0xf9   :  { %813 = vst.msk [vmem:[#allocation3 + $0x1e0] sm:$0xff] %vm752_vm2, %v681_v59  ;;  %814 = vst.msk [vmem:[#allocation3 + $0x1e8] sm:$0xff] %vm752_vm2, %v683_v41  ;;  %v876_v59 = vld [vmem:[#allocation2 + $0x2f2] sm:$0xff] }
  0xfa   :  { %1053 = vrot.lane.b32.xlu0 %v871_v24, %s5058_s17  ;;  %1055 = vrot.lane.b32.xlu1 %v872_v45, %s5058_s17  ;;  %v193_v45 = vld [vmem:[#allocation2 + $0x332] sm:$0x1] }
  0xfb   :  { %230 = vst.msk [vmem:[#allocation2 + $0x330] sm:$0x1] %vm195_vm1, %v193_v45  ;;  %v1202_v45 = vld [vmem:[#allocation2 + $0x18] sm:$0xff] }
  0xfc   :  { %v685_v6 = vpop.permute.xlu0 %684  ;;  %v687_v17 = vpop.permute.xlu1 %686 }
  0xfd   :  { %815 = vst.msk [vmem:[#allocation3 + $0x1f0] sm:$0xff] %vm752_vm2, %v685_v6  ;;  %816 = vst.msk [vmem:[#allocation3 + $0x1f8] sm:$0xff] %vm752_vm2, %v687_v17 }
  0xfe   :  { %1057 = vrot.lane.b32.xlu0 %v873_v46, %s5058_s17  ;;  %1059 = vrot.lane.b32.xlu1 %v874_v1, %s5058_s17  ;;  %v877_v46 = vld [vmem:[#allocation2 + $0x302] sm:$0xff]  ;;  %v878_v1 = vld [vmem:[#allocation2 + $0x30a] sm:$0xff] }
 0x100   :  { %v946_v24 = vpop.permute.xlu0 %945  ;;  %v948_v41 = vpop.permute.xlu1 %947 }
 0x101   :  { %1138 = vst.msk [vmem:[#allocation3] sm:$0xff] %vm1137_vm3, %v946_v24  ;;  %1139 = vst.msk [vmem:[#allocation3 + $0x8] sm:$0xff] %vm1137_vm3, %v948_v41 }
 0x102   :  { %1061 = vrot.lane.b32.xlu0 %v875_v22, %s5058_s17  ;;  %1063 = vrot.lane.b32.xlu1 %v876_v59, %s5058_s17  ;;  %v879_v22 = vld [vmem:[#allocation2 + $0x31a] sm:$0xff]  ;;  %v880_v59 = vld [vmem:[#allocation2 + $0x322] sm:$0xff] }
 0x104   :  { %v950_v6 = vpop.permute.xlu0 %949  ;;  %v952_v17 = vpop.permute.xlu1 %951 }
 0x105   :  { %1140 = vst.msk [vmem:[#allocation3 + $0x10] sm:$0xff] %vm1137_vm3, %v950_v6  ;;  %1141 = vst.msk [vmem:[#allocation3 + $0x18] sm:$0xff] %vm1137_vm3, %v952_v17 }
 0x106   :  { %1065 = vrot.lane.b32.xlu0 %v877_v46, %s5058_s17  ;;  %1067 = vrot.lane.b32.xlu1 %v878_v1, %s5058_s17  ;;  %v1204_v46 = vld [vmem:[#allocation2 + $0x30] sm:$0xff]  ;;  %v1205_v1 = vld [vmem:[#allocation2 + $0x38] sm:$0xff] }
 0x108   :  { %v954_v24 = vpop.permute.xlu0 %953  ;;  %v956_v41 = vpop.permute.xlu1 %955 }
 0x109   :  { %1142 = vst.msk [vmem:[#allocation3 + $0x20] sm:$0xff] %vm1137_vm3, %v954_v24  ;;  %1143 = vst.msk [vmem:[#allocation3 + $0x28] sm:$0xff] %vm1137_vm3, %v956_v41 }
 0x10a   :  { %1069 = vrot.lane.b32.xlu0 %v879_v22, %s5058_s17  ;;  %1071 = vrot.lane.b32.xlu1 %v880_v59, %s5058_s17  ;;  %v1206_v22 = vld [vmem:[#allocation2 + $0x48] sm:$0xff]  ;;  %v1207_v59 = vld [vmem:[#allocation2 + $0x50] sm:$0xff] }
 0x10c   :  { %v958_v6 = vpop.permute.xlu0 %957  ;;  %v960_v17 = vpop.permute.xlu1 %959 }
 0x10d   :  { %1144 = vst.msk [vmem:[#allocation3 + $0x30] sm:$0xff] %vm1137_vm3, %v958_v6  ;;  %1145 = vst.msk [vmem:[#allocation3 + $0x38] sm:$0xff] %vm1137_vm3, %v960_v17 }
 0x10e   :  { %1330 = vrot.lane.b32.xlu0 %v1202_v45, %s5059_s0  ;;  %1332 = vrot.lane.b32.xlu1 %v1203_v54, %s5059_s0 }
 0x110   :  { %v962_v24 = vpop.permute.xlu0 %961  ;;  %v964_v41 = vpop.permute.xlu1 %963 }
 0x111   :  { %1146 = vst.msk [vmem:[#allocation3 + $0x40] sm:$0xff] %vm1137_vm3, %v962_v24  ;;  %1147 = vst.msk [vmem:[#allocation3 + $0x48] sm:$0xff] %vm1137_vm3, %v964_v41 }
 0x112   :  { %1334 = vrot.lane.b32.xlu0 %v1204_v46, %s5059_s0  ;;  %1336 = vrot.lane.b32.xlu1 %v1205_v1, %s5059_s0 }
 0x114   :  { %v966_v6 = vpop.permute.xlu0 %965  ;;  %v968_v17 = vpop.permute.xlu1 %967 }
 0x115   :  { %1148 = vst.msk [vmem:[#allocation3 + $0x50] sm:$0xff] %vm1137_vm3, %v966_v6  ;;  %1149 = vst.msk [vmem:[#allocation3 + $0x58] sm:$0xff] %vm1137_vm3, %v968_v17 }
 0x116   :  { %1338 = vrot.lane.b32.xlu0 %v1206_v22, %s5059_s0  ;;  %1340 = vrot.lane.b32.xlu1 %v1207_v59, %s5059_s0 }
 0x118   :  { %v970_v45 = vpop.permute.xlu0 %969  ;;  %v972_v54 = vpop.permute.xlu1 %971 }
 0x119   :  { %1150 = vst.msk [vmem:[#allocation3 + $0x60] sm:$0xff] %vm1137_vm3, %v970_v45  ;;  %1151 = vst.msk [vmem:[#allocation3 + $0x68] sm:$0xff] %vm1137_vm3, %v972_v54 }
 0x11a   :  { %1342 = vrot.lane.b32.xlu0 %v5389_v38, %s5059_s0  ;;  %1344 = vrot.lane.b32.xlu1 %v5373_v28, %s5059_s0 }
 0x11c   :  { %v974_v46 = vpop.permute.xlu0 %973  ;;  %v976_v1 = vpop.permute.xlu1 %975 }
 0x11d   :  { %1152 = vst.msk [vmem:[#allocation3 + $0x70] sm:$0xff] %vm1137_vm3, %v974_v46  ;;  %1153 = vst.msk [vmem:[#allocation3 + $0x78] sm:$0xff] %vm1137_vm3, %v976_v1 }
 0x11e   :  { %1346 = vrot.lane.b32.xlu0 %v5410_v49, %s5059_s0  ;;  %1348 = vrot.lane.b32.xlu1 %v5381_v34, %s5059_s0 }
 0x120   :  { %v978_v24 = vpop.permute.xlu0 %977  ;;  %v980_v41 = vpop.permute.xlu1 %979 }
 0x121   :  { %1154 = vst.msk [vmem:[#allocation3 + $0x80] sm:$0xff] %vm1137_vm3, %v978_v24  ;;  %1155 = vst.msk [vmem:[#allocation3 + $0x88] sm:$0xff] %vm1137_vm3, %v980_v41 }
 0x122   :  { %1350 = vrot.lane.b32.xlu0 %v5431_v58, %s5059_s0  ;;  %1352 = vrot.lane.b32.xlu1 %v5392_v40, %s5059_s0 }
 0x124   :  { %v982_v28 = vpop.permute.xlu0 %981  ;;  %v984_v38 = vpop.permute.xlu1 %983 }
 0x125   :  { %1156 = vst.msk [vmem:[#allocation3 + $0x90] sm:$0xff] %vm1137_vm3, %v982_v28  ;;  %1157 = vst.msk [vmem:[#allocation3 + $0x98] sm:$0xff] %vm1137_vm3, %v984_v38  ;;  %v1591_v28 = vld [vmem:[#allocation2 + $0x49] sm:$0xff]  ;;  %v1592_v38 = vld [vmem:[#allocation2 + $0x51] sm:$0xff] }
 0x126   :  { %1354 = vrot.lane.b32.xlu0 %v5438_v63, %s5059_s0  ;;  %1356 = vrot.lane.b32.xlu1 %v5401_v44, %s5059_s0 }
 0x128   :  { %v986_v34 = vpop.permute.xlu0 %985  ;;  %v988_v49 = vpop.permute.xlu1 %987 }
 0x129   :  { %1158 = vst.msk [vmem:[#allocation3 + $0xa0] sm:$0xff] %vm1137_vm3, %v986_v34  ;;  %1159 = vst.msk [vmem:[#allocation3 + $0xa8] sm:$0xff] %vm1137_vm3, %v988_v49 }
 0x12a   :  { %1358 = vrot.lane.b32.xlu0 %v5445_v2, %s5059_s0  ;;  %1360 = vrot.lane.b32.xlu1 %v5406_v47, %s5059_s0 }
 0x12c   :  { %v990_v40 = vpop.permute.xlu0 %989  ;;  %v992_v58 = vpop.permute.xlu1 %991 }
 0x12d   :  { %1160 = vst.msk [vmem:[#allocation3 + $0xb0] sm:$0xff] %vm1137_vm3, %v990_v40  ;;  %1161 = vst.msk [vmem:[#allocation3 + $0xb8] sm:$0xff] %vm1137_vm3, %v992_v58  ;;  %v1593_v40 = vld [vmem:[#allocation2 + $0x61] sm:$0xff]  ;;  %v1594_v58 = vld [vmem:[#allocation2 + $0x69] sm:$0xff] }
 0x12e   :  { %1362 = vrot.lane.b32.xlu0 %v5457_v8, %s5059_s0  ;;  %1364 = vrot.lane.b32.xlu1 %v5418_v53, %s5059_s0 }
 0x130   :  { %v994_v44 = vpop.permute.xlu0 %993  ;;  %v996_v63 = vpop.permute.xlu1 %995 }
 0x131   :  { %1162 = vst.msk [vmem:[#allocation3 + $0xc0] sm:$0xff] %vm1137_vm3, %v994_v44  ;;  %1163 = vst.msk [vmem:[#allocation3 + $0xc8] sm:$0xff] %vm1137_vm3, %v996_v63 }
 0x132   :  { %1366 = vrot.lane.b32.xlu0 %v5465_v10, %s5059_s0  ;;  %1368 = vrot.lane.b32.xlu1 %v5423_v56, %s5059_s0 }
 0x134   :  { %v998_v47 = vpop.permute.xlu0 %997  ;;  %v1000_v2 = vpop.permute.xlu1 %999 }
 0x135   :  { %1164 = vst.msk [vmem:[#allocation3 + $0xd0] sm:$0xff] %vm1137_vm3, %v998_v47  ;;  %1165 = vst.msk [vmem:[#allocation3 + $0xd8] sm:$0xff] %vm1137_vm3, %v1000_v2  ;;  %v1595_v47 = vld [vmem:[#allocation2 + $0x79] sm:$0xff]  ;;  %v1596_v2 = vld [vmem:[#allocation2 + $0x81] sm:$0xff] }
 0x136   :  { %1370 = vrot.lane.b32.xlu0 %v5476_v15, %s5059_s0  ;;  %1372 = vrot.lane.b32.xlu1 %v5434_v60, %s5059_s0 }
 0x138   :  { %v1002_v53 = vpop.permute.xlu0 %1001  ;;  %v1004_v8 = vpop.permute.xlu1 %1003 }
 0x139   :  { %1166 = vst.msk [vmem:[#allocation3 + $0xe0] sm:$0xff] %vm1137_vm3, %v1002_v53  ;;  %1167 = vst.msk [vmem:[#allocation3 + $0xe8] sm:$0xff] %vm1137_vm3, %v1004_v8 }
 0x13a   :  { %1374 = vrot.lane.b32.xlu0 %v5486_v20, %s5059_s0  ;;  %1376 = vrot.lane.b32.xlu1 %v5449_v3, %s5059_s0 }
 0x13c   :  { %v1006_v56 = vpop.permute.xlu0 %1005  ;;  %v1008_v10 = vpop.permute.xlu1 %1007 }
 0x13d   :  { %1168 = vst.msk [vmem:[#allocation3 + $0xf0] sm:$0xff] %vm1137_vm3, %v1006_v56  ;;  %1169 = vst.msk [vmem:[#allocation3 + $0xf8] sm:$0xff] %vm1137_vm3, %v1008_v10  ;;  %v1597_v56 = vld [vmem:[#allocation2 + $0x91] sm:$0xff]  ;;  %v1598_v10 = vld [vmem:[#allocation2 + $0x99] sm:$0xff] }
 0x13e   :  { %1378 = vrot.lane.b32.xlu0 %v5496_v25, %s5059_s0  ;;  %1380 = vrot.lane.b32.xlu1 %v5461_v9, %s5059_s0  ;;  %v1232_v9 = vld [vmem:[#allocation2 + $0x180] sm:$0xff]  ;;  %v1233_v25 = vld [vmem:[#allocation2 + $0x188] sm:$0xff] }
 0x140   :  { %v1010_v60 = vpop.permute.xlu0 %1009  ;;  %v1012_v15 = vpop.permute.xlu1 %1011 }
 0x141   :  { %1170 = vst.msk [vmem:[#allocation3 + $0x100] sm:$0xff] %vm1137_vm3, %v1010_v60  ;;  %1171 = vst.msk [vmem:[#allocation3 + $0x108] sm:$0xff] %vm1137_vm3, %v1012_v15 }
 0x142   :  { %1382 = vrot.lane.b32.xlu0 %v5508_v33, %s5059_s0  ;;  %1384 = vrot.lane.b32.xlu1 %v5472_v13, %s5059_s0 }
 0x144   :  { %v1014_v3 = vpop.permute.xlu0 %1013  ;;  %v1016_v20 = vpop.permute.xlu1 %1015 }
 0x145   :  { %1172 = vst.msk [vmem:[#allocation3 + $0x110] sm:$0xff] %vm1137_vm3, %v1014_v3  ;;  %1173 = vst.msk [vmem:[#allocation3 + $0x118] sm:$0xff] %vm1137_vm3, %v1016_v20  ;;  %v1599_v3 = vld [vmem:[#allocation2 + $0xa9] sm:$0xff]  ;;  %v1600_v20 = vld [vmem:[#allocation2 + $0xb1] sm:$0xff] }
 0x146   :  { %1386 = vrot.lane.b32.xlu0 %v5520_v42, %s5059_s0  ;;  %1388 = vrot.lane.b32.xlu1 %v5484_v19, %s5059_s0 }
 0x148   :  { %v1018_v22 = vpop.permute.xlu0 %1017  ;;  %v1020_v59 = vpop.permute.xlu1 %1019 }
 0x149   :  { %1174 = vst.msk [vmem:[#allocation3 + $0x120] sm:$0xff] %vm1137_vm3, %v1018_v22  ;;  %1175 = vst.msk [vmem:[#allocation3 + $0x128] sm:$0xff] %vm1137_vm3, %v1020_v59  ;;  %v1601_v22 = vld [vmem:[#allocation2 + $0xc1] sm:$0xff]  ;;  %v1602_v59 = vld [vmem:[#allocation2 + $0xc9] sm:$0xff] }
 0x14a   :  { %1390 = vrot.lane.b32.xlu0 %v1232_v9, %s5059_s0  ;;  %1392 = vrot.lane.b32.xlu1 %v1233_v25, %s5059_s0 }
 0x14c   :  { %v1022_v13 = vpop.permute.xlu0 %1021  ;;  %v1024_v33 = vpop.permute.xlu1 %1023 }
 0x14d   :  { %1176 = vst.msk [vmem:[#allocation3 + $0x130] sm:$0xff] %vm1137_vm3, %v1022_v13  ;;  %1177 = vst.msk [vmem:[#allocation3 + $0x138] sm:$0xff] %vm1137_vm3, %v1024_v33 }
 0x14e   :  { %1394 = vrot.lane.b32.xlu0 %v5539_v57, %s5059_s0  ;;  %1396 = vrot.lane.b32.xlu1 %v5503_v30, %s5059_s0 }
 0x150   :  { %v1026_v19 = vpop.permute.xlu0 %1025  ;;  %v1028_v42 = vpop.permute.xlu1 %1027 }
 0x151   :  { %1178 = vst.msk [vmem:[#allocation3 + $0x140] sm:$0xff] %vm1137_vm3, %v1026_v19  ;;  %1179 = vst.msk [vmem:[#allocation3 + $0x148] sm:$0xff] %vm1137_vm3, %v1028_v42  ;;  %v1603_v19 = vld [vmem:[#allocation2 + $0xd9] sm:$0xff]  ;;  %v1604_v42 = vld [vmem:[#allocation2 + $0xe1] sm:$0xff] }
 0x152   :  { %1398 = vrot.lane.b32.xlu0 %v5545_v62, %s5059_s0  ;;  %1400 = vrot.lane.b32.xlu1 %v5512_v35, %s5059_s0 }
 0x154   :  { %v1030_v6 = vpop.permute.xlu0 %1029  ;;  %v1032_v17 = vpop.permute.xlu1 %1031 }
 0x155   :  { %1180 = vst.msk [vmem:[#allocation3 + $0x150] sm:$0xff] %vm1137_vm3, %v1030_v6  ;;  %1181 = vst.msk [vmem:[#allocation3 + $0x158] sm:$0xff] %vm1137_vm3, %v1032_v17 }
 0x156   :  { %1402 = vrot.lane.b32.xlu0 %v5557_v5, %s5059_s0  ;;  %1404 = vrot.lane.b32.xlu1 %v5524_v43, %s5059_s0 }
 0x158   :  { %v1034_v30 = vpop.permute.xlu0 %1033  ;;  %v1036_v57 = vpop.permute.xlu1 %1035 }
 0x159   :  { %1182 = vst.msk [vmem:[#allocation3 + $0x160] sm:$0xff] %vm1137_vm3, %v1034_v30  ;;  %1183 = vst.msk [vmem:[#allocation3 + $0x168] sm:$0xff] %vm1137_vm3, %v1036_v57  ;;  %v1605_v30 = vld [vmem:[#allocation2 + $0xf1] sm:$0xff]  ;;  %v1606_v57 = vld [vmem:[#allocation2 + $0xf9] sm:$0xff] }
 0x15a   :  { %1406 = vrot.lane.b32.xlu0 %v5564_v14, %s5059_s0  ;;  %1408 = vrot.lane.b32.xlu1 %v5532_v51, %s5059_s0 }
 0x15c   :  { %v1038_v35 = vpop.permute.xlu0 %1037  ;;  %v1040_v62 = vpop.permute.xlu1 %1039 }
 0x15d   :  { %1184 = vst.msk [vmem:[#allocation3 + $0x170] sm:$0xff] %vm1137_vm3, %v1038_v35  ;;  %1185 = vst.msk [vmem:[#allocation3 + $0x178] sm:$0xff] %vm1137_vm3, %v1040_v62 }
 0x15e   :  { %1410 = vrot.lane.b32.xlu0 %v5575_v18, %s5059_s0  ;;  %1412 = vrot.lane.b32.xlu1 %v5547_v0, %s5059_s0 }
 0x160   :  { %v1042_v43 = vpop.permute.xlu0 %1041  ;;  %v1044_v5 = vpop.permute.xlu1 %1043 }
 0x161   :  { %1186 = vst.msk [vmem:[#allocation3 + $0x180] sm:$0xff] %vm1137_vm3, %v1042_v43  ;;  %1187 = vst.msk [vmem:[#allocation3 + $0x188] sm:$0xff] %vm1137_vm3, %v1044_v5  ;;  %v1607_v43 = vld [vmem:[#allocation2 + $0x109] sm:$0xff]  ;;  %v1608_v5 = vld [vmem:[#allocation2 + $0x111] sm:$0xff] }
 0x162   :  { %1414 = vrot.lane.b32.xlu0 %v5579_v23, %s5059_s0  ;;  %1416 = vrot.lane.b32.xlu1 %v5566_v16, %s5059_s0 }
 0x164   :  { %v1046_v51 = vpop.permute.xlu0 %1045  ;;  %v1048_v14 = vpop.permute.xlu1 %1047 }
 0x165   :  { %1188 = vst.msk [vmem:[#allocation3 + $0x190] sm:$0xff] %vm1137_vm3, %v1046_v51  ;;  %1189 = vst.msk [vmem:[#allocation3 + $0x198] sm:$0xff] %vm1137_vm3, %v1048_v14 }
 0x166   :  { %1418 = vrot.lane.b32.xlu0 %v5587_v27, %s5059_s0  ;;  %1420 = vrot.lane.b32.xlu1 %v5584_v26, %s5059_s0 }
 0x168   :  { %v1050_v0 = vpop.permute.xlu0 %1049  ;;  %v1052_v18 = vpop.permute.xlu1 %1051 }
 0x169   :  { %1190 = vst.msk [vmem:[#allocation3 + $0x1a0] sm:$0xff] %vm1137_vm3, %v1050_v0  ;;  %1191 = vst.msk [vmem:[#allocation3 + $0x1a8] sm:$0xff] %vm1137_vm3, %v1052_v18  ;;  %v1609_v0 = vld [vmem:[#allocation2 + $0x121] sm:$0xff]  ;;  %v1610_v18 = vld [vmem:[#allocation2 + $0x129] sm:$0xff] }
 0x16a   :  { %1422 = vrot.lane.b32.xlu0 %v5595_v36, %s5059_s0  ;;  %1424 = vrot.lane.b32.xlu1 %v5600_v39, %s5059_s0 }
 0x16c   :  { %v1054_v16 = vpop.permute.xlu0 %1053  ;;  %v1056_v23 = vpop.permute.xlu1 %1055 }
 0x16d   :  { %1192 = vst.msk [vmem:[#allocation3 + $0x1b0] sm:$0xff] %vm1137_vm3, %v1054_v16  ;;  %1193 = vst.msk [vmem:[#allocation3 + $0x1b8] sm:$0xff] %vm1137_vm3, %v1056_v23 }
 0x16e   :  { %1426 = vrot.lane.b32.xlu0 %v5607_v48, %s5059_s0  ;;  %1428 = vrot.lane.b32.xlu1 %v5612_v52, %s5059_s0 }
 0x170   :  { %v1058_v26 = vpop.permute.xlu0 %1057  ;;  %v1060_v27 = vpop.permute.xlu1 %1059 }
 0x171   :  { %1194 = vst.msk [vmem:[#allocation3 + $0x1c0] sm:$0xff] %vm1137_vm3, %v1058_v26  ;;  %1195 = vst.msk [vmem:[#allocation3 + $0x1c8] sm:$0xff] %vm1137_vm3, %v1060_v27  ;;  %v1611_v26 = vld [vmem:[#allocation2 + $0x139] sm:$0xff]  ;;  %v1612_v27 = vld [vmem:[#allocation2 + $0x141] sm:$0xff] }
 0x172   :  { %1430 = vrot.lane.b32.xlu0 %v5619_v61, %s5059_s0  ;;  %1432 = vrot.lane.b32.xlu1 %v5624_v4, %s5059_s0 }
 0x174   :  { %v1062_v36 = vpop.permute.xlu0 %1061  ;;  %v1064_v39 = vpop.permute.xlu1 %1063 }
 0x175   :  { %1196 = vst.msk [vmem:[#allocation3 + $0x1d0] sm:$0xff] %vm1137_vm3, %v1062_v36  ;;  %1197 = vst.msk [vmem:[#allocation3 + $0x1d8] sm:$0xff] %vm1137_vm3, %v1064_v39 }
 0x176   :  { %1434 = vrot.lane.b32.xlu0 %v5631_v12, %s5059_s0  ;;  %1436 = vrot.lane.b32.xlu1 %v5636_v21, %s5059_s0 }
 0x178   :  { %v1066_v48 = vpop.permute.xlu0 %1065  ;;  %v1068_v52 = vpop.permute.xlu1 %1067 }
 0x179   :  { %1198 = vst.msk [vmem:[#allocation3 + $0x1e0] sm:$0xff] %vm1137_vm3, %v1066_v48  ;;  %1199 = vst.msk [vmem:[#allocation3 + $0x1e8] sm:$0xff] %vm1137_vm3, %v1068_v52  ;;  %v1613_v48 = vld [vmem:[#allocation2 + $0x151] sm:$0xff]  ;;  %v1614_v52 = vld [vmem:[#allocation2 + $0x159] sm:$0xff] }
 0x17a   :  { %1438 = vrot.lane.b32.xlu0 %v5643_v31, %s5059_s0  ;;  %1440 = vrot.lane.b32.xlu1 %v5648_v37, %s5059_s0 }
 0x17c   :  { %v1070_v61 = vpop.permute.xlu0 %1069  ;;  %v1072_v4 = vpop.permute.xlu1 %1071 }
 0x17d   :  { %1200 = vst.msk [vmem:[#allocation3 + $0x1f0] sm:$0xff] %vm1137_vm3, %v1070_v61  ;;  %1201 = vst.msk [vmem:[#allocation3 + $0x1f8] sm:$0xff] %vm1137_vm3, %v1072_v4 }
 0x17e   :  { %1442 = vrot.lane.b32.xlu0 %v5655_v50, %s5059_s0  ;;  %1444 = vrot.lane.b32.xlu1 %v5660_v55, %s5059_s0  ;;  %v1264_v50 = vld [vmem:[#allocation2 + $0x330] sm:$0xff]  ;;  %v1265_v55 = vld [vmem:[#allocation2 + $0x338] sm:$0xff] }
 0x180   :  { %v1331_v12 = vpop.permute.xlu0 %1330  ;;  %v1333_v21 = vpop.permute.xlu1 %1332 }
 0x181   :  { %1523 = vst.msk [vmem:[#allocation3] sm:$0xff] %vm1522_vm4, %v1331_v12  ;;  %1524 = vst.msk [vmem:[#allocation3 + $0x8] sm:$0xff] %vm1522_vm4, %v1333_v21  ;;  %v248_v12 = vld [vmem:[#allocation2 + $0x18f] sm:$0x1] }
 0x182   :  { %1446 = vrot.lane.b32.xlu0 %v5667_v7, %s5059_s0  ;;  %1448 = vrot.lane.b32.xlu1 %v5672_v11, %s5059_s0  ;;  %v1587_v7 = vld [vmem:[#allocation2 + $0x19] sm:$0xff]  ;;  %v1588_v11 = vld [vmem:[#allocation2 + $0x21] sm:$0xff]  ;;  %v1615_v21 = vld [vmem:[#allocation2 + $0x169] sm:$0xff]  ;;  %284 = vst.msk [vmem:[#allocation2 + $0x191] sm:$0x1] %vm195_vm1, %v248_v12 }
 0x184   :  { %v1335_v31 = vpop.permute.xlu0 %1334  ;;  %v1337_v37 = vpop.permute.xlu1 %1336 }
 0x185   :  { %1525 = vst.msk [vmem:[#allocation3 + $0x10] sm:$0xff] %vm1522_vm4, %v1335_v31  ;;  %1526 = vst.msk [vmem:[#allocation3 + $0x18] sm:$0xff] %vm1522_vm4, %v1337_v37  ;;  %v1616_v31 = vld [vmem:[#allocation2 + $0x171] sm:$0xff] }
 0x186   :  { %1450 = vrot.lane.b32.xlu0 %v5678_v29, %s5059_s0  ;;  %1452 = vrot.lane.b32.xlu1 %v5683_v32, %s5059_s0  ;;  %v1589_v29 = vld [vmem:[#allocation2 + $0x31] sm:$0xff]  ;;  %v1590_v32 = vld [vmem:[#allocation2 + $0x39] sm:$0xff] }
 0x188   :  { %v1339_v45 = vpop.permute.xlu0 %1338  ;;  %v1341_v54 = vpop.permute.xlu1 %1340 }
 0x189   :  { %1527 = vst.msk [vmem:[#allocation3 + $0x20] sm:$0xff] %vm1522_vm4, %v1339_v45  ;;  %1528 = vst.msk [vmem:[#allocation3 + $0x28] sm:$0xff] %vm1522_vm4, %v1341_v54  ;;  %v1618_v45 = vld [vmem:[#allocation2 + $0x189] sm:$0xff] }
 0x18a   :  { %1454 = vrot.lane.b32.xlu0 %v1264_v50, %s5059_s0  ;;  %1456 = vrot.lane.b32.xlu1 %v1265_v55, %s5059_s0  ;;  %v1617_v55 = vld [vmem:[#allocation2 + $0x181] sm:$0xff] }
 0x18c   :  { %v1343_v46 = vpop.permute.xlu0 %1342  ;;  %v1345_v1 = vpop.permute.xlu1 %1344 }
 0x18d   :  { %1529 = vst.msk [vmem:[#allocation3 + $0x30] sm:$0xff] %vm1522_vm4, %v1343_v46  ;;  %1530 = vst.msk [vmem:[#allocation3 + $0x38] sm:$0xff] %vm1522_vm4, %v1345_v1  ;;  %v1620_v46 = vld [vmem:[#allocation2 + $0x1d1] sm:$0xff] }
 0x18e   :  { %1715 = vrot.lane.b32.xlu0 %v1587_v7, %s5060_s25  ;;  %1717 = vrot.lane.b32.xlu1 %v1588_v11, %s5060_s25  ;;  %v1619_v11 = vld [vmem:[#allocation2 + $0x1c9] sm:$0xff] }
 0x190   :  { %v1347_v24 = vpop.permute.xlu0 %1346  ;;  %v1349_v41 = vpop.permute.xlu1 %1348 }
 0x191   :  { %1531 = vst.msk [vmem:[#allocation3 + $0x40] sm:$0xff] %vm1522_vm4, %v1347_v24  ;;  %1532 = vst.msk [vmem:[#allocation3 + $0x48] sm:$0xff] %vm1522_vm4, %v1349_v41  ;;  %v1622_v24 = vld [vmem:[#allocation2 + $0x1e9] sm:$0xff] }
 0x192   :  { %1719 = vrot.lane.b32.xlu0 %v1589_v29, %s5060_s25  ;;  %1721 = vrot.lane.b32.xlu1 %v1590_v32, %s5060_s25  ;;  %v1621_v32 = vld [vmem:[#allocation2 + $0x1e1] sm:$0xff] }
 0x194   :  { %v1351_v34 = vpop.permute.xlu0 %1350  ;;  %v1353_v49 = vpop.permute.xlu1 %1352 }
 0x195   :  { %1533 = vst.msk [vmem:[#allocation3 + $0x50] sm:$0xff] %vm1522_vm4, %v1351_v34  ;;  %1534 = vst.msk [vmem:[#allocation3 + $0x58] sm:$0xff] %vm1522_vm4, %v1353_v49  ;;  %v1624_v34 = vld [vmem:[#allocation2 + $0x201] sm:$0xff] }
 0x196   :  { %1723 = vrot.lane.b32.xlu0 %v1591_v28, %s5060_s25  ;;  %1725 = vrot.lane.b32.xlu1 %v1592_v38, %s5060_s25  ;;  %v1623_v38 = vld [vmem:[#allocation2 + $0x1f9] sm:$0xff] }
 0x198   :  { %v1355_v44 = vpop.permute.xlu0 %1354  ;;  %v1357_v63 = vpop.permute.xlu1 %1356 }
 0x199   :  { %1535 = vst.msk [vmem:[#allocation3 + $0x60] sm:$0xff] %vm1522_vm4, %v1355_v44  ;;  %1536 = vst.msk [vmem:[#allocation3 + $0x68] sm:$0xff] %vm1522_vm4, %v1357_v63  ;;  %v1626_v44 = vld [vmem:[#allocation2 + $0x219] sm:$0xff] }
 0x19a   :  { %1727 = vrot.lane.b32.xlu0 %v1593_v40, %s5060_s25  ;;  %1729 = vrot.lane.b32.xlu1 %v1594_v58, %s5060_s25  ;;  %v1625_v58 = vld [vmem:[#allocation2 + $0x211] sm:$0xff] }
 0x19c   :  { %v1359_v53 = vpop.permute.xlu0 %1358  ;;  %v1361_v8 = vpop.permute.xlu1 %1360 }
 0x19d   :  { %1537 = vst.msk [vmem:[#allocation3 + $0x70] sm:$0xff] %vm1522_vm4, %v1359_v53  ;;  %1538 = vst.msk [vmem:[#allocation3 + $0x78] sm:$0xff] %vm1522_vm4, %v1361_v8  ;;  %v1628_v53 = vld [vmem:[#allocation2 + $0x231] sm:$0xff] }
 0x19e   :  { %1731 = vrot.lane.b32.xlu0 %v1595_v47, %s5060_s25  ;;  %1733 = vrot.lane.b32.xlu1 %v1596_v2, %s5060_s25  ;;  %v1627_v2 = vld [vmem:[#allocation2 + $0x229] sm:$0xff] }
 0x1a0   :  { %v1363_v60 = vpop.permute.xlu0 %1362  ;;  %v1365_v15 = vpop.permute.xlu1 %1364 }
 0x1a1   :  { %1539 = vst.msk [vmem:[#allocation3 + $0x80] sm:$0xff] %vm1522_vm4, %v1363_v60  ;;  %1540 = vst.msk [vmem:[#allocation3 + $0x88] sm:$0xff] %vm1522_vm4, %v1365_v15  ;;  %v1630_v60 = vld [vmem:[#allocation2 + $0x249] sm:$0xff] }
 0x1a2   :  { %1735 = vrot.lane.b32.xlu0 %v1597_v56, %s5060_s25  ;;  %1737 = vrot.lane.b32.xlu1 %v1598_v10, %s5060_s25  ;;  %v1629_v10 = vld [vmem:[#allocation2 + $0x241] sm:$0xff] }
 0x1a4   :  { %v1367_v9 = vpop.permute.xlu0 %1366  ;;  %v1369_v25 = vpop.permute.xlu1 %1368 }
 0x1a5   :  { %1541 = vst.msk [vmem:[#allocation3 + $0x90] sm:$0xff] %vm1522_vm4, %v1367_v9  ;;  %1542 = vst.msk [vmem:[#allocation3 + $0x98] sm:$0xff] %vm1522_vm4, %v1369_v25  ;;  %v1632_v9 = vld [vmem:[#allocation2 + $0x261] sm:$0xff] }
 0x1a6   :  { %1739 = vrot.lane.b32.xlu0 %v1599_v3, %s5060_s25  ;;  %1741 = vrot.lane.b32.xlu1 %v1600_v20, %s5060_s25  ;;  %v1631_v20 = vld [vmem:[#allocation2 + $0x259] sm:$0xff] }
 0x1a8   :  { %v1371_v13 = vpop.permute.xlu0 %1370  ;;  %v1373_v33 = vpop.permute.xlu1 %1372 }
 0x1a9   :  { %1543 = vst.msk [vmem:[#allocation3 + $0xa0] sm:$0xff] %vm1522_vm4, %v1371_v13  ;;  %1544 = vst.msk [vmem:[#allocation3 + $0xa8] sm:$0xff] %vm1522_vm4, %v1373_v33  ;;  %v1634_v13 = vld [vmem:[#allocation2 + $0x279] sm:$0xff] }
 0x1aa   :  { %1743 = vrot.lane.b32.xlu0 %v1601_v22, %s5060_s25  ;;  %1745 = vrot.lane.b32.xlu1 %v1602_v59, %s5060_s25  ;;  %v1633_v59 = vld [vmem:[#allocation2 + $0x271] sm:$0xff] }
 0x1ac   :  { %v1375_v6 = vpop.permute.xlu0 %1374  ;;  %v1377_v17 = vpop.permute.xlu1 %1376 }
 0x1ad   :  { %1545 = vst.msk [vmem:[#allocation3 + $0xb0] sm:$0xff] %vm1522_vm4, %v1375_v6  ;;  %1546 = vst.msk [vmem:[#allocation3 + $0xb8] sm:$0xff] %vm1522_vm4, %v1377_v17  ;;  %v1636_v6 = vld [vmem:[#allocation2 + $0x291] sm:$0xff] }
 0x1ae   :  { %1747 = vrot.lane.b32.xlu0 %v1603_v19, %s5060_s25  ;;  %1749 = vrot.lane.b32.xlu1 %v1604_v42, %s5060_s25  ;;  %v1635_v42 = vld [vmem:[#allocation2 + $0x289] sm:$0xff] }
 0x1b0   :  { %v1379_v35 = vpop.permute.xlu0 %1378  ;;  %v1381_v62 = vpop.permute.xlu1 %1380 }
 0x1b1   :  { %1547 = vst.msk [vmem:[#allocation3 + $0xc0] sm:$0xff] %vm1522_vm4, %v1379_v35  ;;  %1548 = vst.msk [vmem:[#allocation3 + $0xc8] sm:$0xff] %vm1522_vm4, %v1381_v62  ;;  %v1638_v35 = vld [vmem:[#allocation2 + $0x2a9] sm:$0xff] }
 0x1b2   :  { %1751 = vrot.lane.b32.xlu0 %v1605_v30, %s5060_s25  ;;  %1753 = vrot.lane.b32.xlu1 %v1606_v57, %s5060_s25  ;;  %v1637_v57 = vld [vmem:[#allocation2 + $0x2a1] sm:$0xff] }
 0x1b4   :  { %v1383_v51 = vpop.permute.xlu0 %1382  ;;  %v1385_v14 = vpop.permute.xlu1 %1384 }
 0x1b5   :  { %1549 = vst.msk [vmem:[#allocation3 + $0xd0] sm:$0xff] %vm1522_vm4, %v1383_v51  ;;  %1550 = vst.msk [vmem:[#allocation3 + $0xd8] sm:$0xff] %vm1522_vm4, %v1385_v14  ;;  %v1640_v51 = vld [vmem:[#allocation2 + $0x2c1] sm:$0xff] }
 0x1b6   :  { %1755 = vrot.lane.b32.xlu0 %v1607_v43, %s5060_s25  ;;  %1757 = vrot.lane.b32.xlu1 %v1608_v5, %s5060_s25  ;;  %v1639_v5 = vld [vmem:[#allocation2 + $0x2b9] sm:$0xff] }
 0x1b8   :  { %v1387_v16 = vpop.permute.xlu0 %1386  ;;  %v1389_v23 = vpop.permute.xlu1 %1388 }
 0x1b9   :  { %1551 = vst.msk [vmem:[#allocation3 + $0xe0] sm:$0xff] %vm1522_vm4, %v1387_v16  ;;  %1552 = vst.msk [vmem:[#allocation3 + $0xe8] sm:$0xff] %vm1522_vm4, %v1389_v23  ;;  %v1642_v16 = vld [vmem:[#allocation2 + $0x2d9] sm:$0xff] }
 0x1ba   :  { %1759 = vrot.lane.b32.xlu0 %v1609_v0, %s5060_s25  ;;  %1761 = vrot.lane.b32.xlu1 %v1610_v18, %s5060_s25  ;;  %v1641_v18 = vld [vmem:[#allocation2 + $0x2d1] sm:$0xff] }
 0x1bc   :  { %v1391_v36 = vpop.permute.xlu0 %1390  ;;  %v1393_v39 = vpop.permute.xlu1 %1392 }
 0x1bd   :  { %1553 = vst.msk [vmem:[#allocation3 + $0xf0] sm:$0xff] %vm1522_vm4, %v1391_v36  ;;  %1554 = vst.msk [vmem:[#allocation3 + $0xf8] sm:$0xff] %vm1522_vm4, %v1393_v39  ;;  %v1644_v36 = vld [vmem:[#allocation2 + $0x2f1] sm:$0xff] }
 0x1be   :  { %1763 = vrot.lane.b32.xlu0 %v1611_v26, %s5060_s25  ;;  %1765 = vrot.lane.b32.xlu1 %v1612_v27, %s5060_s25  ;;  %v1643_v27 = vld [vmem:[#allocation2 + $0x2e9] sm:$0xff] }
 0x1c0   :  { %v1395_v61 = vpop.permute.xlu0 %1394  ;;  %v1397_v4 = vpop.permute.xlu1 %1396 }
 0x1c1   :  { %1555 = vst.msk [vmem:[#allocation3 + $0x100] sm:$0xff] %vm1522_vm4, %v1395_v61  ;;  %1556 = vst.msk [vmem:[#allocation3 + $0x108] sm:$0xff] %vm1522_vm4, %v1397_v4  ;;  %v1646_v61 = vld [vmem:[#allocation2 + $0x309] sm:$0xff] }
 0x1c2   :  { %1767 = vrot.lane.b32.xlu0 %v1613_v48, %s5060_s25  ;;  %1769 = vrot.lane.b32.xlu1 %v1614_v52, %s5060_s25  ;;  %v1645_v52 = vld [vmem:[#allocation2 + $0x301] sm:$0xff] }
 0x1c4   :  { %v1399_v37 = vpop.permute.xlu0 %1398  ;;  %v1401_v50 = vpop.permute.xlu1 %1400 }
 0x1c5   :  { %1557 = vst.msk [vmem:[#allocation3 + $0x110] sm:$0xff] %vm1522_vm4, %v1399_v37  ;;  %1558 = vst.msk [vmem:[#allocation3 + $0x118] sm:$0xff] %vm1522_vm4, %v1401_v50  ;;  %v1648_v37 = vld [vmem:[#allocation2 + $0x321] sm:$0xff] }
 0x1c6   :  { %1771 = vrot.lane.b32.xlu0 %v1615_v21, %s5060_s25  ;;  %1773 = vrot.lane.b32.xlu1 %v1616_v31, %s5060_s25  ;;  %v266_v21 = vld [vmem:[#allocation2 + $0x33f] sm:$0x1] }
 0x1c7   :  { %v1647_v31 = vld [vmem:[#allocation2 + $0x319] sm:$0xff]  ;;  %302 = vst.msk [vmem:[#allocation2 + $0x341] sm:$0x1] %vm195_vm1, %v266_v21 }
 0x1c8   :  { %v1403_v54 = vpop.permute.xlu0 %1402  ;;  %v1405_v7 = vpop.permute.xlu1 %1404 }
 0x1c9   :  { %1559 = vst.msk [vmem:[#allocation3 + $0x120] sm:$0xff] %vm1522_vm4, %v1403_v54  ;;  %1560 = vst.msk [vmem:[#allocation3 + $0x128] sm:$0xff] %vm1522_vm4, %v1405_v7  ;;  %v1650_v54 = vld [vmem:[#allocation2 + $0x339] sm:$0xff] }
 0x1ca   :  { %1775 = vrot.lane.b32.xlu0 %v1617_v55, %s5060_s25  ;;  %1777 = vrot.lane.b32.xlu1 %v1618_v45, %s5060_s25  ;;  %v1649_v45 = vld [vmem:[#allocation2 + $0x331] sm:$0xff] }
 0x1cc   :  { %v1407_v1 = vpop.permute.xlu0 %1406  ;;  %v1409_v29 = vpop.permute.xlu1 %1408 }
 0x1cd   :  { %1561 = vst.msk [vmem:[#allocation3 + $0x130] sm:$0xff] %vm1522_vm4, %v1407_v1  ;;  %1562 = vst.msk [vmem:[#allocation3 + $0x138] sm:$0xff] %vm1522_vm4, %v1409_v29  ;;  %v1973_v1 = vld [vmem:[#allocation2 + $0x22] sm:$0xff] }
 0x1ce   :  { %1779 = vrot.lane.b32.xlu0 %v1619_v11, %s5060_s25  ;;  %1781 = vrot.lane.b32.xlu1 %v1620_v46, %s5060_s25  ;;  %v1972_v46 = vld [vmem:[#allocation2 + $0x1a] sm:$0xff] }
 0x1d0   :  { %v1411_v41 = vpop.permute.xlu0 %1410  ;;  %v1413_v28 = vpop.permute.xlu1 %1412 }
 0x1d1   :  { %1563 = vst.msk [vmem:[#allocation3 + $0x140] sm:$0xff] %vm1522_vm4, %v1411_v41  ;;  %1564 = vst.msk [vmem:[#allocation3 + $0x148] sm:$0xff] %vm1522_vm4, %v1413_v28  ;;  %v6167_v41 = vld [vmem:[#allocation2 + $0x3a] sm:$0xff] }
 0x1d2   :  { %1783 = vrot.lane.b32.xlu0 %v1621_v32, %s5060_s25  ;;  %1785 = vrot.lane.b32.xlu1 %v1622_v24, %s5060_s25  ;;  %v6165_v24 = vld [vmem:[#allocation2 + $0x32] sm:$0xff] }
 0x1d4   :  { %v1415_v49 = vpop.permute.xlu0 %1414  ;;  %v1417_v40 = vpop.permute.xlu1 %1416 }
 0x1d5   :  { %1565 = vst.msk [vmem:[#allocation3 + $0x150] sm:$0xff] %vm1522_vm4, %v1415_v49  ;;  %1566 = vst.msk [vmem:[#allocation3 + $0x158] sm:$0xff] %vm1522_vm4, %v1417_v40  ;;  %v6177_v49 = vld [vmem:[#allocation2 + $0x52] sm:$0xff] }
 0x1d6   :  { %1787 = vrot.lane.b32.xlu0 %v1623_v38, %s5060_s25  ;;  %1789 = vrot.lane.b32.xlu1 %v1624_v34, %s5060_s25  ;;  %v6175_v34 = vld [vmem:[#allocation2 + $0x4a] sm:$0xff] }
 0x1d8   :  { %v1419_v63 = vpop.permute.xlu0 %1418  ;;  %v1421_v47 = vpop.permute.xlu1 %1420 }
 0x1d9   :  { %1567 = vst.msk [vmem:[#allocation3 + $0x160] sm:$0xff] %vm1522_vm4, %v1419_v63  ;;  %1568 = vst.msk [vmem:[#allocation3 + $0x168] sm:$0xff] %vm1522_vm4, %v1421_v47  ;;  %v6187_v63 = vld [vmem:[#allocation2 + $0x6a] sm:$0xff] }
 0x1da   :  { %1791 = vrot.lane.b32.xlu0 %v1625_v58, %s5060_s25  ;;  %1793 = vrot.lane.b32.xlu1 %v1626_v44, %s5060_s25  ;;  %v6185_v44 = vld [vmem:[#allocation2 + $0x62] sm:$0xff] }
 0x1dc   :  { %v1423_v8 = vpop.permute.xlu0 %1422  ;;  %v1425_v56 = vpop.permute.xlu1 %1424 }
 0x1dd   :  { %1569 = vst.msk [vmem:[#allocation3 + $0x170] sm:$0xff] %vm1522_vm4, %v1423_v8  ;;  %1570 = vst.msk [vmem:[#allocation3 + $0x178] sm:$0xff] %vm1522_vm4, %v1425_v56  ;;  %v6197_v8 = vld [vmem:[#allocation2 + $0x82] sm:$0xff] }
 0x1de   :  { %1795 = vrot.lane.b32.xlu0 %v1627_v2, %s5060_s25  ;;  %1797 = vrot.lane.b32.xlu1 %v1628_v53, %s5060_s25  ;;  %v6195_v53 = vld [vmem:[#allocation2 + $0x7a] sm:$0xff] }
 0x1e0   :  { %v1427_v15 = vpop.permute.xlu0 %1426  ;;  %v1429_v3 = vpop.permute.xlu1 %1428 }
 0x1e1   :  { %1571 = vst.msk [vmem:[#allocation3 + $0x180] sm:$0xff] %vm1522_vm4, %v1427_v15  ;;  %1572 = vst.msk [vmem:[#allocation3 + $0x188] sm:$0xff] %vm1522_vm4, %v1429_v3  ;;  %v6207_v15 = vld [vmem:[#allocation2 + $0x9a] sm:$0xff] }
 0x1e2   :  { %1799 = vrot.lane.b32.xlu0 %v1629_v10, %s5060_s25  ;;  %1801 = vrot.lane.b32.xlu1 %v1630_v60, %s5060_s25  ;;  %v6205_v60 = vld [vmem:[#allocation2 + $0x92] sm:$0xff] }
 0x1e4   :  { %v1431_v25 = vpop.permute.xlu0 %1430  ;;  %v1433_v22 = vpop.permute.xlu1 %1432 }
 0x1e5   :  { %1573 = vst.msk [vmem:[#allocation3 + $0x190] sm:$0xff] %vm1522_vm4, %v1431_v25  ;;  %1574 = vst.msk [vmem:[#allocation3 + $0x198] sm:$0xff] %vm1522_vm4, %v1433_v22  ;;  %v6217_v25 = vld [vmem:[#allocation2 + $0xb2] sm:$0xff] }
 0x1e6   :  { %1803 = vrot.lane.b32.xlu0 %v1631_v20, %s5060_s25  ;;  %1805 = vrot.lane.b32.xlu1 %v1632_v9, %s5060_s25  ;;  %v6215_v9 = vld [vmem:[#allocation2 + $0xaa] sm:$0xff] }
 0x1e8   :  { %v1435_v33 = vpop.permute.xlu0 %1434  ;;  %v1437_v19 = vpop.permute.xlu1 %1436 }
 0x1e9   :  { %1575 = vst.msk [vmem:[#allocation3 + $0x1a0] sm:$0xff] %vm1522_vm4, %v1435_v33  ;;  %1576 = vst.msk [vmem:[#allocation3 + $0x1a8] sm:$0xff] %vm1522_vm4, %v1437_v19  ;;  %v6227_v33 = vld [vmem:[#allocation2 + $0xca] sm:$0xff] }
 0x1ea   :  { %1807 = vrot.lane.b32.xlu0 %v1633_v59, %s5060_s25  ;;  %1809 = vrot.lane.b32.xlu1 %v1634_v13, %s5060_s25  ;;  %v6225_v13 = vld [vmem:[#allocation2 + $0xc2] sm:$0xff] }
 0x1ec   :  { %v1439_v17 = vpop.permute.xlu0 %1438  ;;  %v1441_v30 = vpop.permute.xlu1 %1440 }
 0x1ed   :  { %1577 = vst.msk [vmem:[#allocation3 + $0x1b0] sm:$0xff] %vm1522_vm4, %v1439_v17  ;;  %1578 = vst.msk [vmem:[#allocation3 + $0x1b8] sm:$0xff] %vm1522_vm4, %v1441_v30  ;;  %v6237_v17 = vld [vmem:[#allocation2 + $0xe2] sm:$0xff] }
 0x1ee   :  { %1811 = vrot.lane.b32.xlu0 %v1635_v42, %s5060_s25  ;;  %1813 = vrot.lane.b32.xlu1 %v1636_v6, %s5060_s25  ;;  %v6235_v6 = vld [vmem:[#allocation2 + $0xda] sm:$0xff] }
 0x1f0   :  { %v1443_v62 = vpop.permute.xlu0 %1442  ;;  %v1445_v43 = vpop.permute.xlu1 %1444 }
 0x1f1   :  { %1579 = vst.msk [vmem:[#allocation3 + $0x1c0] sm:$0xff] %vm1522_vm4, %v1443_v62  ;;  %1580 = vst.msk [vmem:[#allocation3 + $0x1c8] sm:$0xff] %vm1522_vm4, %v1445_v43  ;;  %v6247_v62 = vld [vmem:[#allocation2 + $0xfa] sm:$0xff] }
 0x1f2   :  { %1815 = vrot.lane.b32.xlu0 %v1637_v57, %s5060_s25  ;;  %1817 = vrot.lane.b32.xlu1 %v1638_v35, %s5060_s25  ;;  %v6245_v35 = vld [vmem:[#allocation2 + $0xf2] sm:$0xff] }
 0x1f4   :  { %v1447_v14 = vpop.permute.xlu0 %1446  ;;  %v1449_v0 = vpop.permute.xlu1 %1448 }
 0x1f5   :  { %1581 = vst.msk [vmem:[#allocation3 + $0x1d0] sm:$0xff] %vm1522_vm4, %v1447_v14  ;;  %1582 = vst.msk [vmem:[#allocation3 + $0x1d8] sm:$0xff] %vm1522_vm4, %v1449_v0  ;;  %v6257_v14 = vld [vmem:[#allocation2 + $0x112] sm:$0xff] }
 0x1f6   :  { %1819 = vrot.lane.b32.xlu0 %v1639_v5, %s5060_s25  ;;  %1821 = vrot.lane.b32.xlu1 %v1640_v51, %s5060_s25  ;;  %v6255_v51 = vld [vmem:[#allocation2 + $0x10a] sm:$0xff] }
 0x1f8   :  { %v1451_v23 = vpop.permute.xlu0 %1450  ;;  %v1453_v26 = vpop.permute.xlu1 %1452 }
 0x1f9   :  { %1583 = vst.msk [vmem:[#allocation3 + $0x1e0] sm:$0xff] %vm1522_vm4, %v1451_v23  ;;  %1584 = vst.msk [vmem:[#allocation3 + $0x1e8] sm:$0xff] %vm1522_vm4, %v1453_v26  ;;  %v6267_v23 = vld [vmem:[#allocation2 + $0x12a] sm:$0xff] }
 0x1fa   :  { %1823 = vrot.lane.b32.xlu0 %v1641_v18, %s5060_s25  ;;  %1825 = vrot.lane.b32.xlu1 %v1642_v16, %s5060_s25  ;;  %v6265_v16 = vld [vmem:[#allocation2 + $0x122] sm:$0xff] }
 0x1fc   :  { %v1455_v39 = vpop.permute.xlu0 %1454  ;;  %v1457_v48 = vpop.permute.xlu1 %1456 }
 0x1fd   :  { %1585 = vst.msk [vmem:[#allocation3 + $0x1f0] sm:$0xff] %vm1522_vm4, %v1455_v39  ;;  %1586 = vst.msk [vmem:[#allocation3 + $0x1f8] sm:$0xff] %vm1522_vm4, %v1457_v48  ;;  %v6277_v39 = vld [vmem:[#allocation2 + $0x142] sm:$0xff] }
 0x1fe   :  { %1827 = vrot.lane.b32.xlu0 %v1643_v27, %s5060_s25  ;;  %1829 = vrot.lane.b32.xlu1 %v1644_v36, %s5060_s25  ;;  %v6275_v36 = vld [vmem:[#allocation2 + $0x13a] sm:$0xff] }
 0x200   :  { %v1716_v4 = vpop.permute.xlu0 %1715  ;;  %v1718_v12 = vpop.permute.xlu1 %1717 }
 0x201   :  { %1908 = vst.msk [vmem:[#allocation3] sm:$0xff] %vm1907_vm5, %v1716_v4  ;;  %1909 = vst.msk [vmem:[#allocation3 + $0x8] sm:$0xff] %vm1907_vm5, %v1718_v12  ;;  %v6287_v4 = vld [vmem:[#allocation2 + $0x15a] sm:$0xff] }
 0x202   :  { %1831 = vrot.lane.b32.xlu0 %v1645_v52, %s5060_s25  ;;  %1833 = vrot.lane.b32.xlu1 %v1646_v61, %s5060_s25  ;;  %v6285_v61 = vld [vmem:[#allocation2 + $0x152] sm:$0xff] }
 0x204   :  { %v1720_v50 = vpop.permute.xlu0 %1719  ;;  %v1722_v55 = vpop.permute.xlu1 %1721 }
 0x205   :  { %1910 = vst.msk [vmem:[#allocation3 + $0x10] sm:$0xff] %vm1907_vm5, %v1720_v50  ;;  %1911 = vst.msk [vmem:[#allocation3 + $0x18] sm:$0xff] %vm1907_vm5, %v1722_v55 }
 0x206   :  { %1835 = vrot.lane.b32.xlu0 %v1647_v31, %s5060_s25  ;;  %1837 = vrot.lane.b32.xlu1 %v1648_v37, %s5060_s25  ;;  %v6295_v31 = vld [vmem:[#allocation2 + $0x16a] sm:$0xff]  ;;  %v6297_v37 = vld [vmem:[#allocation2 + $0x172] sm:$0xff] }
 0x208   :  { %v1724_v7 = vpop.permute.xlu0 %1723  ;;  %v1726_v11 = vpop.permute.xlu1 %1725 }
 0x209   :  { %1912 = vst.msk [vmem:[#allocation3 + $0x20] sm:$0xff] %vm1907_vm5, %v1724_v7  ;;  %1913 = vst.msk [vmem:[#allocation3 + $0x28] sm:$0xff] %vm1907_vm5, %v1726_v11 }
 0x20a   :  { %1839 = vrot.lane.b32.xlu0 %v1649_v45, %s5060_s25  ;;  %1841 = vrot.lane.b32.xlu1 %v1650_v54, %s5060_s25  ;;  %v2002_v45 = vld [vmem:[#allocation2 + $0x182] sm:$0xff]  ;;  %v2003_v54 = vld [vmem:[#allocation2 + $0x18a] sm:$0xff] }
 0x20c   :  { %v1728_v29 = vpop.permute.xlu0 %1727  ;;  %v1730_v32 = vpop.permute.xlu1 %1729 }
 0x20d   :  { %1914 = vst.msk [vmem:[#allocation3 + $0x30] sm:$0xff] %vm1907_vm5, %v1728_v29  ;;  %1915 = vst.msk [vmem:[#allocation3 + $0x38] sm:$0xff] %vm1907_vm5, %v1730_v32 }
 0x20e   :  { %2100 = vrot.lane.b32.xlu0 %v1972_v46, %s5061_s26  ;;  %2102 = vrot.lane.b32.xlu1 %v1973_v1, %s5061_s26  ;;  %v2004_v46 = vld [vmem:[#allocation2 + $0x1ca] sm:$0xff]  ;;  %v2005_v1 = vld [vmem:[#allocation2 + $0x1d2] sm:$0xff] }
 0x210   :  { %v1732_v28 = vpop.permute.xlu0 %1731  ;;  %v1734_v38 = vpop.permute.xlu1 %1733 }
 0x211   :  { %1916 = vst.msk [vmem:[#allocation3 + $0x40] sm:$0xff] %vm1907_vm5, %v1732_v28  ;;  %1917 = vst.msk [vmem:[#allocation3 + $0x48] sm:$0xff] %vm1907_vm5, %v1734_v38  ;;  %v2006_v28 = vld [vmem:[#allocation2 + $0x1e2] sm:$0xff]  ;;  %v2007_v38 = vld [vmem:[#allocation2 + $0x1ea] sm:$0xff] }
 0x212   :  { %2104 = vrot.lane.b32.xlu0 %v6165_v24, %s5061_s26  ;;  %2106 = vrot.lane.b32.xlu1 %v6167_v41, %s5061_s26 }
 0x214   :  { %v1736_v40 = vpop.permute.xlu0 %1735  ;;  %v1738_v58 = vpop.permute.xlu1 %1737 }
 0x215   :  { %1918 = vst.msk [vmem:[#allocation3 + $0x50] sm:$0xff] %vm1907_vm5, %v1736_v40  ;;  %1919 = vst.msk [vmem:[#allocation3 + $0x58] sm:$0xff] %vm1907_vm5, %v1738_v58 }
 0x216   :  { %2108 = vrot.lane.b32.xlu0 %v6175_v34, %s5061_s26  ;;  %2110 = vrot.lane.b32.xlu1 %v6177_v49, %s5061_s26 }
 0x218   :  { %v1740_v47 = vpop.permute.xlu0 %1739  ;;  %v1742_v2 = vpop.permute.xlu1 %1741 }
 0x219   :  { %1920 = vst.msk [vmem:[#allocation3 + $0x60] sm:$0xff] %vm1907_vm5, %v1740_v47  ;;  %1921 = vst.msk [vmem:[#allocation3 + $0x68] sm:$0xff] %vm1907_vm5, %v1742_v2  ;;  %v2008_v47 = vld [vmem:[#allocation2 + $0x1fa] sm:$0xff]  ;;  %v2009_v2 = vld [vmem:[#allocation2 + $0x202] sm:$0xff] }
 0x21a   :  { %2112 = vrot.lane.b32.xlu0 %v6185_v44, %s5061_s26  ;;  %2114 = vrot.lane.b32.xlu1 %v6187_v63, %s5061_s26 }
 0x21c   :  { %v1744_v56 = vpop.permute.xlu0 %1743  ;;  %v1746_v10 = vpop.permute.xlu1 %1745 }
 0x21d   :  { %1922 = vst.msk [vmem:[#allocation3 + $0x70] sm:$0xff] %vm1907_vm5, %v1744_v56  ;;  %1923 = vst.msk [vmem:[#allocation3 + $0x78] sm:$0xff] %vm1907_vm5, %v1746_v10 }
 0x21e   :  { %2116 = vrot.lane.b32.xlu0 %v6195_v53, %s5061_s26  ;;  %2118 = vrot.lane.b32.xlu1 %v6197_v8, %s5061_s26 }
 0x220   :  { %v1748_v3 = vpop.permute.xlu0 %1747  ;;  %v1750_v20 = vpop.permute.xlu1 %1749 }
 0x221   :  { %1924 = vst.msk [vmem:[#allocation3 + $0x80] sm:$0xff] %vm1907_vm5, %v1748_v3  ;;  %1925 = vst.msk [vmem:[#allocation3 + $0x88] sm:$0xff] %vm1907_vm5, %v1750_v20  ;;  %v2010_v3 = vld [vmem:[#allocation2 + $0x212] sm:$0xff]  ;;  %v2011_v20 = vld [vmem:[#allocation2 + $0x21a] sm:$0xff] }
 0x222   :  { %2120 = vrot.lane.b32.xlu0 %v6205_v60, %s5061_s26  ;;  %2122 = vrot.lane.b32.xlu1 %v6207_v15, %s5061_s26 }
 0x224   :  { %v1752_v22 = vpop.permute.xlu0 %1751  ;;  %v1754_v59 = vpop.permute.xlu1 %1753 }
 0x225   :  { %1926 = vst.msk [vmem:[#allocation3 + $0x90] sm:$0xff] %vm1907_vm5, %v1752_v22  ;;  %1927 = vst.msk [vmem:[#allocation3 + $0x98] sm:$0xff] %vm1907_vm5, %v1754_v59 }
 0x226   :  { %2124 = vrot.lane.b32.xlu0 %v6215_v9, %s5061_s26  ;;  %2126 = vrot.lane.b32.xlu1 %v6217_v25, %s5061_s26 }
 0x228   :  { %v1756_v19 = vpop.permute.xlu0 %1755  ;;  %v1758_v42 = vpop.permute.xlu1 %1757 }
 0x229   :  { %1928 = vst.msk [vmem:[#allocation3 + $0xa0] sm:$0xff] %vm1907_vm5, %v1756_v19  ;;  %1929 = vst.msk [vmem:[#allocation3 + $0xa8] sm:$0xff] %vm1907_vm5, %v1758_v42  ;;  %v2012_v19 = vld [vmem:[#allocation2 + $0x22a] sm:$0xff]  ;;  %v2013_v42 = vld [vmem:[#allocation2 + $0x232] sm:$0xff] }
 0x22a   :  { %2128 = vrot.lane.b32.xlu0 %v6225_v13, %s5061_s26  ;;  %2130 = vrot.lane.b32.xlu1 %v6227_v33, %s5061_s26 }
 0x22c   :  { %v1760_v30 = vpop.permute.xlu0 %1759  ;;  %v1762_v57 = vpop.permute.xlu1 %1761 }
 0x22d   :  { %1930 = vst.msk [vmem:[#allocation3 + $0xb0] sm:$0xff] %vm1907_vm5, %v1760_v30  ;;  %1931 = vst.msk [vmem:[#allocation3 + $0xb8] sm:$0xff] %vm1907_vm5, %v1762_v57 }
 0x22e   :  { %2132 = vrot.lane.b32.xlu0 %v6235_v6, %s5061_s26  ;;  %2134 = vrot.lane.b32.xlu1 %v6237_v17, %s5061_s26 }
 0x230   :  { %v1764_v43 = vpop.permute.xlu0 %1763  ;;  %v1766_v5 = vpop.permute.xlu1 %1765 }
 0x231   :  { %1932 = vst.msk [vmem:[#allocation3 + $0xc0] sm:$0xff] %vm1907_vm5, %v1764_v43  ;;  %1933 = vst.msk [vmem:[#allocation3 + $0xc8] sm:$0xff] %vm1907_vm5, %v1766_v5  ;;  %v2014_v43 = vld [vmem:[#allocation2 + $0x242] sm:$0xff]  ;;  %v2015_v5 = vld [vmem:[#allocation2 + $0x24a] sm:$0xff] }
 0x232   :  { %2136 = vrot.lane.b32.xlu0 %v6245_v35, %s5061_s26  ;;  %2138 = vrot.lane.b32.xlu1 %v6247_v62, %s5061_s26 }
 0x234   :  { %v1768_v0 = vpop.permute.xlu0 %1767  ;;  %v1770_v18 = vpop.permute.xlu1 %1769 }
 0x235   :  { %1934 = vst.msk [vmem:[#allocation3 + $0xd0] sm:$0xff] %vm1907_vm5, %v1768_v0  ;;  %1935 = vst.msk [vmem:[#allocation3 + $0xd8] sm:$0xff] %vm1907_vm5, %v1770_v18 }
 0x236   :  { %2140 = vrot.lane.b32.xlu0 %v6255_v51, %s5061_s26  ;;  %2142 = vrot.lane.b32.xlu1 %v6257_v14, %s5061_s26 }
 0x238   :  { %v1772_v26 = vpop.permute.xlu0 %1771  ;;  %v1774_v27 = vpop.permute.xlu1 %1773 }
 0x239   :  { %1936 = vst.msk [vmem:[#allocation3 + $0xe0] sm:$0xff] %vm1907_vm5, %v1772_v26  ;;  %1937 = vst.msk [vmem:[#allocation3 + $0xe8] sm:$0xff] %vm1907_vm5, %v1774_v27  ;;  %v2016_v26 = vld [vmem:[#allocation2 + $0x25a] sm:$0xff]  ;;  %v2017_v27 = vld [vmem:[#allocation2 + $0x262] sm:$0xff] }
 0x23a   :  { %2144 = vrot.lane.b32.xlu0 %v6265_v16, %s5061_s26  ;;  %2146 = vrot.lane.b32.xlu1 %v6267_v23, %s5061_s26 }
 0x23c   :  { %v1776_v48 = vpop.permute.xlu0 %1775  ;;  %v1778_v52 = vpop.permute.xlu1 %1777 }
 0x23d   :  { %1938 = vst.msk [vmem:[#allocation3 + $0xf0] sm:$0xff] %vm1907_vm5, %v1776_v48  ;;  %1939 = vst.msk [vmem:[#allocation3 + $0xf8] sm:$0xff] %vm1907_vm5, %v1778_v52 }
 0x23e   :  { %2148 = vrot.lane.b32.xlu0 %v6275_v36, %s5061_s26  ;;  %2150 = vrot.lane.b32.xlu1 %v6277_v39, %s5061_s26 }
 0x240   :  { %v1780_v12 = vpop.permute.xlu0 %1779  ;;  %v1782_v21 = vpop.permute.xlu1 %1781 }
 0x241   :  { %1940 = vst.msk [vmem:[#allocation3 + $0x100] sm:$0xff] %vm1907_vm5, %v1780_v12  ;;  %1941 = vst.msk [vmem:[#allocation3 + $0x108] sm:$0xff] %vm1907_vm5, %v1782_v21  ;;  %v2018_v12 = vld [vmem:[#allocation2 + $0x272] sm:$0xff]  ;;  %v2019_v21 = vld [vmem:[#allocation2 + $0x27a] sm:$0xff] }
 0x242   :  { %2152 = vrot.lane.b32.xlu0 %v6285_v61, %s5061_s26  ;;  %2154 = vrot.lane.b32.xlu1 %v6287_v4, %s5061_s26 }
 0x244   :  { %v1784_v50 = vpop.permute.xlu0 %1783  ;;  %v1786_v55 = vpop.permute.xlu1 %1785 }
 0x245   :  { %1942 = vst.msk [vmem:[#allocation3 + $0x110] sm:$0xff] %vm1907_vm5, %v1784_v50  ;;  %1943 = vst.msk [vmem:[#allocation3 + $0x118] sm:$0xff] %vm1907_vm5, %v1786_v55 }
 0x246   :  { %2156 = vrot.lane.b32.xlu0 %v6295_v31, %s5061_s26  ;;  %2158 = vrot.lane.b32.xlu1 %v6297_v37, %s5061_s26 }
 0x248   :  { %v1788_v7 = vpop.permute.xlu0 %1787  ;;  %v1790_v11 = vpop.permute.xlu1 %1789 }
 0x249   :  { %1944 = vst.msk [vmem:[#allocation3 + $0x120] sm:$0xff] %vm1907_vm5, %v1788_v7  ;;  %1945 = vst.msk [vmem:[#allocation3 + $0x128] sm:$0xff] %vm1907_vm5, %v1790_v11 }
 0x24a   :  { %2160 = vrot.lane.b32.xlu0 %v2002_v45, %s5061_s26  ;;  %2162 = vrot.lane.b32.xlu1 %v2003_v54, %s5061_s26  ;;  %v2020_v45 = vld [vmem:[#allocation2 + $0x28a] sm:$0xff]  ;;  %v2021_v54 = vld [vmem:[#allocation2 + $0x292] sm:$0xff] }
 0x24c   :  { %v1792_v29 = vpop.permute.xlu0 %1791  ;;  %v1794_v32 = vpop.permute.xlu1 %1793 }
 0x24d   :  { %1946 = vst.msk [vmem:[#allocation3 + $0x130] sm:$0xff] %vm1907_vm5, %v1792_v29  ;;  %1947 = vst.msk [vmem:[#allocation3 + $0x138] sm:$0xff] %vm1907_vm5, %v1794_v32 }
 0x24e   :  { %2164 = vrot.lane.b32.xlu0 %v2004_v46, %s5061_s26  ;;  %2166 = vrot.lane.b32.xlu1 %v2005_v1, %s5061_s26  ;;  %v2022_v46 = vld [vmem:[#allocation2 + $0x2a2] sm:$0xff]  ;;  %v2023_v1 = vld [vmem:[#allocation2 + $0x2aa] sm:$0xff] }
 0x250   :  { %v1796_v40 = vpop.permute.xlu0 %1795  ;;  %v1798_v58 = vpop.permute.xlu1 %1797 }
 0x251   :  { %1948 = vst.msk [vmem:[#allocation3 + $0x140] sm:$0xff] %vm1907_vm5, %v1796_v40  ;;  %1949 = vst.msk [vmem:[#allocation3 + $0x148] sm:$0xff] %vm1907_vm5, %v1798_v58 }
 0x252   :  { %2168 = vrot.lane.b32.xlu0 %v2006_v28, %s5061_s26  ;;  %2170 = vrot.lane.b32.xlu1 %v2007_v38, %s5061_s26  ;;  %v2024_v28 = vld [vmem:[#allocation2 + $0x2ba] sm:$0xff]  ;;  %v2025_v38 = vld [vmem:[#allocation2 + $0x2c2] sm:$0xff] }
 0x254   :  { %v1800_v56 = vpop.permute.xlu0 %1799  ;;  %v1802_v10 = vpop.permute.xlu1 %1801 }
 0x255   :  { %1950 = vst.msk [vmem:[#allocation3 + $0x150] sm:$0xff] %vm1907_vm5, %v1800_v56  ;;  %1951 = vst.msk [vmem:[#allocation3 + $0x158] sm:$0xff] %vm1907_vm5, %v1802_v10 }
 0x256   :  { %2172 = vrot.lane.b32.xlu0 %v2008_v47, %s5061_s26  ;;  %2174 = vrot.lane.b32.xlu1 %v2009_v2, %s5061_s26  ;;  %v2026_v47 = vld [vmem:[#allocation2 + $0x2d2] sm:$0xff]  ;;  %v2027_v2 = vld [vmem:[#allocation2 + $0x2da] sm:$0xff] }
 0x258   :  { %v1804_v22 = vpop.permute.xlu0 %1803  ;;  %v1806_v59 = vpop.permute.xlu1 %1805 }
 0x259   :  { %1952 = vst.msk [vmem:[#allocation3 + $0x160] sm:$0xff] %vm1907_vm5, %v1804_v22  ;;  %1953 = vst.msk [vmem:[#allocation3 + $0x168] sm:$0xff] %vm1907_vm5, %v1806_v59 }
 0x25a   :  { %2176 = vrot.lane.b32.xlu0 %v2010_v3, %s5061_s26  ;;  %2178 = vrot.lane.b32.xlu1 %v2011_v20, %s5061_s26  ;;  %v2028_v3 = vld [vmem:[#allocation2 + $0x2ea] sm:$0xff]  ;;  %v2029_v20 = vld [vmem:[#allocation2 + $0x2f2] sm:$0xff] }
 0x25c   :  { %v1808_v30 = vpop.permute.xlu0 %1807  ;;  %v1810_v57 = vpop.permute.xlu1 %1809 }
 0x25d   :  { %1954 = vst.msk [vmem:[#allocation3 + $0x170] sm:$0xff] %vm1907_vm5, %v1808_v30  ;;  %1955 = vst.msk [vmem:[#allocation3 + $0x178] sm:$0xff] %vm1907_vm5, %v1810_v57 }
 0x25e   :  { %2180 = vrot.lane.b32.xlu0 %v2012_v19, %s5061_s26  ;;  %2182 = vrot.lane.b32.xlu1 %v2013_v42, %s5061_s26  ;;  %v2030_v19 = vld [vmem:[#allocation2 + $0x302] sm:$0xff]  ;;  %v2031_v42 = vld [vmem:[#allocation2 + $0x30a] sm:$0xff] }
 0x260   :  { %v1812_v0 = vpop.permute.xlu0 %1811  ;;  %v1814_v18 = vpop.permute.xlu1 %1813 }
 0x261   :  { %1956 = vst.msk [vmem:[#allocation3 + $0x180] sm:$0xff] %vm1907_vm5, %v1812_v0  ;;  %1957 = vst.msk [vmem:[#allocation3 + $0x188] sm:$0xff] %vm1907_vm5, %v1814_v18 }
 0x262   :  { %2184 = vrot.lane.b32.xlu0 %v2014_v43, %s5061_s26  ;;  %2186 = vrot.lane.b32.xlu1 %v2015_v5, %s5061_s26  ;;  %v2032_v43 = vld [vmem:[#allocation2 + $0x31a] sm:$0xff]  ;;  %v2033_v5 = vld [vmem:[#allocation2 + $0x322] sm:$0xff] }
 0x264   :  { %v1816_v48 = vpop.permute.xlu0 %1815  ;;  %v1818_v52 = vpop.permute.xlu1 %1817 }
 0x265   :  { %1958 = vst.msk [vmem:[#allocation3 + $0x190] sm:$0xff] %vm1907_vm5, %v1816_v48  ;;  %1959 = vst.msk [vmem:[#allocation3 + $0x198] sm:$0xff] %vm1907_vm5, %v1818_v52 }
 0x266   :  { %2188 = vrot.lane.b32.xlu0 %v2016_v26, %s5061_s26  ;;  %2190 = vrot.lane.b32.xlu1 %v2017_v27, %s5061_s26  ;;  %v2034_v26 = vld [vmem:[#allocation2 + $0x332] sm:$0xff]  ;;  %v2035_v27 = vld [vmem:[#allocation2 + $0x33a] sm:$0xff] }
 0x268   :  { %v1820_v50 = vpop.permute.xlu0 %1819  ;;  %v1822_v55 = vpop.permute.xlu1 %1821 }
 0x269   :  { %1960 = vst.msk [vmem:[#allocation3 + $0x1a0] sm:$0xff] %vm1907_vm5, %v1820_v50  ;;  %1961 = vst.msk [vmem:[#allocation3 + $0x1a8] sm:$0xff] %vm1907_vm5, %v1822_v55 }
 0x26a   :  { %2192 = vrot.lane.b32.xlu0 %v2018_v12, %s5061_s26  ;;  %2194 = vrot.lane.b32.xlu1 %v2019_v21, %s5061_s26  ;;  %v2358_v12 = vld [vmem:[#allocation2 + $0x30] sm:$0xff]  ;;  %v2359_v21 = vld [vmem:[#allocation2 + $0x38] sm:$0xff] }
 0x26c   :  { %v1824_v7 = vpop.permute.xlu0 %1823  ;;  %v1826_v11 = vpop.permute.xlu1 %1825 }
 0x26d   :  { %1962 = vst.msk [vmem:[#allocation3 + $0x1b0] sm:$0xff] %vm1907_vm5, %v1824_v7  ;;  %1963 = vst.msk [vmem:[#allocation3 + $0x1b8] sm:$0xff] %vm1907_vm5, %v1826_v11 }
 0x26e   :  { %2196 = vrot.lane.b32.xlu0 %v2020_v45, %s5061_s26  ;;  %2198 = vrot.lane.b32.xlu1 %v2021_v54, %s5061_s26  ;;  %v2360_v45 = vld [vmem:[#allocation2 + $0x48] sm:$0xff]  ;;  %v2361_v54 = vld [vmem:[#allocation2 + $0x50] sm:$0xff] }
 0x270   :  { %v1828_v29 = vpop.permute.xlu0 %1827  ;;  %v1830_v32 = vpop.permute.xlu1 %1829 }
 0x271   :  { %1964 = vst.msk [vmem:[#allocation3 + $0x1c0] sm:$0xff] %vm1907_vm5, %v1828_v29  ;;  %1965 = vst.msk [vmem:[#allocation3 + $0x1c8] sm:$0xff] %vm1907_vm5, %v1830_v32 }
 0x272   :  { %2200 = vrot.lane.b32.xlu0 %v2022_v46, %s5061_s26  ;;  %2202 = vrot.lane.b32.xlu1 %v2023_v1, %s5061_s26  ;;  %v2362_v46 = vld [vmem:[#allocation2 + $0x60] sm:$0xff]  ;;  %v2363_v1 = vld [vmem:[#allocation2 + $0x68] sm:$0xff] }
 0x274   :  { %v1832_v40 = vpop.permute.xlu0 %1831  ;;  %v1834_v58 = vpop.permute.xlu1 %1833 }
 0x275   :  { %1966 = vst.msk [vmem:[#allocation3 + $0x1d0] sm:$0xff] %vm1907_vm5, %v1832_v40  ;;  %1967 = vst.msk [vmem:[#allocation3 + $0x1d8] sm:$0xff] %vm1907_vm5, %v1834_v58 }
 0x276   :  { %2204 = vrot.lane.b32.xlu0 %v2024_v28, %s5061_s26  ;;  %2206 = vrot.lane.b32.xlu1 %v2025_v38, %s5061_s26  ;;  %v2364_v28 = vld [vmem:[#allocation2 + $0x78] sm:$0xff]  ;;  %v2365_v38 = vld [vmem:[#allocation2 + $0x80] sm:$0xff] }
 0x278   :  { %v1836_v56 = vpop.permute.xlu0 %1835  ;;  %v1838_v10 = vpop.permute.xlu1 %1837 }
 0x279   :  { %1968 = vst.msk [vmem:[#allocation3 + $0x1e0] sm:$0xff] %vm1907_vm5, %v1836_v56  ;;  %1969 = vst.msk [vmem:[#allocation3 + $0x1e8] sm:$0xff] %vm1907_vm5, %v1838_v10  ;;  %v2367_v56 = vld [vmem:[#allocation2 + $0x98] sm:$0xff] }
 0x27a   :  { %2208 = vrot.lane.b32.xlu0 %v2026_v47, %s5061_s26  ;;  %2210 = vrot.lane.b32.xlu1 %v2027_v2, %s5061_s26  ;;  %v3581_v47 = vld [vmem:[%s7766_s1 + $0x20] sm:$0xf]  ;;  %v2366_v2 = vld [vmem:[#allocation2 + $0x90] sm:$0xff] }
 0x27b   :  { %4931 = vmatprep.subr.msk.mxu0 %vm3782_vm7, %v3581_v47  ;;  %5037 = vmatprep.subr.msk.mxu1 %vm3782_vm7, %v3581_v47 }
 0x27c   :  { %v1840_v22 = vpop.permute.xlu0 %1839  ;;  %v1842_v59 = vpop.permute.xlu1 %1841  ;;  %4932 = vmatpush3.msk.msra.mxu0 %vm3782_vm7, %v3581_v47  ;;  %5042 = vmatpush3.msk.msra.mxu1 %vm3782_vm7, %v3581_v47 }
 0x27d   :  { %1970 = vst.msk [vmem:[#allocation3 + $0x1f0] sm:$0xff] %vm1907_vm5, %v1840_v22  ;;  %1971 = vst.msk [vmem:[#allocation3 + $0x1f8] sm:$0xff] %vm1907_vm5, %v1842_v59  ;;  %v3579_v22 = vld [vmem:[%s7766_s1 + $0x10] sm:$0xff]  ;;  %v2368_v59 = vld [vmem:[#allocation2 + $0xa8] sm:$0xff] }
 0x27e   :  { %2212 = vrot.lane.b32.xlu0 %v2028_v3, %s5061_s26  ;;  %2214 = vrot.lane.b32.xlu1 %v2029_v20, %s5061_s26  ;;  %v3580_v20 = vld [vmem:[%s7766_s1 + $0x18] sm:$0xff] }
 0x27f   :  { %4933 = vmatprep.subr.mxu0 %v3580_v20  ;;  %5038 = vmatprep.subr.mxu1 %v3580_v20 }
 0x280   :  { %v2101_v30 = vpop.permute.xlu0 %2100  ;;  %v2103_v57 = vpop.permute.xlu1 %2102  ;;  %4934 = vmatpush3.msra.mxu0 %v3580_v20  ;;  %5043 = vmatpush3.msra.mxu1 %v3580_v20 }
 0x281   :  { %2293 = vst.msk [vmem:[#allocation3] sm:$0xff] %vm2292_vm6, %v2101_v30  ;;  %2294 = vst.msk [vmem:[#allocation3 + $0x8] sm:$0xff] %vm2292_vm6, %v2103_v57  ;;  %4935 = vmatprep.subr.mxu0 %v3579_v22  ;;  %v3578_v57 = vld [vmem:[%s7766_s1 + $0x8] sm:$0xff]  ;;  %5039 = vmatprep.subr.mxu1 %v3579_v22 }
 0x282   :  { %2216 = vrot.lane.b32.xlu0 %v2030_v19, %s5061_s26  ;;  %2218 = vrot.lane.b32.xlu1 %v2031_v42, %s5061_s26  ;;  %v2743_v19 = vld [vmem:[#allocation2 + $0x31] sm:$0xff] }
 0x283   :  { %4936 = vmatpush3.msra.mxu0 %v3579_v22  ;;  %5044 = vmatpush3.msra.mxu1 %v3579_v22  ;;  %v2371_v22 = vld [vmem:[#allocation2 + $0xc8] sm:$0xff] }
 0x284   :  { %v2105_v0 = vpop.permute.xlu0 %2104  ;;  %v2107_v18 = vpop.permute.xlu1 %2106  ;;  %4937 = vmatprep.subr.mxu0 %v3578_v57  ;;  %5040 = vmatprep.subr.mxu1 %v3578_v57 }
 0x285   :  { %2295 = vst.msk [vmem:[#allocation3 + $0x10] sm:$0xff] %vm2292_vm6, %v2105_v0  ;;  %2296 = vst.msk [vmem:[#allocation3 + $0x18] sm:$0xff] %vm2292_vm6, %v2107_v18  ;;  %4938 = vmatpush3.msra.mxu0 %v3578_v57  ;;  %5045 = vmatpush3.msra.mxu1 %v3578_v57 }
 0x286   :  { %2220 = vrot.lane.b32.xlu0 %v2032_v43, %s5061_s26  ;;  %2222 = vrot.lane.b32.xlu1 %v2033_v5, %s5061_s26  ;;  %v3577_v43 = vld [vmem:[%s7766_s1] sm:$0xff] }
 0x287   :  { %v2744_v5 = vld [vmem:[#allocation2 + $0x39] sm:$0xff]  ;;  %4939 = vmatprep.subr.mxu0 %v3577_v43  ;;  %5041 = vmatprep.subr.mxu1 %v3577_v43 }
 0x288   :  { %v2109_v48 = vpop.permute.xlu0 %2108  ;;  %v2111_v52 = vpop.permute.xlu1 %2110  ;;  %4940 = vmatpush3.msra.mxu0 %v3577_v43  ;;  %5046 = vmatpush3.msra.mxu1 %v3577_v43 }
 0x289   :  { %2297 = vst.msk [vmem:[#allocation3 + $0x20] sm:$0xff] %vm2292_vm6, %v2109_v48  ;;  %2298 = vst.msk [vmem:[#allocation3 + $0x28] sm:$0xff] %vm2292_vm6, %v2111_v52  ;;  %v2746_v52 = vld [vmem:[#allocation2 + $0x51] sm:$0xff] }
 0x28a   :  { %2224 = vrot.lane.b32.xlu0 %v2034_v26, %s5061_s26  ;;  %2226 = vrot.lane.b32.xlu1 %v2035_v27, %s5061_s26  ;;  %v2745_v26 = vld [vmem:[#allocation2 + $0x49] sm:$0xff] }
 0x28c   :  { %v2113_v50 = vpop.permute.xlu0 %2112  ;;  %v2115_v55 = vpop.permute.xlu1 %2114 }
 0x28d   :  { %2299 = vst.msk [vmem:[#allocation3 + $0x30] sm:$0xff] %vm2292_vm6, %v2113_v50  ;;  %2300 = vst.msk [vmem:[#allocation3 + $0x38] sm:$0xff] %vm2292_vm6, %v2115_v55 }
 0x28e   :  { %2486 = vrot.lane.b32.xlu0 %v2358_v12, %s5062_s27  ;;  %2488 = vrot.lane.b32.xlu1 %v2359_v21, %s5062_s27 }
 0x290   :  { %v2117_v7 = vpop.permute.xlu0 %2116  ;;  %v2119_v11 = vpop.permute.xlu1 %2118 }
 0x291   :  { %2301 = vst.msk [vmem:[#allocation3 + $0x40] sm:$0xff] %vm2292_vm6, %v2117_v7  ;;  %2302 = vst.msk [vmem:[#allocation3 + $0x48] sm:$0xff] %vm2292_vm6, %v2119_v11 }
 0x292   :  { %2490 = vrot.lane.b32.xlu0 %v2360_v45, %s5062_s27  ;;  %2492 = vrot.lane.b32.xlu1 %v2361_v54, %s5062_s27 }
 0x294   :  { %v2121_v29 = vpop.permute.xlu0 %2120  ;;  %v2123_v32 = vpop.permute.xlu1 %2122 }
 0x295   :  { %2303 = vst.msk [vmem:[#allocation3 + $0x50] sm:$0xff] %vm2292_vm6, %v2121_v29  ;;  %2304 = vst.msk [vmem:[#allocation3 + $0x58] sm:$0xff] %vm2292_vm6, %v2123_v32 }
 0x296   :  { %2494 = vrot.lane.b32.xlu0 %v2362_v46, %s5062_s27  ;;  %2496 = vrot.lane.b32.xlu1 %v2363_v1, %s5062_s27  ;;  %v2750_v46 = vld [vmem:[#allocation2 + $0x81] sm:$0xff] }
 0x298   :  { %v2125_v40 = vpop.permute.xlu0 %2124  ;;  %v2127_v58 = vpop.permute.xlu1 %2126 }
 0x299   :  { %2305 = vst.msk [vmem:[#allocation3 + $0x60] sm:$0xff] %vm2292_vm6, %v2125_v40  ;;  %2306 = vst.msk [vmem:[#allocation3 + $0x68] sm:$0xff] %vm2292_vm6, %v2127_v58 }
 0x29a   :  { %2498 = vrot.lane.b32.xlu0 %v2364_v28, %s5062_s27  ;;  %2500 = vrot.lane.b32.xlu1 %v2365_v38, %s5062_s27  ;;  %v2752_v38 = vld [vmem:[#allocation2 + $0x99] sm:$0xff] }
 0x29c   :  { %v2129_v10 = vpop.permute.xlu0 %2128  ;;  %v2131_v3 = vpop.permute.xlu1 %2130 }
 0x29d   :  { %2307 = vst.msk [vmem:[#allocation3 + $0x70] sm:$0xff] %vm2292_vm6, %v2129_v10  ;;  %2308 = vst.msk [vmem:[#allocation3 + $0x78] sm:$0xff] %vm2292_vm6, %v2131_v3 }
 0x29e   :  { %2502 = vrot.lane.b32.xlu0 %v2366_v2, %s5062_s27  ;;  %2504 = vrot.lane.b32.xlu1 %v2367_v56, %s5062_s27  ;;  %v2753_v2 = vld [vmem:[#allocation2 + $0xa9] sm:$0xff]  ;;  %v2754_v56 = vld [vmem:[#allocation2 + $0xb1] sm:$0xff] }
 0x2a0   :  { %v2133_v42 = vpop.permute.xlu0 %2132  ;;  %v2135_v30 = vpop.permute.xlu1 %2134 }
 0x2a1   :  { %2309 = vst.msk [vmem:[#allocation3 + $0x80] sm:$0xff] %vm2292_vm6, %v2133_v42  ;;  %2310 = vst.msk [vmem:[#allocation3 + $0x88] sm:$0xff] %vm2292_vm6, %v2135_v30  ;;  %v2755_v42 = vld [vmem:[#allocation2 + $0xc1] sm:$0xff]  ;;  %v2756_v30 = vld [vmem:[#allocation2 + $0xc9] sm:$0xff] }
 0x2a2   :  { %2506 = vrot.lane.b32.xlu0 %v2368_v59, %s5062_s27  ;;  %2871 = vrot.lane.b32.xlu1 %v2743_v19, %s5063_s11 }
 0x2a4   :  { %v2137_v0 = vpop.permute.xlu0 %2136  ;;  %v2139_v18 = vpop.permute.xlu1 %2138 }
 0x2a5   :  { %2311 = vst.msk [vmem:[#allocation3 + $0x90] sm:$0xff] %vm2292_vm6, %v2137_v0  ;;  %2312 = vst.msk [vmem:[#allocation3 + $0x98] sm:$0xff] %vm2292_vm6, %v2139_v18  ;;  %v2373_v0 = vld [vmem:[#allocation2 + $0xe0] sm:$0xff] }
 0x2a6   :  { %2873 = vrot.lane.b32.xlu0 %v2744_v5, %s5063_s11  ;;  %3256 = vrot.lane.b32.xlu1 %v6165_v24, %s5064_s14  ;;  %v2747_v24 = vld [vmem:[#allocation2 + $0x61] sm:$0xff]  ;;  %v2372_v5 = vld [vmem:[#allocation2 + $0xd8] sm:$0xff] }
 0x2a8   :  { %v2141_v27 = vpop.permute.xlu0 %2140  ;;  %v2143_v48 = vpop.permute.xlu1 %2142 }
 0x2a9   :  { %2313 = vst.msk [vmem:[#allocation3 + $0xa0] sm:$0xff] %vm2292_vm6, %v2141_v27  ;;  %2314 = vst.msk [vmem:[#allocation3 + $0xa8] sm:$0xff] %vm2292_vm6, %v2143_v48  ;;  %v2757_v27 = vld [vmem:[#allocation2 + $0xd9] sm:$0xff]  ;;  %v2758_v48 = vld [vmem:[#allocation2 + $0xe1] sm:$0xff] }
 0x2aa   :  { %3258 = vrot.lane.b32.xlu0 %v6167_v41, %s5064_s14  ;;  %2875 = vrot.lane.b32.xlu1 %v2745_v26, %s5063_s11  ;;  %v2748_v41 = vld [vmem:[#allocation2 + $0x69] sm:$0xff] }
 0x2ac   :  { %v2145_v12 = vpop.permute.xlu0 %2144  ;;  %v2147_v21 = vpop.permute.xlu1 %2146 }
 0x2ad   :  { %2315 = vst.msk [vmem:[#allocation3 + $0xb0] sm:$0xff] %vm2292_vm6, %v2145_v12  ;;  %2316 = vst.msk [vmem:[#allocation3 + $0xb8] sm:$0xff] %vm2292_vm6, %v2147_v21  ;;  %v2374_v21 = vld [vmem:[#allocation2 + $0xf0] sm:$0xff] }
 0x2ae   :  { %2877 = vrot.lane.b32.xlu0 %v2746_v52, %s5063_s11  ;;  %3260 = vrot.lane.b32.xlu1 %v6175_v34, %s5064_s14  ;;  %v2749_v34 = vld [vmem:[#allocation2 + $0x79] sm:$0xff] }
 0x2b0   :  { %v2149_v50 = vpop.permute.xlu0 %2148  ;;  %v2151_v55 = vpop.permute.xlu1 %2150 }
 0x2b1   :  { %2317 = vst.msk [vmem:[#allocation3 + $0xc0] sm:$0xff] %vm2292_vm6, %v2149_v50  ;;  %2318 = vst.msk [vmem:[#allocation3 + $0xc8] sm:$0xff] %vm2292_vm6, %v2151_v55 }
 0x2b2   :  { %3262 = vrot.lane.b32.xlu0 %v6177_v49, %s5064_s14  ;;  %2879 = vrot.lane.b32.xlu1 %v2747_v24, %s5063_s11  ;;  %v176_v49 = vld [vmem:[#allocation2 + $0x19a] sm:$0x1] }
 0x2b3   :  { %213 = vst.msk [vmem:[#allocation2 + $0x198] sm:$0x1] %vm195_vm1, %v176_v49  ;;  %v2375_v24 = vld [vmem:[#allocation2 + $0xf8] sm:$0xff] }
 0x2b4   :  { %v2153_v45 = vpop.permute.xlu0 %2152  ;;  %v2155_v54 = vpop.permute.xlu1 %2154 }
 0x2b5   :  { %2319 = vst.msk [vmem:[#allocation3 + $0xd0] sm:$0xff] %vm2292_vm6, %v2153_v45  ;;  %2320 = vst.msk [vmem:[#allocation3 + $0xd8] sm:$0xff] %vm2292_vm6, %v2155_v54  ;;  %v2760_v45 = vld [vmem:[#allocation2 + $0xf9] sm:$0xff] }
 0x2b6   :  { %2881 = vrot.lane.b32.xlu0 %v2748_v41, %s5063_s11  ;;  %3264 = vrot.lane.b32.xlu1 %v6185_v44, %s5064_s14  ;;  %v2751_v44 = vld [vmem:[#allocation2 + $0x91] sm:$0xff] }
 0x2b7   :  { %v2759_v41 = vld [vmem:[#allocation2 + $0xf1] sm:$0xff] }
 0x2b8   :  { %v2157_v7 = vpop.permute.xlu0 %2156  ;;  %v2159_v11 = vpop.permute.xlu1 %2158 }
 0x2b9   :  { %2321 = vst.msk [vmem:[#allocation3 + $0xe0] sm:$0xff] %vm2292_vm6, %v2157_v7  ;;  %2322 = vst.msk [vmem:[#allocation3 + $0xe8] sm:$0xff] %vm2292_vm6, %v2159_v11  ;;  %v2376_v7 = vld [vmem:[#allocation2 + $0x108] sm:$0xff]  ;;  %v2377_v11 = vld [vmem:[#allocation2 + $0x110] sm:$0xff] }
 0x2ba   :  { %3266 = vrot.lane.b32.xlu0 %v6187_v63, %s5064_s14  ;;  %2883 = vrot.lane.b32.xlu1 %v2749_v34, %s5063_s11  ;;  %v249_v63 = vld [vmem:[#allocation2 + $0x1a7] sm:$0x1] }
 0x2bb   :  { %285 = vst.msk [vmem:[#allocation2 + $0x1a9] sm:$0x1] %vm195_vm1, %v249_v63  ;;  %v2379_v63 = vld [vmem:[#allocation2 + $0x128] sm:$0xff] }
 0x2bc   :  { %v2161_v1 = vpop.permute.xlu0 %2160  ;;  %v2163_v29 = vpop.permute.xlu1 %2162 }
 0x2bd   :  { %2323 = vst.msk [vmem:[#allocation3 + $0xf0] sm:$0xff] %vm2292_vm6, %v2161_v1  ;;  %2324 = vst.msk [vmem:[#allocation3 + $0xf8] sm:$0xff] %vm2292_vm6, %v2163_v29  ;;  %v2761_v1 = vld [vmem:[#allocation2 + $0x109] sm:$0xff]  ;;  %v2762_v29 = vld [vmem:[#allocation2 + $0x111] sm:$0xff] }
 0x2be   :  { %2885 = vrot.lane.b32.xlu0 %v2750_v46, %s5063_s11  ;;  %3268 = vrot.lane.b32.xlu1 %v6195_v53, %s5064_s14  ;;  %v2369_v53 = vld [vmem:[#allocation2 + $0xb0] sm:$0xff] }
 0x2c0   :  { %v2165_v32 = vpop.permute.xlu0 %2164  ;;  %v2167_v28 = vpop.permute.xlu1 %2166 }
 0x2c1   :  { %2325 = vst.msk [vmem:[#allocation3 + $0x100] sm:$0xff] %vm2292_vm6, %v2165_v32  ;;  %2326 = vst.msk [vmem:[#allocation3 + $0x108] sm:$0xff] %vm2292_vm6, %v2167_v28  ;;  %v2378_v28 = vld [vmem:[#allocation2 + $0x120] sm:$0xff] }
 0x2c2   :  { %3270 = vrot.lane.b32.xlu0 %v6197_v8, %s5064_s14  ;;  %2887 = vrot.lane.b32.xlu1 %v2751_v44, %s5063_s11 }
 0x2c4   :  { %v2169_v40 = vpop.permute.xlu0 %2168  ;;  %v2171_v58 = vpop.permute.xlu1 %2170 }
 0x2c5   :  { %2327 = vst.msk [vmem:[#allocation3 + $0x110] sm:$0xff] %vm2292_vm6, %v2169_v40  ;;  %2328 = vst.msk [vmem:[#allocation3 + $0x118] sm:$0xff] %vm2292_vm6, %v2171_v58  ;;  %v2763_v58 = vld [vmem:[#allocation2 + $0x121] sm:$0xff] }
 0x2c6   :  { %2889 = vrot.lane.b32.xlu0 %v2752_v38, %s5063_s11  ;;  %3272 = vrot.lane.b32.xlu1 %v6205_v60, %s5064_s14 }
 0x2c8   :  { %v2173_v47 = vpop.permute.xlu0 %2172  ;;  %v2175_v8 = vpop.permute.xlu1 %2174 }
 0x2c9   :  { %2329 = vst.msk [vmem:[#allocation3 + $0x120] sm:$0xff] %vm2292_vm6, %v2173_v47  ;;  %2330 = vst.msk [vmem:[#allocation3 + $0x128] sm:$0xff] %vm2292_vm6, %v2175_v8 }
 0x2ca   :  { %3274 = vrot.lane.b32.xlu0 %v6207_v15, %s5064_s14  ;;  %2508 = vrot.lane.b32.xlu1 %v2369_v53, %s5062_s27  ;;  %v2370_v15 = vld [vmem:[#allocation2 + $0xc0] sm:$0xff]  ;;  %v2764_v53 = vld [vmem:[#allocation2 + $0x129] sm:$0xff] }
 0x2cc   :  { %v2177_v10 = vpop.permute.xlu0 %2176  ;;  %v2179_v3 = vpop.permute.xlu1 %2178 }
 0x2cd   :  { %2331 = vst.msk [vmem:[#allocation3 + $0x130] sm:$0xff] %vm2292_vm6, %v2177_v10  ;;  %2332 = vst.msk [vmem:[#allocation3 + $0x138] sm:$0xff] %vm2292_vm6, %v2179_v3 }
 0x2ce   :  { %2891 = vrot.lane.b32.xlu0 %v2753_v2, %s5063_s11  ;;  %2893 = vrot.lane.b32.xlu1 %v2754_v56, %s5063_s11  ;;  %v2380_v2 = vld [vmem:[#allocation2 + $0x138] sm:$0xff]  ;;  %v2381_v56 = vld [vmem:[#allocation2 + $0x140] sm:$0xff] }
 0x2d0   :  { %v2181_v60 = vpop.permute.xlu0 %2180  ;;  %v2183_v20 = vpop.permute.xlu1 %2182 }
 0x2d1   :  { %2333 = vst.msk [vmem:[#allocation3 + $0x140] sm:$0xff] %vm2292_vm6, %v2181_v60  ;;  %2334 = vst.msk [vmem:[#allocation3 + $0x148] sm:$0xff] %vm2292_vm6, %v2183_v20  ;;  %v2765_v60 = vld [vmem:[#allocation2 + $0x139] sm:$0xff]  ;;  %v2766_v20 = vld [vmem:[#allocation2 + $0x141] sm:$0xff] }
 0x2d2   :  { %3276 = vrot.lane.b32.xlu0 %v6215_v9, %s5064_s14  ;;  %3278 = vrot.lane.b32.xlu1 %v6217_v25, %s5064_s14 }
 0x2d4   :  { %v2185_v59 = vpop.permute.xlu0 %2184  ;;  %v2187_v19 = vpop.permute.xlu1 %2186 }
 0x2d5   :  { %2335 = vst.msk [vmem:[#allocation3 + $0x150] sm:$0xff] %vm2292_vm6, %v2185_v59  ;;  %2336 = vst.msk [vmem:[#allocation3 + $0x158] sm:$0xff] %vm2292_vm6, %v2187_v19  ;;  %v2382_v59 = vld [vmem:[#allocation2 + $0x150] sm:$0xff]  ;;  %v2383_v19 = vld [vmem:[#allocation2 + $0x158] sm:$0xff] }
 0x2d6   :  { %2510 = vrot.lane.b32.xlu0 %v2370_v15, %s5062_s27  ;;  %2512 = vrot.lane.b32.xlu1 %v2371_v22, %s5062_s27 }
 0x2d8   :  { %v2189_v57 = vpop.permute.xlu0 %2188  ;;  %v2191_v43 = vpop.permute.xlu1 %2190 }
 0x2d9   :  { %2337 = vst.msk [vmem:[#allocation3 + $0x160] sm:$0xff] %vm2292_vm6, %v2189_v57  ;;  %2338 = vst.msk [vmem:[#allocation3 + $0x168] sm:$0xff] %vm2292_vm6, %v2191_v43  ;;  %v2767_v57 = vld [vmem:[#allocation2 + $0x151] sm:$0xff]  ;;  %v2768_v43 = vld [vmem:[#allocation2 + $0x159] sm:$0xff] }
 0x2da   :  { %2895 = vrot.lane.b32.xlu0 %v2755_v42, %s5063_s11  ;;  %2897 = vrot.lane.b32.xlu1 %v2756_v30, %s5063_s11 }
 0x2dc   :  { %v2193_v9 = vpop.permute.xlu0 %2192  ;;  %v2195_v25 = vpop.permute.xlu1 %2194 }
 0x2dd   :  { %2339 = vst.msk [vmem:[#allocation3 + $0x170] sm:$0xff] %vm2292_vm6, %v2193_v9  ;;  %2340 = vst.msk [vmem:[#allocation3 + $0x178] sm:$0xff] %vm2292_vm6, %v2195_v25 }
 0x2de   :  { %3280 = vrot.lane.b32.xlu0 %v6225_v13, %s5064_s14  ;;  %3282 = vrot.lane.b32.xlu1 %v6227_v33, %s5064_s14 }
 0x2e0   :  { %v2197_v18 = vpop.permute.xlu0 %2196  ;;  %v2199_v26 = vpop.permute.xlu1 %2198 }
 0x2e1   :  { %2341 = vst.msk [vmem:[#allocation3 + $0x180] sm:$0xff] %vm2292_vm6, %v2197_v18  ;;  %2342 = vst.msk [vmem:[#allocation3 + $0x188] sm:$0xff] %vm2292_vm6, %v2199_v26  ;;  %v2384_v18 = vld [vmem:[#allocation2 + $0x168] sm:$0xff]  ;;  %v2385_v26 = vld [vmem:[#allocation2 + $0x170] sm:$0xff] }
 0x2e2   :  { %2514 = vrot.lane.b32.xlu0 %v2372_v5, %s5062_s27  ;;  %2516 = vrot.lane.b32.xlu1 %v2373_v0, %s5062_s27 }
 0x2e4   :  { %v2201_v52 = vpop.permute.xlu0 %2200  ;;  %v2203_v12 = vpop.permute.xlu1 %2202 }
 0x2e5   :  { %2343 = vst.msk [vmem:[#allocation3 + $0x190] sm:$0xff] %vm2292_vm6, %v2201_v52  ;;  %2344 = vst.msk [vmem:[#allocation3 + $0x198] sm:$0xff] %vm2292_vm6, %v2203_v12  ;;  %v2769_v12 = vld [vmem:[#allocation2 + $0x169] sm:$0xff] }
 0x2e6   :  { %2899 = vrot.lane.b32.xlu0 %v2757_v27, %s5063_s11  ;;  %2901 = vrot.lane.b32.xlu1 %v2758_v48, %s5063_s11 }
 0x2e8   :  { %v2205_v13 = vpop.permute.xlu0 %2204  ;;  %v2207_v33 = vpop.permute.xlu1 %2206 }
 0x2e9   :  { %2345 = vst.msk [vmem:[#allocation3 + $0x1a0] sm:$0xff] %vm2292_vm6, %v2205_v13  ;;  %2346 = vst.msk [vmem:[#allocation3 + $0x1a8] sm:$0xff] %vm2292_vm6, %v2207_v33 }
 0x2ea   :  { %3284 = vrot.lane.b32.xlu0 %v6235_v6, %s5064_s14  ;;  %3286 = vrot.lane.b32.xlu1 %v6237_v17, %s5064_s14 }
 0x2ec   :  { %v2209_v50 = vpop.permute.xlu0 %2208  ;;  %v2211_v55 = vpop.permute.xlu1 %2210 }
 0x2ed   :  { %2347 = vst.msk [vmem:[#allocation3 + $0x1b0] sm:$0xff] %vm2292_vm6, %v2209_v50  ;;  %2348 = vst.msk [vmem:[#allocation3 + $0x1b8] sm:$0xff] %vm2292_vm6, %v2211_v55  ;;  %v2386_v55 = vld [vmem:[#allocation2 + $0x180] sm:$0xff] }
 0x2ee   :  { %2518 = vrot.lane.b32.xlu0 %v2374_v21, %s5062_s27  ;;  %2520 = vrot.lane.b32.xlu1 %v2375_v24, %s5062_s27 }
 0x2f0   :  { %v2213_v54 = vpop.permute.xlu0 %2212  ;;  %v2215_v34 = vpop.permute.xlu1 %2214 }
 0x2f1   :  { %2349 = vst.msk [vmem:[#allocation3 + $0x1c0] sm:$0xff] %vm2292_vm6, %v2213_v54  ;;  %2350 = vst.msk [vmem:[#allocation3 + $0x1c8] sm:$0xff] %vm2292_vm6, %v2215_v34 }
 0x2f2   :  { %2903 = vrot.lane.b32.xlu0 %v2759_v41, %s5063_s11  ;;  %2905 = vrot.lane.b32.xlu1 %v2760_v45, %s5063_s11  ;;  %v2387_v41 = vld [vmem:[#allocation2 + $0x188] sm:$0xff] }
 0x2f4   :  { %v2217_v6 = vpop.permute.xlu0 %2216  ;;  %v2219_v17 = vpop.permute.xlu1 %2218 }
 0x2f5   :  { %2351 = vst.msk [vmem:[#allocation3 + $0x1d0] sm:$0xff] %vm2292_vm6, %v2217_v6  ;;  %2352 = vst.msk [vmem:[#allocation3 + $0x1d8] sm:$0xff] %vm2292_vm6, %v2219_v17  ;;  %v2771_v6 = vld [vmem:[#allocation2 + $0x181] sm:$0xff] }
 0x2f6   :  { %3288 = vrot.lane.b32.xlu0 %v6245_v35, %s5064_s14  ;;  %3290 = vrot.lane.b32.xlu1 %v6247_v62, %s5064_s14 }
 0x2f8   :  { %v2221_v49 = vpop.permute.xlu0 %2220  ;;  %v2223_v46 = vpop.permute.xlu1 %2222 }
 0x2f9   :  { %2353 = vst.msk [vmem:[#allocation3 + $0x1e0] sm:$0xff] %vm2292_vm6, %v2221_v49  ;;  %2354 = vst.msk [vmem:[#allocation3 + $0x1e8] sm:$0xff] %vm2292_vm6, %v2223_v46  ;;  %v3157_v49 = vld [vmem:[#allocation2 + $0x18a] sm:$0xff] }
 0x2fa   :  { %2522 = vrot.lane.b32.xlu0 %v2376_v7, %s5062_s27  ;;  %2524 = vrot.lane.b32.xlu1 %v2377_v11, %s5062_s27  ;;  %v3156_v11 = vld [vmem:[#allocation2 + $0x182] sm:$0xff] }
 0x2fc   :  { %v2225_v44 = vpop.permute.xlu0 %2224  ;;  %v2227_v32 = vpop.permute.xlu1 %2226 }
 0x2fd   :  { %2355 = vst.msk [vmem:[#allocation3 + $0x1f0] sm:$0xff] %vm2292_vm6, %v2225_v44  ;;  %2356 = vst.msk [vmem:[#allocation3 + $0x1f8] sm:$0xff] %vm2292_vm6, %v2227_v32  ;;  %v2388_v44 = vld [vmem:[#allocation2 + $0x198] sm:$0xff]  ;;  %v2389_v32 = vld [vmem:[#allocation2 + $0x1a0] sm:$0xff] }
 0x2fe   :  { %2907 = vrot.lane.b32.xlu0 %v2761_v1, %s5063_s11  ;;  %2909 = vrot.lane.b32.xlu1 %v2762_v29, %s5063_s11 }
 0x300   :  { %v2487_v35 = vpop.permute.xlu0 %2486  ;;  %v2489_v62 = vpop.permute.xlu1 %2488 }
 0x301   :  { %2679 = vst.msk [vmem:[#allocation3] sm:$0xff] %vm2678_vm8, %v2487_v35  ;;  %2680 = vst.msk [vmem:[#allocation3 + $0x8] sm:$0xff] %vm2678_vm8, %v2489_v62 }
 0x302   :  { %3292 = vrot.lane.b32.xlu0 %v6255_v51, %s5064_s14  ;;  %3294 = vrot.lane.b32.xlu1 %v6257_v14, %s5064_s14 }
 0x304   :  { %v2491_v38 = vpop.permute.xlu0 %2490  ;;  %v2493_v40 = vpop.permute.xlu1 %2492 }
 0x305   :  { %2681 = vst.msk [vmem:[#allocation3 + $0x10] sm:$0xff] %vm2678_vm8, %v2491_v38  ;;  %2682 = vst.msk [vmem:[#allocation3 + $0x18] sm:$0xff] %vm2678_vm8, %v2493_v40  ;;  %v2774_v38 = vld [vmem:[#allocation2 + $0x1a1] sm:$0xff] }
 0x306   :  { %2526 = vrot.lane.b32.xlu0 %v2378_v28, %s5062_s27  ;;  %2528 = vrot.lane.b32.xlu1 %v2379_v63, %s5062_s27  ;;  %v2773_v63 = vld [vmem:[#allocation2 + $0x199] sm:$0xff] }
 0x308   :  { %v2495_v47 = vpop.permute.xlu0 %2494  ;;  %v2497_v8 = vpop.permute.xlu1 %2496 }
 0x309   :  { %2683 = vst.msk [vmem:[#allocation3 + $0x20] sm:$0xff] %vm2678_vm8, %v2495_v47  ;;  %2684 = vst.msk [vmem:[#allocation3 + $0x28] sm:$0xff] %vm2678_vm8, %v2497_v8  ;;  %v3158_v47 = vld [vmem:[#allocation2 + $0x19a] sm:$0xff]  ;;  %v3159_v8 = vld [vmem:[#allocation2 + $0x1a2] sm:$0xff] }
 0x30a   :  { %2911 = vrot.lane.b32.xlu0 %v2763_v58, %s5063_s11  ;;  %2913 = vrot.lane.b32.xlu1 %v2764_v53, %s5063_s11 }
 0x30c   :  { %v2499_v51 = vpop.permute.xlu0 %2498  ;;  %v2501_v14 = vpop.permute.xlu1 %2500 }
 0x30d   :  { %2685 = vst.msk [vmem:[#allocation3 + $0x30] sm:$0xff] %vm2678_vm8, %v2499_v51  ;;  %2686 = vst.msk [vmem:[#allocation3 + $0x38] sm:$0xff] %vm2678_vm8, %v2501_v14 }
 0x30e   :  { %3296 = vrot.lane.b32.xlu0 %v6265_v16, %s5064_s14  ;;  %3298 = vrot.lane.b32.xlu1 %v6267_v23, %s5064_s14 }
 0x310   :  { %v2503_v10 = vpop.permute.xlu0 %2502  ;;  %v2505_v3 = vpop.permute.xlu1 %2504 }
 0x311   :  { %2687 = vst.msk [vmem:[#allocation3 + $0x40] sm:$0xff] %vm2678_vm8, %v2503_v10  ;;  %2688 = vst.msk [vmem:[#allocation3 + $0x48] sm:$0xff] %vm2678_vm8, %v2505_v3 }
 0x312   :  { %2530 = vrot.lane.b32.xlu0 %v2380_v2, %s5062_s27  ;;  %2532 = vrot.lane.b32.xlu1 %v2381_v56, %s5062_s27  ;;  %v2390_v2 = vld [vmem:[#allocation2 + $0x1e0] sm:$0xff] }
 0x314   :  { %v2507_v15 = vpop.permute.xlu0 %2506  ;;  %v2872_v16 = vpop.permute.xlu1 %2871 }
 0x315   :  { %2689 = vst.msk [vmem:[#allocation3 + $0x50] sm:$0xff] %vm2678_vm8, %v2507_v15  ;;  %v2775_v15 = vld [vmem:[#allocation2 + $0x1e1] sm:$0xff] }
 0x316   :  { %3064 = vst.msk [vmem:[#allocation3] sm:$0xff] %vm3063_vm9, %v2872_v16  ;;  %2915 = vrot.lane.b32.xlu0 %v2765_v60, %s5063_s11  ;;  %2917 = vrot.lane.b32.xlu1 %v2766_v20, %s5063_s11  ;;  %v2391_v20 = vld [vmem:[#allocation2 + $0x1e8] sm:$0xff] }
 0x318   :  { %v2874_v23 = vpop.permute.xlu0 %2873  ;;  %v3257_v22 = vpop.permute.xlu1 %3256 }
 0x319   :  { %3065 = vst.msk [vmem:[#allocation3 + $0x8] sm:$0xff] %vm3063_vm9, %v2874_v23 }
 0x31a   :  { %3449 = vst.msk [vmem:[#allocation3] sm:$0xff] %vm3448_vm10, %v3257_v22  ;;  %3300 = vrot.lane.b32.xlu0 %v6275_v36, %s5064_s14  ;;  %3302 = vrot.lane.b32.xlu1 %v6277_v39, %s5064_s14  ;;  %v2776_v22 = vld [vmem:[#allocation2 + $0x1e9] sm:$0xff] }
 0x31c   :  { %v3259_v42 = vpop.permute.xlu0 %3258  ;;  %v2876_v30 = vpop.permute.xlu1 %2875 }
 0x31d   :  { %3450 = vst.msk [vmem:[#allocation3 + $0x8] sm:$0xff] %vm3448_vm10, %v3259_v42 }
 0x31e   :  { %3066 = vst.msk [vmem:[#allocation3 + $0x10] sm:$0xff] %vm3063_vm9, %v2876_v30  ;;  %2534 = vrot.lane.b32.xlu0 %v2382_v59, %s5062_s27  ;;  %2536 = vrot.lane.b32.xlu1 %v2383_v19, %s5062_s27  ;;  %v3160_v59 = vld [vmem:[#allocation2 + $0x1e2] sm:$0xff]  ;;  %v3161_v30 = vld [vmem:[#allocation2 + $0x1ea] sm:$0xff] }
 0x320   :  { %v2878_v9 = vpop.permute.xlu0 %2877  ;;  %v3261_v36 = vpop.permute.xlu1 %3260 }
 0x321   :  { %v3513_v25 = vld [vmem:[#allocation3] sm:$0xff]  ;;  %3067 = vst.msk [vmem:[#allocation3 + $0x18] sm:$0xff] %vm3063_vm9, %v2878_v9 }
 0x322   :  { %3451 = vst.msk [vmem:[#allocation3 + $0x10] sm:$0xff] %vm3448_vm10, %v3261_v36  ;;  %4941 = vmatprep.mubr.msk.f32.mxu0 %vm3589_vm11, %v3513_v25  ;;  %2919 = vrot.lane.b32.xlu0 %v2767_v57, %s5063_s11  ;;  %v2392_v57 = vld [vmem:[#allocation2 + $0x1f8] sm:$0xff] }
 0x323   :  { %2921 = vrot.lane.b32.xlu1 %v2768_v43, %s5063_s11 }
 0x324   :  { %v3263_v39 = vpop.permute.xlu0 %3262  ;;  %v2880_v5 = vpop.permute.xlu1 %2879  ;;  %v3514_v0 = vld [vmem:[#allocation3 + $0x8] sm:$0xff] }
 0x325   :  { %3452 = vst.msk [vmem:[#allocation3 + $0x18] sm:$0xff] %vm3448_vm10, %v3263_v39  ;;  %4942 = vmatmul.mubr.msk.f32.vlgmr.msra.gmra.mxu0 %vm3589_vm11, %v3514_v0  ;;  %v2393_v39 = vld [vmem:[#allocation2 + $0x200] sm:$0xff] }
 0x326   :  { %3068 = vst.msk [vmem:[#allocation3 + $0x20] sm:$0xff] %vm3063_vm9, %v2880_v5  ;;  %3304 = vrot.lane.b32.xlu0 %v6285_v61, %s5064_s14  ;;  %v2770_v61 = vld [vmem:[#allocation2 + $0x171] sm:$0xff]  ;;  %v2777_v5 = vld [vmem:[#allocation2 + $0x1f9] sm:$0xff] }
 0x327   :  { %3306 = vrot.lane.b32.xlu1 %v6287_v4, %s5064_s14 }
 0x328   :  { %v2882_v27 = vpop.permute.xlu0 %2881  ;;  %v3265_v48 = vpop.permute.xlu1 %3264 }
 0x329   :  { %v3515_v52 = vld [vmem:[#allocation3 + $0x10] sm:$0xff]  ;;  %3069 = vst.msk [vmem:[#allocation3 + $0x28] sm:$0xff] %vm3063_vm9, %v2882_v27  ;;  %v3162_v27 = vld [vmem:[#allocation2 + $0x1fa] sm:$0xff] }
 0x32a   :  { %3453 = vst.msk [vmem:[#allocation3 + $0x20] sm:$0xff] %vm3448_vm10, %v3265_v48  ;;  %4944 = vmatprep.mubr.msk.f32.mxu0 %vm3589_vm11, %v3515_v52  ;;  %2538 = vrot.lane.b32.xlu0 %v2384_v18, %s5062_s27 }
 0x32b   :  { %2540 = vrot.lane.b32.xlu1 %v2385_v26, %s5062_s27  ;;  %v2778_v26 = vld [vmem:[#allocation2 + $0x201] sm:$0xff] }
 0x32c   :  { %v3267_v13 = vpop.permute.xlu0 %3266  ;;  %v2884_v33 = vpop.permute.xlu1 %2883  ;;  %v3516_v4 = vld [vmem:[#allocation3 + $0x18] sm:$0xff] }
 0x32d   :  { %3454 = vst.msk [vmem:[#allocation3 + $0x28] sm:$0xff] %vm3448_vm10, %v3267_v13  ;;  %4945 = vmatmul.mubr.msk.f32.gmra.mxu0 %vm3589_vm11, %v3516_v4 }
 0x32e   :  { %3070 = vst.msk [vmem:[#allocation3 + $0x30] sm:$0xff] %vm3063_vm9, %v2884_v33  ;;  %2923 = vrot.lane.b32.xlu0 %v2769_v12, %s5063_s11  ;;  %v3163_v12 = vld [vmem:[#allocation2 + $0x202] sm:$0xff] }
 0x32f   :  { %2925 = vrot.lane.b32.xlu1 %v2770_v61, %s5063_s11  ;;  %v2394_v61 = vld [vmem:[#allocation2 + $0x210] sm:$0xff] }
 0x330   :  { %v2886_v21 = vpop.permute.xlu0 %2885  ;;  %v3269_v24 = vpop.permute.xlu1 %3268 }
 0x331   :  { %v3517_v50 = vld [vmem:[#allocation3 + $0x20] sm:$0xff]  ;;  %3071 = vst.msk [vmem:[#allocation3 + $0x38] sm:$0xff] %vm3063_vm9, %v2886_v21 }
 0x332   :  { %3455 = vst.msk [vmem:[#allocation3 + $0x30] sm:$0xff] %vm3448_vm10, %v3269_v24  ;;  %4947 = vmatprep.mubr.msk.f32.mxu0 %vm3589_vm11, %v3517_v50  ;;  %3308 = vrot.lane.b32.xlu0 %v6295_v31, %s5064_s14  ;;  %v2772_v31 = vld [vmem:[#allocation2 + $0x189] sm:$0xff]  ;;  %v2395_v24 = vld [vmem:[#allocation2 + $0x218] sm:$0xff] }
 0x333   :  { %3310 = vrot.lane.b32.xlu1 %v6297_v37, %s5064_s14  ;;  %v2779_v50 = vld [vmem:[#allocation2 + $0x211] sm:$0xff] }
 0x334   :  { %v3271_v45 = vpop.permute.xlu0 %3270  ;;  %v2888_v54 = vpop.permute.xlu1 %2887  ;;  %v3518_v34 = vld [vmem:[#allocation3 + $0x28] sm:$0xff] }
 0x335   :  { %3456 = vst.msk [vmem:[#allocation3 + $0x38] sm:$0xff] %vm3448_vm10, %v3271_v45  ;;  %4948 = vmatmul.mubr.msk.f32.gmra.mxu0 %vm3589_vm11, %v3518_v34  ;;  %v2780_v45 = vld [vmem:[#allocation2 + $0x219] sm:$0xff] }
 0x336   :  { %3072 = vst.msk [vmem:[#allocation3 + $0x40] sm:$0xff] %vm3063_vm9, %v2888_v54  ;;  %2542 = vrot.lane.b32.xlu0 %v2386_v55, %s5062_s27  ;;  %v3164_v54 = vld [vmem:[#allocation2 + $0x212] sm:$0xff] }
 0x337   :  { %2544 = vrot.lane.b32.xlu1 %v2387_v41, %s5062_s27 }
 0x338   :  { %v2890_v17 = vpop.permute.xlu0 %2889  ;;  %v3273_v7 = vpop.permute.xlu1 %3272 }
 0x339   :  { %v3519_v37 = vld [vmem:[#allocation3 + $0x30] sm:$0xff]  ;;  %3073 = vst.msk [vmem:[#allocation3 + $0x48] sm:$0xff] %vm3063_vm9, %v2890_v17  ;;  %v2396_v17 = vld [vmem:[#allocation2 + $0x228] sm:$0xff] }
 0x33a   :  { %3457 = vst.msk [vmem:[#allocation3 + $0x40] sm:$0xff] %vm3448_vm10, %v3273_v7  ;;  %4950 = vmatprep.mubr.msk.f32.mxu0 %vm3589_vm11, %v3519_v37  ;;  %2927 = vrot.lane.b32.xlu0 %v2771_v6, %s5063_s11 }
 0x33b   :  { %2929 = vrot.lane.b32.xlu1 %v2772_v31, %s5063_s11  ;;  %v3165_v31 = vld [vmem:[#allocation2 + $0x21a] sm:$0xff] }
 0x33c   :  { %v3275_v46 = vpop.permute.xlu0 %3274  ;;  %v2509_v1 = vpop.permute.xlu1 %2508  ;;  %v3520_v29 = vld [vmem:[#allocation3 + $0x38] sm:$0xff] }
 0x33d   :  { %3458 = vst.msk [vmem:[#allocation3 + $0x48] sm:$0xff] %vm3448_vm10, %v3275_v46  ;;  %4951 = vmatmul.mubr.msk.f32.gmra.mxu0 %vm3589_vm11, %v3520_v29  ;;  %v2397_v46 = vld [vmem:[#allocation2 + $0x230] sm:$0xff] }
 0x33e   :  { %2690 = vst.msk [vmem:[#allocation3 + $0x58] sm:$0xff] %vm2678_vm8, %v2509_v1  ;;  %3312 = vrot.lane.b32.xlu0 %v3156_v11, %s5064_s14  ;;  %v2781_v1 = vld [vmem:[#allocation2 + $0x229] sm:$0xff] }
 0x33f   :  { %3314 = vrot.lane.b32.xlu1 %v3157_v49, %s5064_s14 }
 0x340   :  { %v2892_v35 = vpop.permute.xlu0 %2891  ;;  %v2894_v62 = vpop.permute.xlu1 %2893 }
 0x341   :  { %v3521_v28 = vld [vmem:[#allocation3 + $0x40] sm:$0xff]  ;;  %3074 = vst.msk [vmem:[#allocation3 + $0x50] sm:$0xff] %vm3063_vm9, %v2892_v35  ;;  %3075 = vst.msk [vmem:[#allocation3 + $0x58] sm:$0xff] %vm3063_vm9, %v2894_v62  ;;  %v3166_v35 = vld [vmem:[#allocation2 + $0x22a] sm:$0xff] }
 0x342   :  { %4953 = vmatprep.mubr.msk.f32.mxu0 %vm3589_vm11, %v3521_v28  ;;  %2546 = vrot.lane.b32.xlu0 %v2388_v44, %s5062_s27 }
 0x343   :  { %2548 = vrot.lane.b32.xlu1 %v2389_v32, %s5062_s27  ;;  %v2782_v32 = vld [vmem:[#allocation2 + $0x231] sm:$0xff] }
 0x344   :  { %v3277_v40 = vpop.permute.xlu0 %3276  ;;  %v3279_v58 = vpop.permute.xlu1 %3278  ;;  %v3522_v53 = vld [vmem:[#allocation3 + $0x48] sm:$0xff] }
 0x345   :  { %3459 = vst.msk [vmem:[#allocation3 + $0x50] sm:$0xff] %vm3448_vm10, %v3277_v40  ;;  %3460 = vst.msk [vmem:[#allocation3 + $0x58] sm:$0xff] %vm3448_vm10, %v3279_v58  ;;  %4954 = vmatmul.mubr.msk.f32.gmra.mxu0 %vm3589_vm11, %v3522_v53  ;;  %v2398_v40 = vld [vmem:[#allocation2 + $0x240] sm:$0xff] }
 0x346   :  { %2931 = vrot.lane.b32.xlu0 %v2773_v63, %s5063_s11  ;;  %v3167_v63 = vld [vmem:[#allocation2 + $0x232] sm:$0xff] }
 0x347   :  { %2933 = vrot.lane.b32.xlu1 %v2774_v38, %s5063_s11  ;;  %v194_v38 = vld [vmem:[#allocation2 + $0x34a] sm:$0x1] }
 0x348   :  { %v2511_v51 = vpop.permute.xlu0 %2510  ;;  %v2513_v14 = vpop.permute.xlu1 %2512  ;;  %231 = vst.msk [vmem:[#allocation2 + $0x348] sm:$0x1] %vm195_vm1, %v194_v38  ;;  %v2791_v38 = vld [vmem:[#allocation2 + $0x2a1] sm:$0xff] }
 0x349   :  { %2691 = vst.msk [vmem:[#allocation3 + $0x60] sm:$0xff] %vm2678_vm8, %v2511_v51  ;;  %2692 = vst.msk [vmem:[#allocation3 + $0x68] sm:$0xff] %vm2678_vm8, %v2513_v14  ;;  %v2399_v51 = vld [vmem:[#allocation2 + $0x248] sm:$0xff] }
 0x34a   :  { %3316 = vrot.lane.b32.xlu0 %v3158_v47, %s5064_s14  ;;  %v2783_v14 = vld [vmem:[#allocation2 + $0x241] sm:$0xff] }
 0x34b   :  { %3318 = vrot.lane.b32.xlu1 %v3159_v8, %s5064_s14 }
 0x34c   :  { %v2896_v56 = vpop.permute.xlu0 %2895  ;;  %v2898_v10 = vpop.permute.xlu1 %2897  ;;  %v3523_v3 = vld [vmem:[#allocation3 + $0x50] sm:$0xff]  ;;  %v3524_v60 = vld [vmem:[#allocation3 + $0x58] sm:$0xff] }
 0x34d   :  { %3076 = vst.msk [vmem:[#allocation3 + $0x60] sm:$0xff] %vm3063_vm9, %v2896_v56  ;;  %3077 = vst.msk [vmem:[#allocation3 + $0x68] sm:$0xff] %vm3063_vm9, %v2898_v10  ;;  %4956 = vmatprep.mubr.msk.f32.mxu0 %vm3589_vm11, %v3523_v3  ;;  %v2784_v10 = vld [vmem:[#allocation2 + $0x249] sm:$0xff]  ;;  %v267_v3 = vld [vmem:[#allocation2 + $0x357] sm:$0x1] }
 0x34e   :  { %2550 = vrot.lane.b32.xlu0 %v2390_v2, %s5062_s27  ;;  %4957 = vmatmul.mubr.msk.f32.gmra.mxu0 %vm3589_vm11, %v3524_v60  ;;  %v3168_v60 = vld [vmem:[#allocation2 + $0x242] sm:$0xff]  ;;  %303 = vst.msk [vmem:[#allocation2 + $0x359] sm:$0x1] %vm195_vm1, %v267_v3 }
 0x34f   :  { %2552 = vrot.lane.b32.xlu1 %v2391_v20, %s5062_s27 }
 0x350   :  { %v3281_v16 = vpop.permute.xlu0 %3280  ;;  %v3283_v23 = vpop.permute.xlu1 %3282 }
 0x351   :  { %3461 = vst.msk [vmem:[#allocation3 + $0x60] sm:$0xff] %vm3448_vm10, %v3281_v16  ;;  %3462 = vst.msk [vmem:[#allocation3 + $0x68] sm:$0xff] %vm3448_vm10, %v3283_v23  ;;  %v3169_v16 = vld [vmem:[#allocation2 + $0x24a] sm:$0xff]  ;;  %v2400_v23 = vld [vmem:[#allocation2 + $0x258] sm:$0xff] }
 0x352   :  { %2935 = vrot.lane.b32.xlu0 %v2775_v15, %s5063_s11 }
 0x353   :  { %2937 = vrot.lane.b32.xlu1 %v2776_v22, %s5063_s11 }
 0x354   :  { %v2515_v19 = vpop.permute.xlu0 %2514  ;;  %v2517_v42 = vpop.permute.xlu1 %2516 }
 0x355   :  { %2693 = vst.msk [vmem:[#allocation3 + $0x70] sm:$0xff] %vm2678_vm8, %v2515_v19  ;;  %2694 = vst.msk [vmem:[#allocation3 + $0x78] sm:$0xff] %vm2678_vm8, %v2517_v42 }
 0x356   :  { %3320 = vrot.lane.b32.xlu0 %v3160_v59, %s5064_s14 }
 0x357   :  { %3322 = vrot.lane.b32.xlu1 %v3161_v30, %s5064_s14  ;;  %v2401_v30 = vld [vmem:[#allocation2 + $0x260] sm:$0xff] }
 0x358   :  { %v2900_v43 = vpop.permute.xlu0 %2899  ;;  %v2902_v9 = vpop.permute.xlu1 %2901  ;;  %v3525_v36 = vld [vmem:[#allocation3 + $0x60] sm:$0xff]  ;;  %v3526_v25 = vld [vmem:[#allocation3 + $0x68] sm:$0xff] }
 0x359   :  { %3078 = vst.msk [vmem:[#allocation3 + $0x70] sm:$0xff] %vm3063_vm9, %v2900_v43  ;;  %3079 = vst.msk [vmem:[#allocation3 + $0x78] sm:$0xff] %vm3063_vm9, %v2902_v9  ;;  %4959 = vmatprep.mubr.msk.f32.mxu0 %vm3589_vm11, %v3525_v36  ;;  %v2786_v36 = vld [vmem:[#allocation2 + $0x261] sm:$0xff] }
 0x35a   :  { %2554 = vrot.lane.b32.xlu0 %v2392_v57, %s5062_s27  ;;  %4960 = vmatmul.mubr.msk.f32.gmra.mxu0 %vm3589_vm11, %v3526_v25  ;;  %v2785_v57 = vld [vmem:[#allocation2 + $0x259] sm:$0xff] }
 0x35b   :  { %2556 = vrot.lane.b32.xlu1 %v2393_v39, %s5062_s27  ;;  %v3170_v25 = vld [vmem:[#allocation2 + $0x25a] sm:$0xff] }
 0x35c   :  { %v3285_v0 = vpop.permute.xlu0 %3284  ;;  %v3287_v18 = vpop.permute.xlu1 %3286 }
 0x35d   :  { %3463 = vst.msk [vmem:[#allocation3 + $0x70] sm:$0xff] %vm3448_vm10, %v3285_v0  ;;  %3464 = vst.msk [vmem:[#allocation3 + $0x78] sm:$0xff] %vm3448_vm10, %v3287_v18  ;;  %v3171_v0 = vld [vmem:[#allocation2 + $0x262] sm:$0xff]  ;;  %v2402_v18 = vld [vmem:[#allocation2 + $0x270] sm:$0xff] }
 0x35e   :  { %2939 = vrot.lane.b32.xlu0 %v2777_v5, %s5063_s11 }
 0x35f   :  { %2941 = vrot.lane.b32.xlu1 %v2778_v26, %s5063_s11 }
 0x360   :  { %v2519_v48 = vpop.permute.xlu0 %2518  ;;  %v2521_v52 = vpop.permute.xlu1 %2520 }
 0x361   :  { %2695 = vst.msk [vmem:[#allocation3 + $0x80] sm:$0xff] %vm2678_vm8, %v2519_v48  ;;  %2696 = vst.msk [vmem:[#allocation3 + $0x88] sm:$0xff] %vm2678_vm8, %v2521_v52 }
 0x362   :  { %3324 = vrot.lane.b32.xlu0 %v3162_v27, %s5064_s14 }
 0x363   :  { %3326 = vrot.lane.b32.xlu1 %v3163_v12, %s5064_s14  ;;  %v2403_v12 = vld [vmem:[#allocation2 + $0x278] sm:$0xff] }
 0x364   :  { %v2904_v13 = vpop.permute.xlu0 %2903  ;;  %v2906_v33 = vpop.permute.xlu1 %2905  ;;  %v3527_v4 = vld [vmem:[#allocation3 + $0x70] sm:$0xff]  ;;  %v3528_v21 = vld [vmem:[#allocation3 + $0x78] sm:$0xff] }
 0x365   :  { %3080 = vst.msk [vmem:[#allocation3 + $0x80] sm:$0xff] %vm3063_vm9, %v2904_v13  ;;  %3081 = vst.msk [vmem:[#allocation3 + $0x88] sm:$0xff] %vm3063_vm9, %v2906_v33  ;;  %4962 = vmatprep.mubr.msk.f32.mxu0 %vm3589_vm11, %v3527_v4  ;;  %v2788_v4 = vld [vmem:[#allocation2 + $0x279] sm:$0xff] }
 0x366   :  { %2558 = vrot.lane.b32.xlu0 %v2394_v61, %s5062_s27  ;;  %4963 = vmatmul.mubr.msk.f32.gmra.mxu0 %vm3589_vm11, %v3528_v21  ;;  %v2787_v61 = vld [vmem:[#allocation2 + $0x271] sm:$0xff] }
 0x367   :  { %2560 = vrot.lane.b32.xlu1 %v2395_v24, %s5062_s27  ;;  %v3172_v21 = vld [vmem:[#allocation2 + $0x272] sm:$0xff] }
 0x368   :  { %v3289_v55 = vpop.permute.xlu0 %3288  ;;  %v3291_v41 = vpop.permute.xlu1 %3290 }
 0x369   :  { %3465 = vst.msk [vmem:[#allocation3 + $0x80] sm:$0xff] %vm3448_vm10, %v3289_v55  ;;  %3466 = vst.msk [vmem:[#allocation3 + $0x88] sm:$0xff] %vm3448_vm10, %v3291_v41  ;;  %v3173_v55 = vld [vmem:[#allocation2 + $0x27a] sm:$0xff]  ;;  %v2404_v41 = vld [vmem:[#allocation2 + $0x288] sm:$0xff] }
 0x36a   :  { %2943 = vrot.lane.b32.xlu0 %v2779_v50, %s5063_s11 }
 0x36b   :  { %2945 = vrot.lane.b32.xlu1 %v2780_v45, %s5063_s11 }
 0x36c   :  { %v2523_v34 = vpop.permute.xlu0 %2522  ;;  %v2525_v6 = vpop.permute.xlu1 %2524 }
 0x36d   :  { %2697 = vst.msk [vmem:[#allocation3 + $0x90] sm:$0xff] %vm2678_vm8, %v2523_v34  ;;  %2698 = vst.msk [vmem:[#allocation3 + $0x98] sm:$0xff] %vm2678_vm8, %v2525_v6 }
 0x36e   :  { %3328 = vrot.lane.b32.xlu0 %v3164_v54, %s5064_s14 }
 0x36f   :  { %3330 = vrot.lane.b32.xlu1 %v3165_v31, %s5064_s14  ;;  %v2405_v31 = vld [vmem:[#allocation2 + $0x290] sm:$0xff] }
 0x370   :  { %v2908_v7 = vpop.permute.xlu0 %2907  ;;  %v2910_v37 = vpop.permute.xlu1 %2909  ;;  %v3529_v11 = vld [vmem:[#allocation3 + $0x80] sm:$0xff]  ;;  %v3530_v49 = vld [vmem:[#allocation3 + $0x88] sm:$0xff] }
 0x371   :  { %3082 = vst.msk [vmem:[#allocation3 + $0x90] sm:$0xff] %vm3063_vm9, %v2908_v7  ;;  %3083 = vst.msk [vmem:[#allocation3 + $0x98] sm:$0xff] %vm3063_vm9, %v2910_v37  ;;  %4965 = vmatprep.mubr.msk.f32.mxu0 %vm3589_vm11, %v3529_v11  ;;  %v2790_v11 = vld [vmem:[#allocation2 + $0x291] sm:$0xff] }
 0x372   :  { %2562 = vrot.lane.b32.xlu0 %v2396_v17, %s5062_s27  ;;  %4966 = vmatmul.mubr.msk.f32.gmra.mxu0 %vm3589_vm11, %v3530_v49  ;;  %v2789_v17 = vld [vmem:[#allocation2 + $0x289] sm:$0xff] }
 0x373   :  { %2564 = vrot.lane.b32.xlu1 %v2397_v46, %s5062_s27  ;;  %v3174_v49 = vld [vmem:[#allocation2 + $0x28a] sm:$0xff] }
 0x374   :  { %v3293_v29 = vpop.permute.xlu0 %3292  ;;  %v3295_v44 = vpop.permute.xlu1 %3294 }
 0x375   :  { %3467 = vst.msk [vmem:[#allocation3 + $0x90] sm:$0xff] %vm3448_vm10, %v3293_v29  ;;  %3468 = vst.msk [vmem:[#allocation3 + $0x98] sm:$0xff] %vm3448_vm10, %v3295_v44  ;;  %v3175_v29 = vld [vmem:[#allocation2 + $0x292] sm:$0xff]  ;;  %v2406_v44 = vld [vmem:[#allocation2 + $0x2a0] sm:$0xff] }
 0x376   :  { %2947 = vrot.lane.b32.xlu0 %v2781_v1, %s5063_s11 }
 0x377   :  { %2949 = vrot.lane.b32.xlu1 %v2782_v32, %s5063_s11 }
 0x378   :  { %v2527_v62 = vpop.permute.xlu0 %2526  ;;  %v2529_v28 = vpop.permute.xlu1 %2528 }
 0x379   :  { %2699 = vst.msk [vmem:[#allocation3 + $0xa0] sm:$0xff] %vm2678_vm8, %v2527_v62  ;;  %2700 = vst.msk [vmem:[#allocation3 + $0xa8] sm:$0xff] %vm2678_vm8, %v2529_v28 }
 0x37a   :  { %3332 = vrot.lane.b32.xlu0 %v3166_v35, %s5064_s14 }
 0x37b   :  { %3334 = vrot.lane.b32.xlu1 %v3167_v63, %s5064_s14  ;;  %v2407_v63 = vld [vmem:[#allocation2 + $0x2a8] sm:$0xff] }
 0x37c   :  { %v2912_v58 = vpop.permute.xlu0 %2911  ;;  %v2914_v53 = vpop.permute.xlu1 %2913  ;;  %v3531_v47 = vld [vmem:[#allocation3 + $0x90] sm:$0xff]  ;;  %v3532_v8 = vld [vmem:[#allocation3 + $0x98] sm:$0xff] }
 0x37d   :  { %3084 = vst.msk [vmem:[#allocation3 + $0xa0] sm:$0xff] %vm3063_vm9, %v2912_v58  ;;  %3085 = vst.msk [vmem:[#allocation3 + $0xa8] sm:$0xff] %vm3063_vm9, %v2914_v53  ;;  %4968 = vmatprep.mubr.msk.f32.mxu0 %vm3589_vm11, %v3531_v47  ;;  %v2792_v53 = vld [vmem:[#allocation2 + $0x2a9] sm:$0xff] }
 0x37e   :  { %2566 = vrot.lane.b32.xlu0 %v2398_v40, %s5062_s27  ;;  %4969 = vmatmul.mubr.msk.f32.gmra.mxu0 %vm3589_vm11, %v3532_v8  ;;  %v3176_v47 = vld [vmem:[#allocation2 + $0x2a2] sm:$0xff] }
 0x37f   :  { %2568 = vrot.lane.b32.xlu1 %v2399_v51, %s5062_s27 }
 0x380   :  { %v3297_v2 = vpop.permute.xlu0 %3296  ;;  %v3299_v56 = vpop.permute.xlu1 %3298 }
 0x381   :  { %3469 = vst.msk [vmem:[#allocation3 + $0xa0] sm:$0xff] %vm3448_vm10, %v3297_v2  ;;  %3470 = vst.msk [vmem:[#allocation3 + $0xa8] sm:$0xff] %vm3448_vm10, %v3299_v56  ;;  %v2408_v2 = vld [vmem:[#allocation2 + $0x2b8] sm:$0xff] }
 0x382   :  { %2951 = vrot.lane.b32.xlu0 %v2783_v14, %s5063_s11  ;;  %v3177_v14 = vld [vmem:[#allocation2 + $0x2aa] sm:$0xff] }
 0x383   :  { %2953 = vrot.lane.b32.xlu1 %v2784_v10, %s5063_s11 }
 0x384   :  { %v2531_v20 = vpop.permute.xlu0 %2530  ;;  %v2533_v15 = vpop.permute.xlu1 %2532 }
 0x385   :  { %2701 = vst.msk [vmem:[#allocation3 + $0xb0] sm:$0xff] %vm2678_vm8, %v2531_v20  ;;  %2702 = vst.msk [vmem:[#allocation3 + $0xb8] sm:$0xff] %vm2678_vm8, %v2533_v15  ;;  %v2409_v20 = vld [vmem:[#allocation2 + $0x2c0] sm:$0xff] }
 0x386   :  { %3336 = vrot.lane.b32.xlu0 %v3168_v60, %s5064_s14  ;;  %v2793_v15 = vld [vmem:[#allocation2 + $0x2b9] sm:$0xff] }
 0x387   :  { %3338 = vrot.lane.b32.xlu1 %v3169_v16, %s5064_s14 }
 0x388   :  { %v2916_v22 = vpop.permute.xlu0 %2915  ;;  %v2918_v59 = vpop.permute.xlu1 %2917  ;;  %v3533_v19 = vld [vmem:[#allocation3 + $0xa0] sm:$0xff]  ;;  %v3534_v42 = vld [vmem:[#allocation3 + $0xa8] sm:$0xff] }
 0x389   :  { %3086 = vst.msk [vmem:[#allocation3 + $0xb0] sm:$0xff] %vm3063_vm9, %v2916_v22  ;;  %3087 = vst.msk [vmem:[#allocation3 + $0xb8] sm:$0xff] %vm3063_vm9, %v2918_v59  ;;  %4971 = vmatprep.mubr.msk.f32.mxu0 %vm3589_vm11, %v3533_v19  ;;  %v2794_v22 = vld [vmem:[#allocation2 + $0x2c1] sm:$0xff] }
 0x38a   :  { %2570 = vrot.lane.b32.xlu0 %v2400_v23, %s5062_s27  ;;  %4972 = vmatmul.mubr.msk.f32.gmra.mxu0 %vm3589_vm11, %v3534_v42  ;;  %v3178_v59 = vld [vmem:[#allocation2 + $0x2ba] sm:$0xff]  ;;  %v3179_v42 = vld [vmem:[#allocation2 + $0x2c2] sm:$0xff] }
 0x38b   :  { %2572 = vrot.lane.b32.xlu1 %v2401_v30, %s5062_s27 }
 0x38c   :  { %v3301_v43 = vpop.permute.xlu0 %3300  ;;  %v3303_v9 = vpop.permute.xlu1 %3302 }
 0x38d   :  { %3471 = vst.msk [vmem:[#allocation3 + $0xb0] sm:$0xff] %vm3448_vm10, %v3301_v43  ;;  %3472 = vst.msk [vmem:[#allocation3 + $0xb8] sm:$0xff] %vm3448_vm10, %v3303_v9 }
 0x38e   :  { %2955 = vrot.lane.b32.xlu0 %v2785_v57, %s5063_s11  ;;  %v2410_v57 = vld [vmem:[#allocation2 + $0x2d0] sm:$0xff] }
 0x38f   :  { %2957 = vrot.lane.b32.xlu1 %v2786_v36, %s5063_s11 }
 0x390   :  { %v2535_v39 = vpop.permute.xlu0 %2534  ;;  %v2537_v5 = vpop.permute.xlu1 %2536 }
 0x391   :  { %2703 = vst.msk [vmem:[#allocation3 + $0xc0] sm:$0xff] %vm2678_vm8, %v2535_v39  ;;  %2704 = vst.msk [vmem:[#allocation3 + $0xc8] sm:$0xff] %vm2678_vm8, %v2537_v5  ;;  %v2795_v5 = vld [vmem:[#allocation2 + $0x2d1] sm:$0xff] }
 0x392   :  { %3340 = vrot.lane.b32.xlu0 %v3170_v25, %s5064_s14  ;;  %v2411_v25 = vld [vmem:[#allocation2 + $0x2d8] sm:$0xff] }
 0x393   :  { %3342 = vrot.lane.b32.xlu1 %v3171_v0, %s5064_s14 }
 0x394   :  { %v2920_v26 = vpop.permute.xlu0 %2919  ;;  %v3535_v48 = vld [vmem:[#allocation3 + $0xb0] sm:$0xff]  ;;  %v3536_v52 = vld [vmem:[#allocation3 + $0xb8] sm:$0xff] }
 0x395   :  { %v2922_v27 = vpop.permute.xlu1 %2921  ;;  %3088 = vst.msk [vmem:[#allocation3 + $0xc0] sm:$0xff] %vm3063_vm9, %v2920_v26  ;;  %4974 = vmatprep.mubr.msk.f32.mxu0 %vm3589_vm11, %v3535_v48 }
 0x396   :  { %3089 = vst.msk [vmem:[#allocation3 + $0xc8] sm:$0xff] %vm3063_vm9, %v2922_v27  ;;  %2574 = vrot.lane.b32.xlu0 %v2402_v18, %s5062_s27  ;;  %4975 = vmatmul.mubr.msk.f32.gmra.mxu0 %vm3589_vm11, %v3536_v52  ;;  %v2796_v18 = vld [vmem:[#allocation2 + $0x2d9] sm:$0xff] }
 0x397   :  { %2576 = vrot.lane.b32.xlu1 %v2403_v12, %s5062_s27  ;;  %v3180_v27 = vld [vmem:[#allocation2 + $0x2d2] sm:$0xff]  ;;  %v3181_v52 = vld [vmem:[#allocation2 + $0x2da] sm:$0xff] }
 0x398   :  { %v3305_v13 = vpop.permute.xlu0 %3304 }
 0x399   :  { %v3307_v33 = vpop.permute.xlu1 %3306  ;;  %3473 = vst.msk [vmem:[#allocation3 + $0xc0] sm:$0xff] %vm3448_vm10, %v3305_v13 }
 0x39a   :  { %3474 = vst.msk [vmem:[#allocation3 + $0xc8] sm:$0xff] %vm3448_vm10, %v3307_v33  ;;  %2959 = vrot.lane.b32.xlu0 %v2787_v61, %s5063_s11  ;;  %v2412_v61 = vld [vmem:[#allocation2 + $0x2e8] sm:$0xff] }
 0x39b   :  { %2961 = vrot.lane.b32.xlu1 %v2788_v4, %s5063_s11  ;;  %v2413_v4 = vld [vmem:[#allocation2 + $0x2f0] sm:$0xff] }
 0x39c   :  { %v2539_v24 = vpop.permute.xlu0 %2538 }
 0x39d   :  { %v2541_v50 = vpop.permute.xlu1 %2540  ;;  %2705 = vst.msk [vmem:[#allocation3 + $0xd0] sm:$0xff] %vm2678_vm8, %v2539_v24 }
 0x39e   :  { %2706 = vst.msk [vmem:[#allocation3 + $0xd8] sm:$0xff] %vm2678_vm8, %v2541_v50  ;;  %3344 = vrot.lane.b32.xlu0 %v3172_v21, %s5064_s14  ;;  %v2797_v50 = vld [vmem:[#allocation2 + $0x2e9] sm:$0xff] }
 0x39f   :  { %3346 = vrot.lane.b32.xlu1 %v3173_v55, %s5064_s14 }
 0x3a0   :  { %v2924_v45 = vpop.permute.xlu0 %2923  ;;  %v3537_v34 = vld [vmem:[#allocation3 + $0xc0] sm:$0xff] }
 0x3a1   :  { %v2926_v54 = vpop.permute.xlu1 %2925  ;;  %v3538_v6 = vld [vmem:[#allocation3 + $0xc8] sm:$0xff]  ;;  %3090 = vst.msk [vmem:[#allocation3 + $0xd0] sm:$0xff] %vm3063_vm9, %v2924_v45  ;;  %4977 = vmatprep.mubr.msk.f32.mxu0 %vm3589_vm11, %v3537_v34 }
 0x3a2   :  { %3091 = vst.msk [vmem:[#allocation3 + $0xd8] sm:$0xff] %vm3063_vm9, %v2926_v54  ;;  %2578 = vrot.lane.b32.xlu0 %v2404_v41, %s5062_s27  ;;  %4978 = vmatmul.mubr.msk.f32.gmra.mxu0 %vm3589_vm11, %v3538_v6  ;;  %v2798_v41 = vld [vmem:[#allocation2 + $0x2f1] sm:$0xff] }
 0x3a3   :  { %2580 = vrot.lane.b32.xlu1 %v2405_v31, %s5062_s27  ;;  %v3182_v54 = vld [vmem:[#allocation2 + $0x2ea] sm:$0xff]  ;;  %v3183_v6 = vld [vmem:[#allocation2 + $0x2f2] sm:$0xff] }
 0x3a4   :  { %v3309_v7 = vpop.permute.xlu0 %3308 }
 0x3a5   :  { %v3311_v37 = vpop.permute.xlu1 %3310  ;;  %3475 = vst.msk [vmem:[#allocation3 + $0xd0] sm:$0xff] %vm3448_vm10, %v3309_v7 }
 0x3a6   :  { %3476 = vst.msk [vmem:[#allocation3 + $0xd8] sm:$0xff] %vm3448_vm10, %v3311_v37  ;;  %2963 = vrot.lane.b32.xlu0 %v2789_v17, %s5063_s11  ;;  %v2414_v17 = vld [vmem:[#allocation2 + $0x300] sm:$0xff] }
 0x3a7   :  { %2965 = vrot.lane.b32.xlu1 %v2790_v11, %s5063_s11  ;;  %v2415_v11 = vld [vmem:[#allocation2 + $0x308] sm:$0xff] }
 0x3a8   :  { %v2543_v46 = vpop.permute.xlu0 %2542 }
 0x3a9   :  { %v2545_v1 = vpop.permute.xlu1 %2544  ;;  %2707 = vst.msk [vmem:[#allocation3 + $0xe0] sm:$0xff] %vm2678_vm8, %v2543_v46 }
 0x3aa   :  { %2708 = vst.msk [vmem:[#allocation3 + $0xe8] sm:$0xff] %vm2678_vm8, %v2545_v1  ;;  %3348 = vrot.lane.b32.xlu0 %v3174_v49, %s5064_s14  ;;  %v2799_v1 = vld [vmem:[#allocation2 + $0x301] sm:$0xff] }
 0x3ab   :  { %3350 = vrot.lane.b32.xlu1 %v3175_v29, %s5064_s14 }
 0x3ac   :  { %v2928_v32 = vpop.permute.xlu0 %2927  ;;  %v3539_v62 = vld [vmem:[#allocation3 + $0xd0] sm:$0xff] }
 0x3ad   :  { %v2930_v35 = vpop.permute.xlu1 %2929  ;;  %v3540_v28 = vld [vmem:[#allocation3 + $0xd8] sm:$0xff]  ;;  %3092 = vst.msk [vmem:[#allocation3 + $0xe0] sm:$0xff] %vm3063_vm9, %v2928_v32  ;;  %4980 = vmatprep.mubr.msk.f32.mxu0 %vm3589_vm11, %v3539_v62 }
 0x3ae   :  { %3093 = vst.msk [vmem:[#allocation3 + $0xe8] sm:$0xff] %vm3063_vm9, %v2930_v35  ;;  %2582 = vrot.lane.b32.xlu0 %v2406_v44, %s5062_s27  ;;  %4981 = vmatmul.mubr.msk.f32.gmra.mxu0 %vm3589_vm11, %v3540_v28  ;;  %v2800_v44 = vld [vmem:[#allocation2 + $0x309] sm:$0xff] }
 0x3af   :  { %2584 = vrot.lane.b32.xlu1 %v2407_v63, %s5062_s27  ;;  %v3184_v35 = vld [vmem:[#allocation2 + $0x302] sm:$0xff]  ;;  %v3185_v28 = vld [vmem:[#allocation2 + $0x30a] sm:$0xff] }
 0x3b0   :  { %v3313_v40 = vpop.permute.xlu0 %3312 }
 0x3b1   :  { %v3315_v58 = vpop.permute.xlu1 %3314  ;;  %3477 = vst.msk [vmem:[#allocation3 + $0xe0] sm:$0xff] %vm3448_vm10, %v3313_v40 }
 0x3b2   :  { %3478 = vst.msk [vmem:[#allocation3 + $0xe8] sm:$0xff] %vm3448_vm10, %v3315_v58  ;;  %2967 = vrot.lane.b32.xlu0 %v2791_v38, %s5063_s11  ;;  %v2416_v38 = vld [vmem:[#allocation2 + $0x318] sm:$0xff] }
 0x3b3   :  { %2969 = vrot.lane.b32.xlu1 %v2792_v53, %s5063_s11  ;;  %v2417_v53 = vld [vmem:[#allocation2 + $0x320] sm:$0xff] }
 0x3b4   :  { %v2547_v8 = vpop.permute.xlu0 %2546 }
 0x3b5   :  { %v2549_v51 = vpop.permute.xlu1 %2548  ;;  %2709 = vst.msk [vmem:[#allocation3 + $0xf0] sm:$0xff] %vm2678_vm8, %v2547_v8 }
 0x3b6   :  { %2710 = vst.msk [vmem:[#allocation3 + $0xf8] sm:$0xff] %vm2678_vm8, %v2549_v51  ;;  %3352 = vrot.lane.b32.xlu0 %v3176_v47, %s5064_s14  ;;  %v2801_v51 = vld [vmem:[#allocation2 + $0x319] sm:$0xff] }
 0x3b7   :  { %3354 = vrot.lane.b32.xlu1 %v3177_v14, %s5064_s14 }
 0x3b8   :  { %v2932_v56 = vpop.permute.xlu0 %2931  ;;  %v3541_v3 = vld [vmem:[#allocation3 + $0xe0] sm:$0xff] }
 0x3b9   :  { %v2934_v10 = vpop.permute.xlu1 %2933  ;;  %v3542_v60 = vld [vmem:[#allocation3 + $0xe8] sm:$0xff]  ;;  %3094 = vst.msk [vmem:[#allocation3 + $0xf0] sm:$0xff] %vm3063_vm9, %v2932_v56  ;;  %4983 = vmatprep.mubr.msk.f32.mxu0 %vm3589_vm11, %v3541_v3 }
 0x3ba   :  { %3095 = vst.msk [vmem:[#allocation3 + $0xf8] sm:$0xff] %vm3063_vm9, %v2934_v10  ;;  %2586 = vrot.lane.b32.xlu0 %v2408_v2, %s5062_s27  ;;  %4984 = vmatmul.mubr.msk.f32.gmra.mxu0 %vm3589_vm11, %v3542_v60  ;;  %v2802_v2 = vld [vmem:[#allocation2 + $0x321] sm:$0xff] }
 0x3bb   :  { %2588 = vrot.lane.b32.xlu1 %v2409_v20, %s5062_s27  ;;  %v3186_v10 = vld [vmem:[#allocation2 + $0x31a] sm:$0xff]  ;;  %v3187_v60 = vld [vmem:[#allocation2 + $0x322] sm:$0xff] }
 0x3bc   :  { %v3317_v16 = vpop.permute.xlu0 %3316 }
 0x3bd   :  { %v3319_v23 = vpop.permute.xlu1 %3318  ;;  %3479 = vst.msk [vmem:[#allocation3 + $0xf0] sm:$0xff] %vm3448_vm10, %v3317_v16 }
 0x3be   :  { %3480 = vst.msk [vmem:[#allocation3 + $0xf8] sm:$0xff] %vm3448_vm10, %v3319_v23  ;;  %2971 = vrot.lane.b32.xlu0 %v2793_v15, %s5063_s11  ;;  %v2418_v15 = vld [vmem:[#allocation2 + $0x330] sm:$0xff] }
 0x3bf   :  { %2973 = vrot.lane.b32.xlu1 %v2794_v22, %s5063_s11  ;;  %v2419_v22 = vld [vmem:[#allocation2 + $0x338] sm:$0xff] }
 0x3c0   :  { %v2551_v19 = vpop.permute.xlu0 %2550 }
 0x3c1   :  { %2711 = vst.msk [vmem:[#allocation3 + $0x100] sm:$0xff] %vm2678_vm8, %v2551_v19  ;;  %v2553_v30 = vpop.permute.xlu1 %2552 }
 0x3c2   :  { %2712 = vst.msk [vmem:[#allocation3 + $0x108] sm:$0xff] %vm2678_vm8, %v2553_v30  ;;  %3356 = vrot.lane.b32.xlu0 %v3178_v59, %s5064_s14 }
 0x3c3   :  { %3358 = vrot.lane.b32.xlu1 %v3179_v42, %s5064_s14  ;;  %v2803_v42 = vld [vmem:[#allocation2 + $0x331] sm:$0xff] }
 0x3c4   :  { %v2936_v43 = vpop.permute.xlu0 %2935  ;;  %v3543_v9 = vld [vmem:[#allocation3 + $0xf0] sm:$0xff] }
 0x3c5   :  { %v3544_v36 = vld [vmem:[#allocation3 + $0xf8] sm:$0xff]  ;;  %3096 = vst.msk [vmem:[#allocation3 + $0x100] sm:$0xff] %vm3063_vm9, %v2936_v43  ;;  %v2938_v39 = vpop.permute.xlu1 %2937  ;;  %4986 = vmatprep.mubr.msk.f32.mxu0 %vm3589_vm11, %v3543_v9 }
 0x3c6   :  { %3097 = vst.msk [vmem:[#allocation3 + $0x108] sm:$0xff] %vm3063_vm9, %v2938_v39  ;;  %2590 = vrot.lane.b32.xlu0 %v2410_v57, %s5062_s27  ;;  %4987 = vmatmul.mubr.msk.f32.gmra.mxu0 %vm3589_vm11, %v3544_v36  ;;  %v2804_v57 = vld [vmem:[#allocation2 + $0x339] sm:$0xff] }
 0x3c7   :  { %2592 = vrot.lane.b32.xlu1 %v2411_v25, %s5062_s27  ;;  %v3188_v9 = vld [vmem:[#allocation2 + $0x332] sm:$0xff]  ;;  %v3189_v25 = vld [vmem:[#allocation2 + $0x33a] sm:$0xff] }
 0x3c8   :  { %v3321_v0 = vpop.permute.xlu0 %3320 }
 0x3c9   :  { %3481 = vst.msk [vmem:[#allocation3 + $0x100] sm:$0xff] %vm3448_vm10, %v3321_v0  ;;  %v3323_v26 = vpop.permute.xlu1 %3322 }
 0x3ca   :  { %3482 = vst.msk [vmem:[#allocation3 + $0x108] sm:$0xff] %vm3448_vm10, %v3323_v26  ;;  %2975 = vrot.lane.b32.xlu0 %v2795_v5, %s5063_s11  ;;  %v2420_v5 = vld [vmem:[#allocation2 + $0x348] sm:$0xff]  ;;  %v2421_v26 = vld [vmem:[#allocation2 + $0x350] sm:$0xff] }
 0x3cb   :  { %2977 = vrot.lane.b32.xlu1 %v2796_v18, %s5063_s11 }
 0x3cc   :  { %v2555_v48 = vpop.permute.xlu0 %2554 }
 0x3cd   :  { %2713 = vst.msk [vmem:[#allocation3 + $0x110] sm:$0xff] %vm2678_vm8, %v2555_v48  ;;  %v2557_v12 = vpop.permute.xlu1 %2556 }
 0x3ce   :  { %2714 = vst.msk [vmem:[#allocation3 + $0x118] sm:$0xff] %vm2678_vm8, %v2557_v12  ;;  %3360 = vrot.lane.b32.xlu0 %v3180_v27, %s5064_s14 }
 0x3cf   :  { %3362 = vrot.lane.b32.xlu1 %v3181_v52, %s5064_s14  ;;  %v2805_v52 = vld [vmem:[#allocation2 + $0x349] sm:$0xff] }
 0x3d0   :  { %v2940_v13 = vpop.permute.xlu0 %2939  ;;  %v3545_v33 = vld [vmem:[#allocation3 + $0x100] sm:$0xff] }
 0x3d1   :  { %3098 = vst.msk [vmem:[#allocation3 + $0x110] sm:$0xff] %vm3063_vm9, %v2940_v13  ;;  %v2942_v21 = vpop.permute.xlu1 %2941  ;;  %4989 = vmatprep.mubr.msk.f32.mxu1 %vm3589_vm11, %v3545_v33  ;;  %v3546_v24 = vld [vmem:[#allocation3 + $0x108] sm:$0xff] }
 0x3d2   :  { %3099 = vst.msk [vmem:[#allocation3 + $0x118] sm:$0xff] %vm3063_vm9, %v2942_v21  ;;  %2594 = vrot.lane.b32.xlu0 %v2412_v61, %s5062_s27  ;;  %4990 = vmatmul.mubr.msk.f32.vlgmr.msra.gmra.mxu1 %vm3589_vm11, %v3546_v24  ;;  %v2806_v61 = vld [vmem:[#allocation2 + $0x351] sm:$0xff] }
 0x3d3   :  { %2596 = vrot.lane.b32.xlu1 %v2413_v4, %s5062_s27  ;;  %v3190_v33 = vld [vmem:[#allocation2 + $0x34a] sm:$0xff]  ;;  %v3191_v21 = vld [vmem:[#allocation2 + $0x352] sm:$0xff] }
 0x3d4   :  { %v3325_v55 = vpop.permute.xlu0 %3324 }
 0x3d5   :  { %3483 = vst.msk [vmem:[#allocation3 + $0x110] sm:$0xff] %vm3448_vm10, %v3325_v55  ;;  %v3327_v45 = vpop.permute.xlu1 %3326 }
 0x3d6   :  { %3484 = vst.msk [vmem:[#allocation3 + $0x118] sm:$0xff] %vm3448_vm10, %v3327_v45  ;;  %2979 = vrot.lane.b32.xlu0 %v2797_v50, %s5063_s11 }
 0x3d7   :  { %2981 = vrot.lane.b32.xlu1 %v2798_v41, %s5063_s11 }
 0x3d8   :  { %v2559_v34 = vpop.permute.xlu0 %2558 }
 0x3d9   :  { %2715 = vst.msk [vmem:[#allocation3 + $0x120] sm:$0xff] %vm2678_vm8, %v2559_v34  ;;  %v2561_v31 = vpop.permute.xlu1 %2560 }
 0x3da   :  { %2716 = vst.msk [vmem:[#allocation3 + $0x128] sm:$0xff] %vm2678_vm8, %v2561_v31  ;;  %3364 = vrot.lane.b32.xlu0 %v3182_v54, %s5064_s14 }
 0x3db   :  { %3366 = vrot.lane.b32.xlu1 %v3183_v6, %s5064_s14 }
 0x3dc   :  { %v2944_v7 = vpop.permute.xlu0 %2943  ;;  %v3547_v37 = vld [vmem:[#allocation3 + $0x110] sm:$0xff] }
 0x3dd   :  { %3100 = vst.msk [vmem:[#allocation3 + $0x120] sm:$0xff] %vm3063_vm9, %v2944_v7  ;;  %v2946_v49 = vpop.permute.xlu1 %2945  ;;  %4992 = vmatprep.mubr.msk.f32.mxu1 %vm3589_vm11, %v3547_v37  ;;  %v3548_v46 = vld [vmem:[#allocation3 + $0x118] sm:$0xff] }
 0x3de   :  { %3101 = vst.msk [vmem:[#allocation3 + $0x128] sm:$0xff] %vm3063_vm9, %v2946_v49  ;;  %2598 = vrot.lane.b32.xlu0 %v2414_v17, %s5062_s27  ;;  %4993 = vmatmul.mubr.msk.f32.gmra.mxu1 %vm3589_vm11, %v3548_v46 }
 0x3df   :  { %2600 = vrot.lane.b32.xlu1 %v2415_v11, %s5062_s27 }
 0x3e0   :  { %v3329_v29 = vpop.permute.xlu0 %3328 }
 0x3e1   :  { %3485 = vst.msk [vmem:[#allocation3 + $0x120] sm:$0xff] %vm3448_vm10, %v3329_v29  ;;  %v3331_v32 = vpop.permute.xlu1 %3330 }
 0x3e2   :  { %3486 = vst.msk [vmem:[#allocation3 + $0x128] sm:$0xff] %vm3448_vm10, %v3331_v32  ;;  %2983 = vrot.lane.b32.xlu0 %v2799_v1, %s5063_s11 }
 0x3e3   :  { %2985 = vrot.lane.b32.xlu1 %v2800_v44, %s5063_s11 }
 0x3e4   :  { %v2563_v62 = vpop.permute.xlu0 %2562 }
 0x3e5   :  { %2717 = vst.msk [vmem:[#allocation3 + $0x130] sm:$0xff] %vm2678_vm8, %v2563_v62  ;;  %v2565_v63 = vpop.permute.xlu1 %2564 }
 0x3e6   :  { %2718 = vst.msk [vmem:[#allocation3 + $0x138] sm:$0xff] %vm2678_vm8, %v2565_v63  ;;  %3368 = vrot.lane.b32.xlu0 %v3184_v35, %s5064_s14 }
 0x3e7   :  { %3370 = vrot.lane.b32.xlu1 %v3185_v28, %s5064_s14 }
 0x3e8   :  { %v2948_v40 = vpop.permute.xlu0 %2947  ;;  %v3549_v58 = vld [vmem:[#allocation3 + $0x120] sm:$0xff] }
 0x3e9   :  { %3102 = vst.msk [vmem:[#allocation3 + $0x130] sm:$0xff] %vm3063_vm9, %v2948_v40  ;;  %v2950_v47 = vpop.permute.xlu1 %2949  ;;  %4995 = vmatprep.mubr.msk.f32.mxu1 %vm3589_vm11, %v3549_v58  ;;  %v3550_v8 = vld [vmem:[#allocation3 + $0x128] sm:$0xff] }
 0x3ea   :  { %3103 = vst.msk [vmem:[#allocation3 + $0x138] sm:$0xff] %vm3063_vm9, %v2950_v47  ;;  %2602 = vrot.lane.b32.xlu0 %v2416_v38, %s5062_s27  ;;  %4996 = vmatmul.mubr.msk.f32.gmra.mxu1 %vm3589_vm11, %v3550_v8 }
 0x3eb   :  { %2604 = vrot.lane.b32.xlu1 %v2417_v53, %s5062_s27 }
 0x3ec   :  { %v3333_v14 = vpop.permute.xlu0 %3332 }
 0x3ed   :  { %3487 = vst.msk [vmem:[#allocation3 + $0x130] sm:$0xff] %vm3448_vm10, %v3333_v14  ;;  %v3335_v56 = vpop.permute.xlu1 %3334 }
 0x3ee   :  { %3488 = vst.msk [vmem:[#allocation3 + $0x138] sm:$0xff] %vm3448_vm10, %v3335_v56  ;;  %2987 = vrot.lane.b32.xlu0 %v2801_v51, %s5063_s11 }
 0x3ef   :  { %2989 = vrot.lane.b32.xlu1 %v2802_v2, %s5063_s11 }
 0x3f0   :  { %v2567_v3 = vpop.permute.xlu0 %2566 }
 0x3f1   :  { %2719 = vst.msk [vmem:[#allocation3 + $0x140] sm:$0xff] %vm2678_vm8, %v2567_v3  ;;  %v2569_v20 = vpop.permute.xlu1 %2568 }
 0x3f2   :  { %2720 = vst.msk [vmem:[#allocation3 + $0x148] sm:$0xff] %vm2678_vm8, %v2569_v20  ;;  %3372 = vrot.lane.b32.xlu0 %v3186_v10, %s5064_s14 }
 0x3f3   :  { %3374 = vrot.lane.b32.xlu1 %v3187_v60, %s5064_s14 }
 0x3f4   :  { %v2952_v16 = vpop.permute.xlu0 %2951  ;;  %v3551_v23 = vld [vmem:[#allocation3 + $0x130] sm:$0xff] }
 0x3f5   :  { %3104 = vst.msk [vmem:[#allocation3 + $0x140] sm:$0xff] %vm3063_vm9, %v2952_v16  ;;  %v2954_v59 = vpop.permute.xlu1 %2953  ;;  %4998 = vmatprep.mubr.msk.f32.mxu1 %vm3589_vm11, %v3551_v23  ;;  %v3552_v19 = vld [vmem:[#allocation3 + $0x138] sm:$0xff] }
 0x3f6   :  { %3105 = vst.msk [vmem:[#allocation3 + $0x148] sm:$0xff] %vm3063_vm9, %v2954_v59  ;;  %2606 = vrot.lane.b32.xlu0 %v2418_v15, %s5062_s27  ;;  %4999 = vmatmul.mubr.msk.f32.gmra.mxu1 %vm3589_vm11, %v3552_v19 }
 0x3f7   :  { %2608 = vrot.lane.b32.xlu1 %v2419_v22, %s5062_s27 }
 0x3f8   :  { %v3337_v30 = vpop.permute.xlu0 %3336 }
 0x3f9   :  { %3489 = vst.msk [vmem:[#allocation3 + $0x140] sm:$0xff] %vm3448_vm10, %v3337_v30  ;;  %v3339_v43 = vpop.permute.xlu1 %3338 }
 0x3fa   :  { %3490 = vst.msk [vmem:[#allocation3 + $0x148] sm:$0xff] %vm3448_vm10, %v3339_v43  ;;  %2991 = vrot.lane.b32.xlu0 %v2803_v42, %s5063_s11 }
 0x3fb   :  { %2993 = vrot.lane.b32.xlu1 %v2804_v57, %s5063_s11 }
 0x3fc   :  { %v2571_v36 = vpop.permute.xlu0 %2570 }
 0x3fd   :  { %2721 = vst.msk [vmem:[#allocation3 + $0x150] sm:$0xff] %vm2678_vm8, %v2571_v36  ;;  %v2573_v39 = vpop.permute.xlu1 %2572 }
 0x3fe   :  { %2722 = vst.msk [vmem:[#allocation3 + $0x158] sm:$0xff] %vm2678_vm8, %v2573_v39  ;;  %3376 = vrot.lane.b32.xlu0 %v3188_v9, %s5064_s14 }
 0x3ff   :  { %3378 = vrot.lane.b32.xlu1 %v3189_v25, %s5064_s14 }
 0x400   :  { %v2956_v0 = vpop.permute.xlu0 %2955  ;;  %v3553_v18 = vld [vmem:[#allocation3 + $0x140] sm:$0xff] }
 0x401   :  { %3106 = vst.msk [vmem:[#allocation3 + $0x150] sm:$0xff] %vm3063_vm9, %v2956_v0  ;;  %v2958_v27 = vpop.permute.xlu1 %2957  ;;  %5001 = vmatprep.mubr.msk.f32.mxu1 %vm3589_vm11, %v3553_v18  ;;  %v3554_v48 = vld [vmem:[#allocation3 + $0x148] sm:$0xff] }
 0x402   :  { %3107 = vst.msk [vmem:[#allocation3 + $0x158] sm:$0xff] %vm3063_vm9, %v2958_v27  ;;  %2610 = vrot.lane.b32.xlu0 %v2420_v5, %s5062_s27  ;;  %5002 = vmatmul.mubr.msk.f32.gmra.mxu1 %vm3589_vm11, %v3554_v48 }
 0x403   :  { %2612 = vrot.lane.b32.xlu1 %v2421_v26, %s5062_s27 }
 0x404   :  { %v3341_v12 = vpop.permute.xlu0 %3340 }
 0x405   :  { %3491 = vst.msk [vmem:[#allocation3 + $0x150] sm:$0xff] %vm3448_vm10, %v3341_v12  ;;  %v3343_v13 = vpop.permute.xlu1 %3342 }
 0x406   :  { %3492 = vst.msk [vmem:[#allocation3 + $0x158] sm:$0xff] %vm3448_vm10, %v3343_v13  ;;  %2995 = vrot.lane.b32.xlu0 %v2805_v52, %s5063_s11 }
 0x407   :  { %2997 = vrot.lane.b32.xlu1 %v2806_v61, %s5063_s11 }
 0x408   :  { %v2575_v4 = vpop.permute.xlu0 %2574 }
 0x409   :  { %2723 = vst.msk [vmem:[#allocation3 + $0x160] sm:$0xff] %vm2678_vm8, %v2575_v4  ;;  %v2577_v24 = vpop.permute.xlu1 %2576 }
 0x40a   :  { %2724 = vst.msk [vmem:[#allocation3 + $0x168] sm:$0xff] %vm2678_vm8, %v2577_v24  ;;  %3380 = vrot.lane.b32.xlu0 %v3190_v33, %s5064_s14 }
 0x40b   :  { %3382 = vrot.lane.b32.xlu1 %v3191_v21, %s5064_s14 }
 0x40c   :  { %v2960_v50 = vpop.permute.xlu0 %2959  ;;  %v3555_v55 = vld [vmem:[#allocation3 + $0x150] sm:$0xff] }
 0x40d   :  { %3108 = vst.msk [vmem:[#allocation3 + $0x160] sm:$0xff] %vm3063_vm9, %v2960_v50  ;;  %v2962_v41 = vpop.permute.xlu1 %2961  ;;  %5004 = vmatprep.mubr.msk.f32.mxu1 %vm3589_vm11, %v3555_v55  ;;  %v3556_v45 = vld [vmem:[#allocation3 + $0x158] sm:$0xff] }
 0x40e   :  { %3109 = vst.msk [vmem:[#allocation3 + $0x168] sm:$0xff] %vm3063_vm9, %v2962_v41  ;;  %5005 = vmatmul.mubr.msk.f32.gmra.mxu1 %vm3589_vm11, %v3556_v45 }
 0x410   :  { %v3345_v54 = vpop.permute.xlu0 %3344 }
 0x411   :  { %3493 = vst.msk [vmem:[#allocation3 + $0x160] sm:$0xff] %vm3448_vm10, %v3345_v54  ;;  %v3347_v34 = vpop.permute.xlu1 %3346 }
 0x412   :  { %3494 = vst.msk [vmem:[#allocation3 + $0x168] sm:$0xff] %vm3448_vm10, %v3347_v34 }
 0x414   :  { %v2579_v6 = vpop.permute.xlu0 %2578 }
 0x415   :  { %2725 = vst.msk [vmem:[#allocation3 + $0x170] sm:$0xff] %vm2678_vm8, %v2579_v6  ;;  %v2581_v31 = vpop.permute.xlu1 %2580 }
 0x416   :  { %2726 = vst.msk [vmem:[#allocation3 + $0x178] sm:$0xff] %vm2678_vm8, %v2581_v31 }
 0x418   :  { %v2964_v17 = vpop.permute.xlu0 %2963  ;;  %v3557_v7 = vld [vmem:[#allocation3 + $0x160] sm:$0xff] }
 0x419   :  { %3110 = vst.msk [vmem:[#allocation3 + $0x170] sm:$0xff] %vm3063_vm9, %v2964_v17  ;;  %v2966_v37 = vpop.permute.xlu1 %2965  ;;  %5007 = vmatprep.mubr.msk.f32.mxu1 %vm3589_vm11, %v3557_v7  ;;  %v3558_v11 = vld [vmem:[#allocation3 + $0x168] sm:$0xff] }
 0x41a   :  { %3111 = vst.msk [vmem:[#allocation3 + $0x178] sm:$0xff] %vm3063_vm9, %v2966_v37  ;;  %5008 = vmatmul.mubr.msk.f32.gmra.mxu1 %vm3589_vm11, %v3558_v11 }
 0x41c   :  { %v3349_v49 = vpop.permute.xlu0 %3348 }
 0x41d   :  { %3495 = vst.msk [vmem:[#allocation3 + $0x170] sm:$0xff] %vm3448_vm10, %v3349_v49  ;;  %v3351_v46 = vpop.permute.xlu1 %3350 }
 0x41e   :  { %3496 = vst.msk [vmem:[#allocation3 + $0x178] sm:$0xff] %vm3448_vm10, %v3351_v46 }
 0x420   :  { %v2583_v1 = vpop.permute.xlu0 %2582 }
 0x421   :  { %2727 = vst.msk [vmem:[#allocation3 + $0x180] sm:$0xff] %vm2678_vm8, %v2583_v1  ;;  %v2585_v29 = vpop.permute.xlu1 %2584  ;;  %v4943_v1 = vpop.f32.mrf.mxu0 }
 0x422   :  { %2728 = vst.msk [vmem:[#allocation3 + $0x188] sm:$0xff] %vm2678_vm8, %v2585_v29 }
 0x424   :  { %v2968_v44 = vpop.permute.xlu0 %2967  ;;  %v3559_v32 = vld [vmem:[#allocation3 + $0x170] sm:$0xff] }
 0x425   :  { %3112 = vst.msk [vmem:[#allocation3 + $0x180] sm:$0xff] %vm3063_vm9, %v2968_v44  ;;  %v2970_v35 = vpop.permute.xlu1 %2969  ;;  %5010 = vmatprep.mubr.msk.f32.mxu1 %vm3589_vm11, %v3559_v32  ;;  %v3560_v62 = vld [vmem:[#allocation3 + $0x178] sm:$0xff]  ;;  %v3852_v32 = vpop.f32.mrf.mxu0 }
 0x426   :  { %3113 = vst.msk [vmem:[#allocation3 + $0x188] sm:$0xff] %vm3063_vm9, %v2970_v35  ;;  %5011 = vmatmul.mubr.msk.f32.gmra.mxu1 %vm3589_vm11, %v3560_v62  ;;  %v6929_v62 = vld [vmem:[%s7767_s2] ss:$0 sm:$0xff] }
 0x427   :  { %v4946_v35 = vpop.f32.mrf.mxu0 }
 0x428   :  { %v3353_v28 = vpop.permute.xlu0 %3352 }
 0x429   :  { %3497 = vst.msk [vmem:[#allocation3 + $0x180] sm:$0xff] %vm3448_vm10, %v3353_v28  ;;  %v3355_v63 = vpop.permute.xlu1 %3354  ;;  %v3862_v28 = vpop.f32.mrf.mxu0 }
 0x42a   :  { %3498 = vst.msk [vmem:[#allocation3 + $0x188] sm:$0xff] %vm3448_vm10, %v3355_v63  ;;  %v6932_v63 = vadd.f32 %v6929_v62, %v3852_v32 }
 0x42c   :  { %v2587_v38 = vpop.permute.xlu0 %2586 }
 0x42d   :  { %2729 = vst.msk [vmem:[#allocation3 + $0x190] sm:$0xff] %vm2678_vm8, %v2587_v38  ;;  %v2589_v40 = vpop.permute.xlu1 %2588  ;;  %v4949_v38 = vpop.f32.mrf.mxu0 }
 0x42e   :  { %2730 = vst.msk [vmem:[#allocation3 + $0x198] sm:$0xff] %vm2678_vm8, %v2589_v40  ;;  %v6935_v40 = vadd.f32 %v4943_v1, %v6929_v62 }
 0x430   :  { %v2972_v58 = vpop.permute.xlu0 %2971  ;;  %v3561_v53 = vld [vmem:[#allocation3 + $0x180] sm:$0xff] }
 0x431   :  { %3114 = vst.msk [vmem:[#allocation3 + $0x190] sm:$0xff] %vm3063_vm9, %v2972_v58  ;;  %v2974_v47 = vpop.permute.xlu1 %2973  ;;  %5013 = vmatprep.mubr.msk.f32.mxu1 %vm3589_vm11, %v3561_v53  ;;  %v3562_v8 = vld [vmem:[#allocation3 + $0x188] sm:$0xff]  ;;  %v6938_v58 = vadd.f32 %v6929_v62, %v3862_v28  ;;  %v4306_v53 = vmul.f32 %v6932_v63, %v6932_v63 }
 0x432   :  { %3115 = vst.msk [vmem:[#allocation3 + $0x198] sm:$0xff] %vm3063_vm9, %v2974_v47  ;;  %5014 = vmatmul.mubr.msk.f32.gmra.mxu1 %vm3589_vm11, %v3562_v8  ;;  %v3872_v47 = vpop.f32.mrf.mxu0  ;;  %v4307_v8 = vmul.f32 %v6935_v40, %v6935_v40 }
 0x434   :  { %v3357_v51 = vpop.permute.xlu0 %3356 }
 0x435   :  { %3499 = vst.msk [vmem:[#allocation3 + $0x190] sm:$0xff] %vm3448_vm10, %v3357_v51  ;;  %v3359_v14 = vpop.permute.xlu1 %3358  ;;  %v4172_v51 = vsel %vm4171_vm12, %v6932_v63, 0.0 }
 0x436   :  { %3500 = vst.msk [vmem:[#allocation3 + $0x198] sm:$0xff] %vm3448_vm10, %v3359_v14  ;;  %v4308_v14 = vmul.f32 %v6938_v58, %v6938_v58 }
 0x438   :  { %v2591_v2 = vpop.permute.xlu0 %2590 }
 0x439   :  { %2731 = vst.msk [vmem:[#allocation3 + $0x1a0] sm:$0xff] %vm2678_vm8, %v2591_v2  ;;  %v2593_v56 = vpop.permute.xlu1 %2592  ;;  %v4173_v2 = vsel %vm4171_vm12, %v6935_v40, 0.0 }
 0x43a   :  { %2732 = vst.msk [vmem:[#allocation3 + $0x1a8] sm:$0xff] %vm2678_vm8, %v2593_v56  ;;  %v4952_v56 = vpop.f32.mrf.mxu0 }
 0x43c   :  { %v2976_v10 = vpop.permute.xlu0 %2975  ;;  %v3563_v3 = vld [vmem:[#allocation3 + $0x190] sm:$0xff] }
 0x43d   :  { %3116 = vst.msk [vmem:[#allocation3 + $0x1a0] sm:$0xff] %vm3063_vm9, %v2976_v10  ;;  %v2978_v60 = vpop.permute.xlu1 %2977  ;;  %5016 = vmatprep.mubr.msk.f32.mxu1 %vm3589_vm11, %v3563_v3  ;;  %v3564_v20 = vld [vmem:[#allocation3 + $0x198] sm:$0xff]  ;;  %v4370_v10 = vsel %vm4171_vm12, %v4306_v53, 0.0  ;;  %v6952_v3 = vadd.f32 %v4946_v35, %v6929_v62 }
 0x43e   :  { %3117 = vst.msk [vmem:[#allocation3 + $0x1a8] sm:$0xff] %vm3063_vm9, %v2978_v60  ;;  %5017 = vmatmul.mubr.msk.f32.gmra.mxu1 %vm3589_vm11, %v3564_v20  ;;  %v4175_v60 = vsel %vm4171_vm12, %v6938_v58, 0.0  ;;  %v6957_v20 = vadd.f32 %v6929_v62, %v3872_v47 }
 0x440   :  { %v3361_v15 = vpop.permute.xlu0 %3360 }
 0x441   :  { %3501 = vst.msk [vmem:[#allocation3 + $0x1a0] sm:$0xff] %vm3448_vm10, %v3361_v15  ;;  %v3363_v16 = vpop.permute.xlu1 %3362  ;;  %v4174_v15 = vadd.f32 %v4173_v2, %v4172_v51 }
 0x442   :  { %3502 = vst.msk [vmem:[#allocation3 + $0x1a8] sm:$0xff] %vm3448_vm10, %v3363_v16  ;;  %v4371_v16 = vsel %vm4171_vm12, %v4307_v8, 0.0 }
 0x444   :  { %v2595_v23 = vpop.permute.xlu0 %2594 }
 0x445   :  { %2733 = vst.msk [vmem:[#allocation3 + $0x1b0] sm:$0xff] %vm2678_vm8, %v2595_v23  ;;  %v2597_v22 = vpop.permute.xlu1 %2596  ;;  %v4373_v23 = vsel %vm4171_vm12, %v4308_v14, 0.0 }
 0x446   :  { %2734 = vst.msk [vmem:[#allocation3 + $0x1b8] sm:$0xff] %vm2678_vm8, %v2597_v22  ;;  %v4372_v22 = vadd.f32 %v4371_v16, %v4370_v10 }
 0x448   :  { %v2980_v59 = vpop.permute.xlu0 %2979  ;;  %v3565_v19 = vld [vmem:[#allocation3 + $0x1a0] sm:$0xff] }
 0x449   :  { %3118 = vst.msk [vmem:[#allocation3 + $0x1b0] sm:$0xff] %vm3063_vm9, %v2980_v59  ;;  %v2982_v42 = vpop.permute.xlu1 %2981  ;;  %5019 = vmatprep.mubr.msk.f32.mxu1 %vm3589_vm11, %v3565_v19  ;;  %v3566_v30 = vld [vmem:[#allocation3 + $0x1a8] sm:$0xff]  ;;  %v4176_v59 = vadd.f32 %v4175_v60, %v4174_v15  ;;  %v3882_v19 = vpop.f32.mrf.mxu0 }
 0x44a   :  { %3119 = vst.msk [vmem:[#allocation3 + $0x1b8] sm:$0xff] %vm3063_vm9, %v2982_v42  ;;  %5020 = vmatmul.mubr.msk.f32.gmra.mxu1 %vm3589_vm11, %v3566_v30  ;;  %v4309_v42 = vmul.f32 %v6952_v3, %v6952_v3  ;;  %v4310_v30 = vmul.f32 %v6957_v20, %v6957_v20 }
 0x44c   :  { %v3365_v57 = vpop.permute.xlu0 %3364 }
 0x44d   :  { %3503 = vst.msk [vmem:[#allocation3 + $0x1b0] sm:$0xff] %vm3448_vm10, %v3365_v57  ;;  %v3367_v43 = vpop.permute.xlu1 %3366  ;;  %v4374_v57 = vadd.f32 %v4373_v23, %v4372_v22 }
 0x44e   :  { %3504 = vst.msk [vmem:[#allocation3 + $0x1b8] sm:$0xff] %vm3448_vm10, %v3367_v43  ;;  %v4955_v43 = vpop.f32.mrf.mxu0 }
 0x450   :  { %v2599_v9 = vpop.permute.xlu0 %2598 }
 0x451   :  { %2735 = vst.msk [vmem:[#allocation3 + $0x1c0] sm:$0xff] %vm2678_vm8, %v2599_v9  ;;  %v2601_v36 = vpop.permute.xlu1 %2600  ;;  %v4177_v9 = vsel %vm4171_vm12, %v6952_v3, 0.0 }
 0x452   :  { %2736 = vst.msk [vmem:[#allocation3 + $0x1c8] sm:$0xff] %vm2678_vm8, %v2601_v36  ;;  %v6968_v36 = vadd.f32 %v4949_v38, %v6929_v62 }
 0x454   :  { %v2984_v25 = vpop.permute.xlu0 %2983  ;;  %v3567_v39 = vld [vmem:[#allocation3 + $0x1b0] sm:$0xff]  ;;  %7795 = vst [vmem:[#allocation4_spill] sm:$0xff] %v6968_v36 }
 0x455   :  { %3120 = vst.msk [vmem:[#allocation3 + $0x1c0] sm:$0xff] %vm3063_vm9, %v2984_v25  ;;  %v2986_v5 = vpop.permute.xlu1 %2985  ;;  %5022 = vmatprep.mubr.msk.f32.mxu1 %vm3589_vm11, %v3567_v39  ;;  %v3568_v0 = vld [vmem:[#allocation3 + $0x1b8] sm:$0xff]  ;;  %v4179_v25 = vsel %vm4171_vm12, %v6957_v20, 0.0  ;;  %v6973_v39 = vadd.f32 %v6929_v62, %v3882_v19 }
 0x456   :  { %3121 = vst.msk [vmem:[#allocation3 + $0x1c8] sm:$0xff] %vm3063_vm9, %v2986_v5  ;;  %5023 = vmatmul.mubr.msk.f32.gmra.mxu1 %vm3589_vm11, %v3568_v0  ;;  %v4178_v5 = vadd.f32 %v4177_v9, %v4176_v59  ;;  %v4375_v0 = vsel %vm4171_vm12, %v4309_v42, 0.0 }
 0x457   :  { %7796 = vst [vmem:[#allocation5_spill] sm:$0xff] %v6973_v39 }
 0x458   :  { %v3369_v18 = vpop.permute.xlu0 %3368 }
 0x459   :  { %3505 = vst.msk [vmem:[#allocation3 + $0x1c0] sm:$0xff] %vm3448_vm10, %v3369_v18  ;;  %v3371_v26 = vpop.permute.xlu1 %3370  ;;  %v4377_v18 = vsel %vm4171_vm12, %v4310_v30, 0.0 }
 0x45a   :  { %3506 = vst.msk [vmem:[#allocation3 + $0x1c8] sm:$0xff] %vm3448_vm10, %v3371_v26  ;;  %v4376_v26 = vadd.f32 %v4375_v0, %v4374_v57 }
 0x45c   :  { %v2603_v27 = vpop.permute.xlu0 %2602 }
 0x45d   :  { %2737 = vst.msk [vmem:[#allocation3 + $0x1d0] sm:$0xff] %vm2678_vm8, %v2603_v27  ;;  %v2605_v48 = vpop.permute.xlu1 %2604  ;;  %v4180_v27 = vadd.f32 %v4179_v25, %v4178_v5 }
 0x45e   :  { %2738 = vst.msk [vmem:[#allocation3 + $0x1d8] sm:$0xff] %vm2678_vm8, %v2605_v48  ;;  %v3892_v48 = vpop.f32.mrf.mxu0 }
 0x460   :  { %v2988_v52 = vpop.permute.xlu0 %2987  ;;  %v3569_v12 = vld [vmem:[#allocation3 + $0x1c0] sm:$0xff] }
 0x461   :  { %3122 = vst.msk [vmem:[#allocation3 + $0x1d0] sm:$0xff] %vm3063_vm9, %v2988_v52  ;;  %v2990_v61 = vpop.permute.xlu1 %2989  ;;  %5025 = vmatprep.mubr.msk.f32.mxu1 %vm3589_vm11, %v3569_v12  ;;  %v3570_v13 = vld [vmem:[#allocation3 + $0x1c8] sm:$0xff]  ;;  %v4311_v52 = vmul.f32 %v6968_v36, %v6968_v36  ;;  %v4312_v12 = vmul.f32 %v6973_v39, %v6973_v39 }
 0x462   :  { %3123 = vst.msk [vmem:[#allocation3 + $0x1d8] sm:$0xff] %vm3063_vm9, %v2990_v61  ;;  %5026 = vmatmul.mubr.msk.f32.gmra.mxu1 %vm3589_vm11, %v3570_v13  ;;  %v4378_v61 = vadd.f32 %v4377_v18, %v4376_v26  ;;  %v4958_v13 = vpop.f32.mrf.mxu0 }
 0x463   :  { %v7016_v14 = vadd.f32 %v4958_v13, %v6929_v62 }
 0x464   :  { %v3373_v33 = vpop.permute.xlu0 %3372 }
 0x465   :  { %3507 = vst.msk [vmem:[#allocation3 + $0x1d0] sm:$0xff] %vm3448_vm10, %v3373_v33  ;;  %v3375_v4 = vpop.permute.xlu1 %3374  ;;  %v4181_v33 = vsel %vm4171_vm12, %v6968_v36, 0.0  ;;  %7801 = vst [vmem:[#allocation10_spill] sm:$0xff] %v7016_v14  ;;  %v4317_v59 = vmul.f32 %v7016_v14, %v7016_v14  ;;  %v4193_v57 = vsel %vm4171_vm12, %v7016_v14, 0.0 }
 0x466   :  { %3508 = vst.msk [vmem:[#allocation3 + $0x1d8] sm:$0xff] %vm3448_vm10, %v3375_v4  ;;  %v6984_v4 = vadd.f32 %v4952_v56, %v6929_v62 }
 0x467   :  { %v4391_v0 = vsel %vm4171_vm12, %v4317_v59, 0.0 }
 0x468   :  { %v2607_v21 = vpop.permute.xlu0 %2606  ;;  %7797 = vst [vmem:[#allocation6_spill] sm:$0xff] %v6984_v4 }
 0x469   :  { %2739 = vst.msk [vmem:[#allocation3 + $0x1e0] sm:$0xff] %vm2678_vm8, %v2607_v21  ;;  %v2609_v24 = vpop.permute.xlu1 %2608  ;;  %v4183_v21 = vsel %vm4171_vm12, %v6973_v39, 0.0 }
 0x46a   :  { %2740 = vst.msk [vmem:[#allocation3 + $0x1e8] sm:$0xff] %vm2678_vm8, %v2609_v24  ;;  %v6989_v24 = vadd.f32 %v6929_v62, %v3892_v48 }
 0x46c   :  { %v2992_v50 = vpop.permute.xlu0 %2991  ;;  %v3571_v55 = vld [vmem:[#allocation3 + $0x1d0] sm:$0xff]  ;;  %7798 = vst [vmem:[#allocation7_spill] sm:$0xff] %v6989_v24 }
 0x46d   :  { %3124 = vst.msk [vmem:[#allocation3 + $0x1e0] sm:$0xff] %vm3063_vm9, %v2992_v50  ;;  %v2994_v41 = vpop.permute.xlu1 %2993  ;;  %5028 = vmatprep.mubr.msk.f32.mxu1 %vm3589_vm11, %v3571_v55  ;;  %v3572_v45 = vld [vmem:[#allocation3 + $0x1d8] sm:$0xff]  ;;  %v4182_v50 = vadd.f32 %v4181_v33, %v4180_v27  ;;  %v4379_v55 = vsel %vm4171_vm12, %v4311_v52, 0.0 }
 0x46e   :  { %3125 = vst.msk [vmem:[#allocation3 + $0x1e8] sm:$0xff] %vm3063_vm9, %v2994_v41  ;;  %5029 = vmatmul.mubr.msk.f32.gmra.mxu1 %vm3589_vm11, %v3572_v45  ;;  %v4381_v41 = vsel %vm4171_vm12, %v4312_v12, 0.0 }
 0x46f   :  { %v4184_v45 = vadd.f32 %v4183_v21, %v4182_v50 }
 0x470   :  { %v3377_v54 = vpop.permute.xlu0 %3376 }
 0x471   :  { %3509 = vst.msk [vmem:[#allocation3 + $0x1e0] sm:$0xff] %vm3448_vm10, %v3377_v54  ;;  %v3379_v34 = vpop.permute.xlu1 %3378  ;;  %v4380_v54 = vadd.f32 %v4379_v55, %v4378_v61 }
 0x472   :  { %3510 = vst.msk [vmem:[#allocation3 + $0x1e8] sm:$0xff] %vm3448_vm10, %v3379_v34  ;;  %v3902_v34 = vpop.f32.mrf.mxu0 }
 0x474   :  { %v2611_v6 = vpop.permute.xlu0 %2610 }
 0x475   :  { %2741 = vst.msk [vmem:[#allocation3 + $0x1f0] sm:$0xff] %vm2678_vm8, %v2611_v6  ;;  %v2613_v31 = vpop.permute.xlu1 %2612  ;;  %v4313_v6 = vmul.f32 %v6984_v4, %v6984_v4 }
 0x476   :  { %2742 = vst.msk [vmem:[#allocation3 + $0x1f8] sm:$0xff] %vm2678_vm8, %v2613_v31  ;;  %v4314_v31 = vmul.f32 %v6989_v24, %v6989_v24 }
 0x478   :  { %v2996_v17 = vpop.permute.xlu0 %2995  ;;  %v3573_v7 = vld [vmem:[#allocation3 + $0x1e0] sm:$0xff] }
 0x479   :  { %3126 = vst.msk [vmem:[#allocation3 + $0x1f0] sm:$0xff] %vm3063_vm9, %v2996_v17  ;;  %v2998_v37 = vpop.permute.xlu1 %2997  ;;  %5031 = vmatprep.mubr.msk.f32.mxu1 %vm3589_vm11, %v3573_v7  ;;  %v3574_v11 = vld [vmem:[#allocation3 + $0x1e8] sm:$0xff]  ;;  %v4382_v17 = vadd.f32 %v4381_v41, %v4380_v54  ;;  %v4961_v7 = vpop.f32.mrf.mxu0 }
 0x47a   :  { %3127 = vst.msk [vmem:[#allocation3 + $0x1f8] sm:$0xff] %vm3063_vm9, %v2998_v37  ;;  %5032 = vmatmul.mubr.msk.f32.gmra.mxu1 %vm3589_vm11, %v3574_v11  ;;  %v4185_v37 = vsel %vm4171_vm12, %v6984_v4, 0.0  ;;  %v7000_v11 = vadd.f32 %v4955_v43, %v6929_v62  ;;  %v7032_v43 = vadd.f32 %v4961_v7, %v6929_v62 }
 0x47b   :  { %v4186_v1 = vadd.f32 %v4185_v37, %v4184_v45  ;;  %v3912_v28 = vpop.f32.mrf.mxu0 }
 0x47c   :  { %v3381_v49 = vpop.permute.xlu0 %3380  ;;  %7799 = vst [vmem:[#allocation8_spill] sm:$0xff] %v7000_v11  ;;  %v4315_v38 = vmul.f32 %v7000_v11, %v7000_v11  ;;  %v4189_v51 = vsel %vm4171_vm12, %v7000_v11, 0.0  ;;  %v7021_v56 = vadd.f32 %v6929_v62, %v3912_v28  ;;  %7803 = vst [vmem:[#allocation12_spill] sm:$0xff] %v7032_v43  ;;  %v4319_v52 = vmul.f32 %v7032_v43, %v7032_v43 }
 0x47d   :  { %3511 = vst.msk [vmem:[#allocation3 + $0x1f0] sm:$0xff] %vm3448_vm10, %v3381_v49  ;;  %v3383_v46 = vpop.permute.xlu1 %3382  ;;  %v4187_v49 = vsel %vm4171_vm12, %v6989_v24, 0.0  ;;  %v4964_v8 = vpop.f32.mrf.mxu0  ;;  %v4197_v33 = vsel %vm4171_vm12, %v7032_v43, 0.0 }
 0x47e   :  { %3512 = vst.msk [vmem:[#allocation3 + $0x1f8] sm:$0xff] %vm3448_vm10, %v3383_v46  ;;  %v7005_v46 = vadd.f32 %v6929_v62, %v3902_v34  ;;  %v4188_v32 = vadd.f32 %v4187_v49, %v4186_v1  ;;  %7802 = vst [vmem:[#allocation11_spill] sm:$0xff] %v7021_v56  ;;  %v4387_v60 = vsel %vm4171_vm12, %v4315_v38, 0.0  ;;  %v4318_v19 = vmul.f32 %v7021_v56, %v7021_v56 }
 0x47f   :  { %v3922_v22 = vpop.f32.mrf.mxu0  ;;  %v4195_v9 = vsel %vm4171_vm12, %v7021_v56, 0.0  ;;  %v7048_v21 = vadd.f32 %v4964_v8, %v6929_v62  ;;  %v4395_v45 = vsel %vm4171_vm12, %v4319_v52, 0.0 }
 0x480   :  { %7800 = vst [vmem:[#allocation9_spill] sm:$0xff] %v7005_v46  ;;  %v4316_v53 = vmul.f32 %v7005_v46, %v7005_v46  ;;  %v4191_v2 = vsel %vm4171_vm12, %v7005_v46, 0.0  ;;  %v4190_v10 = vadd.f32 %v4189_v51, %v4188_v32  ;;  %v7037_v25 = vadd.f32 %v6929_v62, %v3922_v22 }
 0x481   :  { %v4967_v30 = vpop.f32.mrf.mxu0  ;;  %v4393_v18 = vsel %vm4171_vm12, %v4318_v19, 0.0  ;;  %7805 = vst [vmem:[#allocation14_spill] sm:$0xff] %v7048_v21  ;;  %v4201_v1 = vsel %vm4171_vm12, %v7048_v21, 0.0 }
 0x482   :  { %v4389_v15 = vsel %vm4171_vm12, %v4316_v53, 0.0  ;;  %v4192_v16 = vadd.f32 %v4191_v2, %v4190_v10  ;;  %7804 = vst [vmem:[#allocation13_spill] sm:$0xff] %v7037_v25  ;;  %v4320_v12 = vmul.f32 %v7037_v25, %v7037_v25  ;;  %v4199_v50 = vsel %vm4171_vm12, %v7037_v25, 0.0 }
 0x483   :  { %v3932_v48 = vpop.f32.mrf.mxu0 }
 0x484   :  { %v3575_v29 = vld [vmem:[#allocation3 + $0x1f0] sm:$0xff]  ;;  %v4194_v5 = vadd.f32 %v4193_v57, %v4192_v16  ;;  %v7053_v55 = vadd.f32 %v6929_v62, %v3932_v48  ;;  %v4397_v54 = vsel %vm4171_vm12, %v4320_v12, 0.0 }
 0x485   :  { %5034 = vmatprep.mubr.msk.f32.mxu1 %vm3589_vm11, %v3575_v29  ;;  %v3576_v44 = vld [vmem:[#allocation3 + $0x1f8] sm:$0xff]  ;;  %v4383_v29 = vsel %vm4171_vm12, %v4313_v6, 0.0  ;;  %v4970_v13 = vpop.f32.mrf.mxu0 }
 0x486   :  { %5035 = vmatmul.mubr.msk.f32.gmra.mxu1 %vm3589_vm11, %v3576_v44  ;;  %v4385_v44 = vsel %vm4171_vm12, %v4314_v31, 0.0  ;;  %v4384_v35 = vadd.f32 %v4383_v29, %v4382_v17  ;;  %v4196_v26 = vadd.f32 %v4195_v9, %v4194_v5  ;;  %v4321_v17 = vmul.f32 %v7048_v21, %v7048_v21 }
 0x487   :  { %v3942_v31 = vpop.f32.mrf.mxu0  ;;  %v4322_v7 = vmul.f32 %v7053_v55, %v7053_v55  ;;  %v7064_v29 = vadd.f32 %v4967_v30, %v6929_v62  ;;  %v7080_v16 = vadd.f32 %v4970_v13, %v6929_v62 }
 0x488   :  { %v4386_v47 = vadd.f32 %v4385_v44, %v4384_v35  ;;  %v4198_v41 = vadd.f32 %v4197_v33, %v4196_v26  ;;  %v4203_v44 = vsel %vm4171_vm12, %v7053_v55, 0.0  ;;  %v7069_v32 = vadd.f32 %v6929_v62, %v3942_v31 }
 0x489   :  { %v4973_v49 = vpop.f32.mrf.mxu0  ;;  %v4399_v28 = vsel %vm4171_vm12, %v4321_v17, 0.0  ;;  %v4401_v38 = vsel %vm4171_vm12, %v4322_v7, 0.0  ;;  %v4323_v51 = vmul.f32 %v7064_v29, %v7064_v29  ;;  %v4325_v5 = vmul.f32 %v7080_v16, %v7080_v16 }
 0x48a   :  { %v4388_v23 = vadd.f32 %v4387_v60, %v4386_v47  ;;  %v4200_v34 = vadd.f32 %v4199_v50, %v4198_v41  ;;  %v4324_v2 = vmul.f32 %v7069_v32, %v7069_v32  ;;  %v7096_v48 = vadd.f32 %v4973_v49, %v6929_v62 }
 0x48b   :  { %v3952_v8 = vpop.f32.mrf.mxu0  ;;  %v4403_v19 = vsel %vm4171_vm12, %v4323_v51, 0.0  ;;  %v4407_v13 = vsel %vm4171_vm12, %v4325_v5, 0.0 }
 0x48c   :  { %v4390_v42 = vadd.f32 %v4389_v15, %v4388_v23  ;;  %v4202_v35 = vadd.f32 %v4201_v1, %v4200_v34  ;;  %v4205_v15 = vsel %vm4171_vm12, %v7064_v29, 0.0  ;;  %v4207_v23 = vsel %vm4171_vm12, %v7069_v32, 0.0  ;;  %7806 = vst [vmem:[#allocation15_spill] sm:$0xff] %v7096_v48 }
 0x48d   :  { %v4976_v60 = vpop.f32.mrf.mxu0  ;;  %v7085_v22 = vadd.f32 %v6929_v62, %v3952_v8  ;;  %v4213_v17 = vsel %vm4171_vm12, %v7096_v48, 0.0 }
 0x48e   :  { %v4392_v27 = vadd.f32 %v4391_v0, %v4390_v42  ;;  %v4204_v53 = vadd.f32 %v4203_v44, %v4202_v35  ;;  %v4405_v42 = vsel %vm4171_vm12, %v4324_v2, 0.0  ;;  %v7112_v7 = vadd.f32 %v4976_v60, %v6929_v62 }
 0x48f   :  { %v3962_v9 = vpop.f32.mrf.mxu0  ;;  %v4326_v0 = vmul.f32 %v7085_v22, %v7085_v22  ;;  %v4211_v52 = vsel %vm4171_vm12, %v7085_v22, 0.0 }
 0x490   :  { %v4394_v61 = vadd.f32 %v4393_v18, %v4392_v27  ;;  %v4206_v59 = vadd.f32 %v4205_v15, %v4204_v53  ;;  %v4209_v27 = vsel %vm4171_vm12, %v7080_v16, 0.0  ;;  %v7101_v12 = vadd.f32 %v6929_v62, %v3962_v9  ;;  %7808 = vst [vmem:[#allocation17_spill] sm:$0xff] %v7112_v7 }
 0x491   :  { %v4979_v26 = vpop.f32.mrf.mxu0  ;;  %v4409_v33 = vsel %vm4171_vm12, %v4326_v0, 0.0 }
 0x492   :  { %v4396_v6 = vadd.f32 %v4395_v45, %v4394_v61  ;;  %v4208_v30 = vadd.f32 %v4207_v23, %v4206_v59  ;;  %7807 = vst [vmem:[#allocation16_spill] sm:$0xff] %v7101_v12  ;;  %v4328_v34 = vmul.f32 %v7101_v12, %v7101_v12  ;;  %v7128_v60 = vadd.f32 %v4979_v26, %v6929_v62 }
 0x493   :  { %v3972_v45 = vpop.f32.mrf.mxu0 }
 0x494   :  { %v4398_v37 = vadd.f32 %v4397_v54, %v4396_v6  ;;  %v4210_v61 = vadd.f32 %v4209_v27, %v4208_v30  ;;  %v4327_v54 = vmul.f32 %v7096_v48, %v7096_v48  ;;  %v7117_v49 = vadd.f32 %v6929_v62, %v3972_v45  ;;  %7810 = vst [vmem:[#allocation19_spill] sm:$0xff] %v7128_v60 }
 0x495   :  { %v4982_v31 = vpop.f32.mrf.mxu0  ;;  %v4413_v35 = vsel %vm4171_vm12, %v4328_v34, 0.0  ;;  %v4331_v5 = vmul.f32 %v7128_v60, %v7128_v60  ;;  %v4221_v27 = vsel %vm4171_vm12, %v7128_v60, 0.0 }
 0x496   :  { %v4400_v47 = vadd.f32 %v4399_v28, %v4398_v37  ;;  %v4212_v50 = vadd.f32 %v4211_v52, %v4210_v61  ;;  %v4215_v37 = vsel %vm4171_vm12, %v7101_v12, 0.0  ;;  %7809 = vst [vmem:[#allocation18_spill] sm:$0xff] %v7117_v49  ;;  %v4411_v44 = vsel %vm4171_vm12, %v4327_v54, 0.0 }
 0x497   :  { %v3982_v53 = vpop.f32.mrf.mxu0  ;;  %v4330_v8 = vmul.f32 %v7117_v49, %v7117_v49  ;;  %v4219_v15 = vsel %vm4171_vm12, %v7117_v49, 0.0  ;;  %v7144_v52 = vadd.f32 %v4982_v31, %v6929_v62 }
 0x498   :  { %v4402_v10 = vadd.f32 %v4401_v38, %v4400_v47  ;;  %v4214_v1 = vadd.f32 %v4213_v17, %v4212_v50  ;;  %v4329_v47 = vmul.f32 %v7112_v7, %v7112_v7  ;;  %v7133_v23 = vadd.f32 %v6929_v62, %v3982_v53 }
 0x499   :  { %v4985_v2 = vpop.f32.mrf.mxu0  ;;  %7812 = vst [vmem:[#allocation21_spill] sm:$0xff] %v7144_v52  ;;  %v4419_v50 = vsel %vm4171_vm12, %v4331_v5, 0.0 }
 0x49a   :  { %v4404_v57 = vadd.f32 %v4403_v19, %v4402_v10  ;;  %v4216_v28 = vadd.f32 %v4215_v37, %v4214_v1  ;;  %v4217_v10 = vsel %vm4171_vm12, %v7112_v7, 0.0  ;;  %7811 = vst [vmem:[#allocation20_spill] sm:$0xff] %v7133_v23  ;;  %v4415_v19 = vsel %vm4171_vm12, %v4329_v47, 0.0  ;;  %v4991_v37 = vpop.f32.mrf.mxu1 }
 0x49b   :  { %v3992_v9 = vpop.f32.mrf.mxu0  ;;  %v4332_v0 = vmul.f32 %v7133_v23, %v7133_v23  ;;  %v4223_v61 = vsel %vm4171_vm12, %v7133_v23, 0.0  ;;  %v4225_v1 = vsel %vm4171_vm12, %v7144_v52, 0.0 }
 0x49c   :  { %v4406_v18 = vadd.f32 %v4405_v42, %v4404_v57  ;;  %v4218_v59 = vadd.f32 %v4217_v10, %v4216_v28  ;;  %v4417_v42 = vsel %vm4171_vm12, %v4330_v8, 0.0  ;;  %v4012_v10 = vpop.f32.mrf.mxu1 }
 0x49d   :  { %v4988_v26 = vpop.f32.mrf.mxu0 }
 0x49e   :  { %v4408_v41 = vadd.f32 %v4407_v13, %v4406_v18  ;;  %v4220_v30 = vadd.f32 %v4219_v15, %v4218_v59  ;;  %v7149_v13 = vadd.f32 %v6929_v62, %v3992_v9  ;;  %v7181_v9 = vadd.f32 %v6929_v62, %v4012_v10 }
 0x49f   :  { %v4002_v34 = vpop.f32.mrf.mxu0 }
 0x4a0   :  { %v4410_v6 = vadd.f32 %v4409_v33, %v4408_v41  ;;  %7813 = vst [vmem:[#allocation22_spill] sm:$0xff] %v7149_v13  ;;  %v4222_v33 = vadd.f32 %v4221_v27, %v4220_v30  ;;  %v4421_v41 = vsel %vm4171_vm12, %v4332_v0, 0.0  ;;  %v4334_v31 = vmul.f32 %v7149_v13, %v7149_v13 }
 0x4a1   :  { %v7165_v28 = vadd.f32 %v6929_v62, %v4002_v34  ;;  %v7176_v30 = vadd.f32 %v4988_v26, %v6929_v62  ;;  %v4338_v26 = vmul.f32 %v7181_v9, %v7181_v9  ;;  %v7192_v34 = vadd.f32 %v4991_v37, %v6929_v62 }
 0x4a2   :  { %v4412_v38 = vadd.f32 %v4411_v44, %v4410_v6  ;;  %v4224_v45 = vadd.f32 %v4223_v61, %v4222_v33  ;;  %v4333_v6 = vmul.f32 %v7144_v52, %v7144_v52  ;;  %v7160_v44 = vadd.f32 %v4985_v2, %v6929_v62 }
 0x4a3   :  { %7815 = vst [vmem:[#allocation24_spill] sm:$0xff] %v7165_v28  ;;  %v4425_v47 = vsel %vm4171_vm12, %v4334_v31, 0.0  ;;  %v4336_v2 = vmul.f32 %v7165_v28, %v7165_v28  ;;  %7816 = vst [vmem:[#allocation25_spill] sm:$0xff] %v7176_v30 }
 0x4a4   :  { %v4414_v51 = vadd.f32 %v4413_v35, %v4412_v38  ;;  %7814 = vst [vmem:[#allocation23_spill] sm:$0xff] %v7160_v44  ;;  %v4227_v35 = vsel %vm4171_vm12, %v7149_v13, 0.0  ;;  %v4226_v38 = vadd.f32 %v4225_v1, %v4224_v45  ;;  %v4423_v53 = vsel %vm4171_vm12, %v4333_v6, 0.0 }
 0x4a5   :  { %v4335_v15 = vmul.f32 %v7160_v44, %v7160_v44  ;;  %v4235_v6 = vsel %vm4171_vm12, %v7181_v9, 0.0 }
 0x4a6   :  { %v4416_v57 = vadd.f32 %v4415_v19, %v4414_v51  ;;  %v4228_v8 = vadd.f32 %v4227_v35, %v4226_v38  ;;  %v4994_v19 = vpop.f32.mrf.mxu1  ;;  %v4433_v35 = vsel %vm4171_vm12, %v4338_v26, 0.0 }
 0x4a7   :  { %v4427_v0 = vsel %vm4171_vm12, %v4335_v15, 0.0  ;;  %v4237_v15 = vsel %vm4171_vm12, %v7192_v34, 0.0 }
 0x4a8   :  { %v4418_v18 = vadd.f32 %v4417_v42, %v4416_v57  ;;  %v4229_v42 = vsel %vm4171_vm12, %v7160_v44, 0.0  ;;  %v4231_v57 = vsel %vm4171_vm12, %v7165_v28, 0.0  ;;  %v4022_v33 = vpop.f32.mrf.mxu1 }
 0x4a9   :  { %v4230_v5 = vadd.f32 %v4229_v42, %v4228_v8  ;;  %v7197_v31 = vadd.f32 %v6929_v62, %v4022_v33  ;;  %v4339_v8 = vmul.f32 %v7192_v34, %v7192_v34 }
 0x4aa   :  { %v4420_v54 = vadd.f32 %v4419_v50, %v4418_v18  ;;  %v4429_v18 = vsel %vm4171_vm12, %v4336_v2, 0.0  ;;  %v4337_v50 = vmul.f32 %v7176_v30, %v7176_v30  ;;  %v4997_v45 = vpop.f32.mrf.mxu1  ;;  %v7208_v2 = vadd.f32 %v4994_v19, %v6929_v62 }
 0x4ab   :  { %v4232_v27 = vadd.f32 %v4231_v57, %v4230_v5  ;;  %v4340_v37 = vmul.f32 %v7197_v31, %v7197_v31  ;;  %v4435_v5 = vsel %vm4171_vm12, %v4339_v8, 0.0 }
 0x4ac   :  { %v4422_v17 = vadd.f32 %v4421_v41, %v4420_v54  ;;  %v4233_v54 = vsel %vm4171_vm12, %v7176_v30, 0.0  ;;  %v4431_v1 = vsel %vm4171_vm12, %v4337_v50, 0.0  ;;  %v4341_v33 = vmul.f32 %v7208_v2, %v7208_v2 }
 0x4ae   :  { %v4424_v51 = vadd.f32 %v4423_v53, %v4422_v17  ;;  %v4234_v17 = vadd.f32 %v4233_v54, %v4232_v27  ;;  %v7224_v54 = vadd.f32 %v4997_v45, %v6929_v62 }
 0x4b0   :  { %v4426_v59 = vadd.f32 %v4425_v47, %v4424_v51  ;;  %v4236_v38 = vadd.f32 %v4235_v6, %v4234_v17  ;;  %v4032_v47 = vpop.f32.mrf.mxu1 }
 0x4b1   :  { %v7213_v42 = vadd.f32 %v6929_v62, %v4032_v47 }
 0x4b2   :  { %v4428_v61 = vadd.f32 %v4427_v0, %v4426_v59  ;;  %v4239_v59 = vsel %vm4171_vm12, %v7197_v31, 0.0  ;;  %v4238_v57 = vadd.f32 %v4237_v15, %v4236_v38  ;;  %v4437_v0 = vsel %vm4171_vm12, %v4340_v37, 0.0 }
 0x4b3   :  { %v4342_v19 = vmul.f32 %v7213_v42, %v7213_v42  ;;  %v4243_v6 = vsel %vm4171_vm12, %v7213_v42, 0.0  ;;  %v4343_v37 = vmul.f32 %v7224_v54, %v7224_v54 }
 0x4b4   :  { %v4430_v41 = vadd.f32 %v4429_v18, %v4428_v61  ;;  %v4240_v18 = vadd.f32 %v4239_v59, %v4238_v57  ;;  %v4245_v59 = vsel %vm4171_vm12, %v7224_v54, 0.0 }
 0x4b5   :  { %v4441_v38 = vsel %vm4171_vm12, %v4342_v19, 0.0 }
 0x4b6   :  { %v4432_v53 = vadd.f32 %v4431_v1, %v4430_v41  ;;  %v5000_v10 = vpop.f32.mrf.mxu1  ;;  %v4241_v41 = vsel %vm4171_vm12, %v7208_v2, 0.0 }
 0x4b7   :  { %v4242_v1 = vadd.f32 %v4241_v41, %v4240_v18  ;;  %v7240_v57 = vadd.f32 %v5000_v10, %v6929_v62 }
 0x4b8   :  { %v4434_v51 = vadd.f32 %v4433_v35, %v4432_v53  ;;  %v4042_v61 = vpop.f32.mrf.mxu1  ;;  %v4439_v35 = vsel %vm4171_vm12, %v4341_v33, 0.0 }
 0x4b9   :  { %v7229_v17 = vadd.f32 %v6929_v62, %v4042_v61  ;;  %v4244_v53 = vadd.f32 %v4243_v6, %v4242_v1  ;;  %v4345_v41 = vmul.f32 %v7240_v57, %v7240_v57 }
 0x4ba   :  { %v4436_v27 = vadd.f32 %v4435_v5, %v4434_v51 }
 0x4bb   :  { %v4344_v45 = vmul.f32 %v7229_v17, %v7229_v17  ;;  %v4247_v5 = vsel %vm4171_vm12, %v7229_v17, 0.0  ;;  %v4246_v18 = vadd.f32 %v4245_v59, %v4244_v53 }
 0x4bc   :  { %v4438_v50 = vadd.f32 %v4437_v0, %v4436_v27  ;;  %v4443_v27 = vsel %vm4171_vm12, %v4343_v37, 0.0  ;;  %v4447_v37 = vsel %vm4171_vm12, %v4345_v41, 0.0 }
 0x4bd   :  { %v4445_v61 = vsel %vm4171_vm12, %v4344_v45, 0.0  ;;  %v4248_v33 = vadd.f32 %v4247_v5, %v4246_v18 }
 0x4be   :  { %v4440_v47 = vadd.f32 %v4439_v35, %v4438_v50  ;;  %v4249_v35 = vsel %vm4171_vm12, %v7240_v57, 0.0 }
 0x4c0   :  { %v4442_v51 = vadd.f32 %v4441_v38, %v4440_v47 }
 0x4c2   :  { %v5003_v26 = vpop.f32.mrf.mxu1  ;;  %v4444_v19 = vadd.f32 %v4443_v27, %v4442_v51 }
 0x4c3   :  { %v7256_v38 = vadd.f32 %v5003_v26, %v6929_v62 }
 0x4c4   :  { %v4052_v8 = vpop.f32.mrf.mxu1  ;;  %v4446_v6 = vadd.f32 %v4445_v61, %v4444_v19 }
 0x4c5   :  { %v7245_v0 = vadd.f32 %v6929_v62, %v4052_v8  ;;  %v4250_v8 = vadd.f32 %v4249_v35, %v4248_v33  ;;  %v4347_v18 = vmul.f32 %v7256_v38, %v7256_v38  ;;  %v4253_v19 = vsel %vm4171_vm12, %v7256_v38, 0.0 }
 0x4c6   :  { %v4448_v59 = vadd.f32 %v4447_v37, %v4446_v6 }
 0x4c7   :  { %v4346_v10 = vmul.f32 %v7245_v0, %v7245_v0  ;;  %v4251_v53 = vsel %vm4171_vm12, %v7245_v0, 0.0  ;;  %v4451_v6 = vsel %vm4171_vm12, %v4347_v18, 0.0 }
 0x4c8   :  { %v4252_v51 = vadd.f32 %v4251_v53, %v4250_v8 }
 0x4c9   :  { %v4449_v45 = vsel %vm4171_vm12, %v4346_v10, 0.0 }
 0x4ca   :  { %v4450_v27 = vadd.f32 %v4449_v45, %v4448_v59  ;;  %v4254_v10 = vadd.f32 %v4253_v19, %v4252_v51 }
 0x4cc   :  { %v4452_v8 = vadd.f32 %v4451_v6, %v4450_v27 }
 0x4ce   :  { %v5006_v15 = vpop.f32.mrf.mxu1 }
 0x4cf   :  { %v7272_v33 = vadd.f32 %v5006_v15, %v6929_v62 }
 0x4d0   :  { %v4062_v50 = vpop.f32.mrf.mxu1 }
 0x4d1   :  { %v7261_v47 = vadd.f32 %v6929_v62, %v4062_v50  ;;  %v4349_v45 = vmul.f32 %v7272_v33, %v7272_v33 }
 0x4d3   :  { %v4348_v26 = vmul.f32 %v7261_v47, %v7261_v47  ;;  %v4255_v50 = vsel %vm4171_vm12, %v7261_v47, 0.0  ;;  %v4455_v19 = vsel %vm4171_vm12, %v4349_v45, 0.0 }
 0x4d4   :  { %v4256_v53 = vadd.f32 %v4255_v50, %v4254_v10 }
 0x4d5   :  { %v4453_v35 = vsel %vm4171_vm12, %v4348_v26, 0.0 }
 0x4d6   :  { %v4454_v59 = vadd.f32 %v4453_v35, %v4452_v8 }
 0x4d8   :  { %v4456_v6 = vadd.f32 %v4455_v19, %v4454_v59 }
 0x4da   :  { %v5009_v1 = vpop.f32.mrf.mxu1 }
 0x4db   :  { %v7288_v51 = vadd.f32 %v5009_v1, %v6929_v62 }
 0x4dc   :  { %v4072_v5 = vpop.f32.mrf.mxu1 }
 0x4dd   :  { %v7277_v41 = vadd.f32 %v6929_v62, %v4072_v5  ;;  %v4257_v5 = vsel %vm4171_vm12, %v7272_v33, 0.0  ;;  %v4351_v8 = vmul.f32 %v7288_v51, %v7288_v51 }
 0x4de   :  { %v4258_v27 = vadd.f32 %v4257_v5, %v4256_v53 }
 0x4df   :  { %v4350_v15 = vmul.f32 %v7277_v41, %v7277_v41  ;;  %v4259_v18 = vsel %vm4171_vm12, %v7277_v41, 0.0  ;;  %v4459_v5 = vsel %vm4171_vm12, %v4351_v8, 0.0 }
 0x4e0   :  { %v4260_v10 = vadd.f32 %v4259_v18, %v4258_v27 }
 0x4e1   :  { %v4457_v50 = vsel %vm4171_vm12, %v4350_v15, 0.0 }
 0x4e2   :  { %v4458_v21 = vadd.f32 %v4457_v50, %v4456_v6 }
 0x4e4   :  { %v4460_v19 = vadd.f32 %v4459_v5, %v4458_v21 }
 0x4e6   :  { %v5012_v61 = vpop.f32.mrf.mxu1 }
 0x4e7   :  { %v7304_v53 = vadd.f32 %v5012_v61, %v6929_v62 }
 0x4e8   :  { %v4082_v37 = vpop.f32.mrf.mxu1 }
 0x4e9   :  { %v7293_v26 = vadd.f32 %v6929_v62, %v4082_v37  ;;  %v4261_v37 = vsel %vm4171_vm12, %v7288_v51, 0.0  ;;  %v4353_v6 = vmul.f32 %v7304_v53, %v7304_v53 }
 0x4ea   :  { %v4262_v59 = vadd.f32 %v4261_v37, %v4260_v10 }
 0x4eb   :  { %v4352_v1 = vmul.f32 %v7293_v26, %v7293_v26  ;;  %v4263_v45 = vsel %vm4171_vm12, %v7293_v26, 0.0  ;;  %v4463_v37 = vsel %vm4171_vm12, %v4353_v6, 0.0 }
 0x4ec   :  { %v4264_v27 = vadd.f32 %v4263_v45, %v4262_v59 }
 0x4ed   :  { %v4461_v18 = vsel %vm4171_vm12, %v4352_v1, 0.0 }
 0x4ee   :  { %v4462_v25 = vadd.f32 %v4461_v18, %v4460_v19 }
 0x4f0   :  { %v4464_v5 = vadd.f32 %v4463_v37, %v4462_v25 }
 0x4f2   :  { %v5015_v30 = vpop.f32.mrf.mxu1 }
 0x4f3   :  { %v7320_v10 = vadd.f32 %v5015_v30, %v6929_v62 }
 0x4f4   :  { %v4092_v35 = vpop.f32.mrf.mxu1 }
 0x4f5   :  { %v7309_v15 = vadd.f32 %v6929_v62, %v4092_v35  ;;  %v4265_v35 = vsel %vm4171_vm12, %v7304_v53, 0.0  ;;  %v4355_v19 = vmul.f32 %v7320_v10, %v7320_v10 }
 0x4f6   :  { %v4266_v1 = vadd.f32 %v4265_v35, %v4264_v27 }
 0x4f7   :  { %v4354_v61 = vmul.f32 %v7309_v15, %v7309_v15  ;;  %v4267_v8 = vsel %vm4171_vm12, %v7309_v15, 0.0  ;;  %v4467_v35 = vsel %vm4171_vm12, %v4355_v19, 0.0 }
 0x4f8   :  { %v4268_v59 = vadd.f32 %v4267_v8, %v4266_v1 }
 0x4f9   :  { %v4465_v45 = vsel %vm4171_vm12, %v4354_v61, 0.0 }
 0x4fa   :  { %v4466_v43 = vadd.f32 %v4465_v45, %v4464_v5 }
 0x4fc   :  { %v4468_v37 = vadd.f32 %v4467_v35, %v4466_v43 }
 0x4fe   :  { %v5018_v28 = vpop.f32.mrf.mxu1 }
 0x4ff   :  { %v7336_v27 = vadd.f32 %v5018_v28, %v6929_v62 }
 0x500   :  { %v4102_v50 = vpop.f32.mrf.mxu1 }
 0x501   :  { %v7325_v21 = vadd.f32 %v6929_v62, %v4102_v50  ;;  %v4269_v50 = vsel %vm4171_vm12, %v7320_v10, 0.0  ;;  %v4357_v5 = vmul.f32 %v7336_v27, %v7336_v27 }
 0x502   :  { %v4270_v61 = vadd.f32 %v4269_v50, %v4268_v59 }
 0x503   :  { %v4356_v30 = vmul.f32 %v7325_v21, %v7325_v21  ;;  %v4271_v6 = vsel %vm4171_vm12, %v7325_v21, 0.0  ;;  %v4471_v50 = vsel %vm4171_vm12, %v4357_v5, 0.0 }
 0x504   :  { %v4272_v1 = vadd.f32 %v4271_v6, %v4270_v61 }
 0x505   :  { %v4469_v8 = vsel %vm4171_vm12, %v4356_v30, 0.0 }
 0x506   :  { %v4470_v56 = vadd.f32 %v4469_v8, %v4468_v37 }
 0x508   :  { %v4472_v35 = vadd.f32 %v4471_v50, %v4470_v56 }
 0x50a   :  { %v5021_v44 = vpop.f32.mrf.mxu1 }
 0x50b   :  { %v7352_v59 = vadd.f32 %v5021_v44, %v6929_v62 }
 0x50c   :  { %v4112_v18 = vpop.f32.mrf.mxu1 }
 0x50d   :  { %v7341_v25 = vadd.f32 %v6929_v62, %v4112_v18  ;;  %v4273_v18 = vsel %vm4171_vm12, %v7336_v27, 0.0  ;;  %v4359_v37 = vmul.f32 %v7352_v59, %v7352_v59 }
 0x50e   :  { %v4274_v30 = vadd.f32 %v4273_v18, %v4272_v1 }
 0x50f   :  { %v4358_v28 = vmul.f32 %v7341_v25, %v7341_v25  ;;  %v4275_v19 = vsel %vm4171_vm12, %v7341_v25, 0.0  ;;  %v4475_v18 = vsel %vm4171_vm12, %v4359_v37, 0.0 }
 0x510   :  { %v4276_v61 = vadd.f32 %v4275_v19, %v4274_v30 }
 0x511   :  { %v4473_v6 = vsel %vm4171_vm12, %v4358_v28, 0.0 }
 0x512   :  { %v4474_v14 = vadd.f32 %v4473_v6, %v4472_v35 }
 0x514   :  { %v4476_v50 = vadd.f32 %v4475_v18, %v4474_v14 }
 0x516   :  { %v5024_v13 = vpop.f32.mrf.mxu1 }
 0x517   :  { %v7368_v1 = vadd.f32 %v5024_v13, %v6929_v62 }
 0x518   :  { %v4122_v45 = vpop.f32.mrf.mxu1 }
 0x519   :  { %v7357_v43 = vadd.f32 %v6929_v62, %v4122_v45  ;;  %v4277_v45 = vsel %vm4171_vm12, %v7352_v59, 0.0  ;;  %v4361_v35 = vmul.f32 %v7368_v1, %v7368_v1  ;;  %v4281_v60 = vsel %vm4171_vm12, %v7368_v1, 0.0 }
 0x51a   :  { %v4278_v28 = vadd.f32 %v4277_v45, %v4276_v61 }
 0x51b   :  { %v4360_v44 = vmul.f32 %v7357_v43, %v7357_v43  ;;  %v4279_v5 = vsel %vm4171_vm12, %v7357_v43, 0.0 }
 0x51c   :  { %v4280_v30 = vadd.f32 %v4279_v5, %v4278_v28 }
 0x51d   :  { %v4477_v19 = vsel %vm4171_vm12, %v4360_v44, 0.0  ;;  %v4479_v44 = vsel %vm4171_vm12, %v4361_v35, 0.0 }
 0x51e   :  { %v4478_v46 = vadd.f32 %v4477_v19, %v4476_v50  ;;  %v4282_v14 = vadd.f32 %v4281_v60, %v4280_v30 }
 0x520   :  { %v4480_v28 = vadd.f32 %v4479_v44, %v4478_v46 }
 0x522   :  { %v5027_v52 = vpop.f32.mrf.mxu1 }
 0x524   :  { %v4132_v8 = vpop.f32.mrf.mxu1 }
 0x525   :  { %v7373_v56 = vadd.f32 %v6929_v62, %v4132_v8  ;;  %v7384_v8 = vadd.f32 %v5027_v52, %v6929_v62 }
 0x527   :  { %v4362_v13 = vmul.f32 %v7373_v56, %v7373_v56  ;;  %v4283_v61 = vsel %vm4171_vm12, %v7373_v56, 0.0  ;;  %v4363_v19 = vmul.f32 %v7384_v8, %v7384_v8 }
 0x528   :  { %v4284_v5 = vadd.f32 %v4283_v61, %v4282_v14 }
 0x529   :  { %v4481_v45 = vsel %vm4171_vm12, %v4362_v13, 0.0  ;;  %v4483_v13 = vsel %vm4171_vm12, %v4363_v19, 0.0 }
 0x52a   :  { %v4482_v50 = vadd.f32 %v4481_v45, %v4480_v28 }
 0x52c   :  { %v4484_v44 = vadd.f32 %v4483_v13, %v4482_v50 }
 0x52e   :  { %v5030_v23 = vpop.f32.mrf.mxu1 }
 0x52f   :  { %v7400_v60 = vadd.f32 %v5030_v23, %v6929_v62 }
 0x530   :  { %v4142_v6 = vpop.f32.mrf.mxu1 }
 0x531   :  { %v7389_v37 = vadd.f32 %v6929_v62, %v4142_v6  ;;  %v4285_v6 = vsel %vm4171_vm12, %v7384_v8, 0.0  ;;  %v4365_v45 = vmul.f32 %v7400_v60, %v7400_v60  ;;  %v4289_v49 = vsel %vm4171_vm12, %v7400_v60, 0.0 }
 0x532   :  { %v4286_v35 = vadd.f32 %v4285_v6, %v4284_v5 }
 0x533   :  { %v4364_v52 = vmul.f32 %v7389_v37, %v7389_v37  ;;  %v4287_v30 = vsel %vm4171_vm12, %v7389_v37, 0.0 }
 0x534   :  { %v4288_v14 = vadd.f32 %v4287_v30, %v4286_v35 }
 0x535   :  { %v4485_v61 = vsel %vm4171_vm12, %v4364_v52, 0.0  ;;  %v4487_v52 = vsel %vm4171_vm12, %v4365_v45, 0.0 }
 0x536   :  { %v4486_v28 = vadd.f32 %v4485_v61, %v4484_v44  ;;  %v4290_v19 = vadd.f32 %v4289_v49, %v4288_v14 }
 0x538   :  { %v4488_v30 = vadd.f32 %v4487_v52, %v4486_v28 }
 0x53a   :  { %v5033_v18 = vpop.f32.mrf.mxu1 }
 0x53c   :  { %v4152_v11 = vpop.f32.mrf.mxu1 }
 0x53d   :  { %v7405_v46 = vadd.f32 %v6929_v62, %v4152_v11  ;;  %v7416_v11 = vadd.f32 %v5033_v18, %v6929_v62 }
 0x53f   :  { %7817 = vst [vmem:[#allocation26_spill] sm:$0xff] %v7405_v46  ;;  %v4366_v23 = vmul.f32 %v7405_v46, %v7405_v46  ;;  %7818 = vst [vmem:[#allocation27_spill] sm:$0xff] %v7416_v11  ;;  %v4291_v5 = vsel %vm4171_vm12, %v7405_v46, 0.0  ;;  %v4367_v13 = vmul.f32 %v7416_v11, %v7416_v11  ;;  %v4293_v24 = vsel %vm4171_vm12, %v7416_v11, 0.0 }
 0x540   :  { %v4292_v6 = vadd.f32 %v4291_v5, %v4290_v19 }
 0x541   :  { %v4489_v50 = vsel %vm4171_vm12, %v4366_v23, 0.0  ;;  %v4491_v45 = vsel %vm4171_vm12, %v4367_v13, 0.0 }
 0x542   :  { %v4490_v44 = vadd.f32 %v4489_v50, %v4488_v30  ;;  %v4294_v14 = vadd.f32 %v4293_v24, %v4292_v6 }
 0x544   :  { %v4492_v52 = vadd.f32 %v4491_v45, %v4490_v44 }
 0x546   :  { %v5036_v35 = vpop.f32.mrf.mxu1 }
 0x547   :  { %v7425_v61 = vadd.f32 %v5036_v35, %v6929_v62 }
 0x548   :  { %v4162_v18 = vpop.f32.mrf.mxu1 }
 0x549   :  { %v4163_v49 = vadd.f32 %v6929_v62, %v4162_v18  ;;  %v4369_v23 = vmul.f32 %v7425_v61, %v7425_v61  ;;  %v4297_v50 = vsel %vm4171_vm12, %v7425_v61, 0.0 }
 0x54b   :  { %v4295_v28 = vsel %vm4171_vm12, %v4163_v49, 0.0  ;;  %v4368_v5 = vmul.f32 %v4163_v49, %v4163_v49  ;;  %v4495_v62 = vsel %vm4171_vm12, %v4369_v23, 0.0  ;;  %v4513_v23 = vlaneseq }
 0x54c   :  { %v4296_v19 = vadd.f32 %v4295_v28, %v4294_v14 }
 0x54d   :  { %v4493_v30 = vsel %vm4171_vm12, %v4368_v5, 0.0 }
 0x54e   :  { %v4298_v35 = vadd.f32 %v4297_v50, %v4296_v19  ;;  %v4494_v7 = vadd.f32 %v4493_v30, %v4492_v52  ;;  %v4514_v50 = vshrl.u32 %v4513_v23, 7 }
 0x550   :  { %v4299_v24 = vrot.slane %v4298_v35, 4  ;;  %v4496_v6 = vadd.f32 %v4495_v62, %v4494_v7  ;;  %v4508_v7 = vld [vmem:[%s7768_s3] sm:$0x1]  ;;  %v4515_v30 = vsub.s32 0, %v4514_v50 }
 0x552   :  { %v4300_v13 = vadd.f32 %v4299_v24, %v4298_v35  ;;  %v4497_v18 = vrot.slane %v4496_v6, 4 }
 0x554   :  { %v4301_v4 = vrot.slane %v4300_v13, 2  ;;  %v4498_v12 = vadd.f32 %v4497_v18, %v4496_v6 }
 0x556   :  { %v4302_v39 = vadd.f32 %v4301_v4, %v4300_v13  ;;  %v4499_v48 = vrot.slane %v4498_v12, 2 }
 0x558   :  { %v4303_v36 = vrot.slane %v4302_v39, 1  ;;  %v4500_v14 = vadd.f32 %v4499_v48, %v4498_v12  ;;  %v4510_v48 = vld [vmem:[%s7769_s4] sm:$0x1] }
 0x55a   :  { %v4304_v44 = vadd.f32 %v4303_v36, %v4302_v39  ;;  %v4501_v45 = vrot.slane %v4500_v14, 1 }
 0x55c   :  { %v4305_v28 = vmul.f32 0.001953125, %v4304_v44  ;;  %v4502_v11 = vadd.f32 %v4501_v45, %v4500_v14 }
 0x55e   :  { %v4503_v46 = vmul.f32 0.001953125, %v4502_v11  ;;  %v4504_v5 = vmul.f32 %v4305_v28, %v4305_v28 }
 0x560   :  { %v4505_v19 = vsub.f32 %v4503_v46, %v4504_v5 }
 0x562   :  { %v4506_v52 = vadd.f32 1e-05, %v4505_v19  ;;  %v7820_v19 = vld [vmem:[#allocation27_spill] sm:$0xff] }
 0x564   :  { %5055 = vrsqrt.f32 %v4506_v52 }
 0x571   :  { %v5056_v4 = vpop.eup %5055 }
 0x572   :  { %v4509_v35 = vmul.f32 %v5056_v4, %v4508_v7 }
 0x574   :  { %v7441_v62 = vrot.slane %v4509_v35, %v4515_v30  ;;  %v4511_v39 = vmul.f32 %v4509_v35, %v4305_v28 }
 0x576   :  { %v7444_v36 = vmul.f32 %v7441_v62, %v4163_v49  ;;  %v4512_v12 = vsub.f32 %v4510_v48, %v4511_v39  ;;  %v4517_v46 = vmul.f32 %v7441_v62, %v6932_v63  ;;  %v4518_v11 = vmul.f32 %v7441_v62, %v6935_v40 }
 0x577   :  { %v4519_v6 = vmul.f32 %v7441_v62, %v6938_v58  ;;  %v4520_v49 = vmul.f32 %v7441_v62, %v6952_v3  ;;  %v4521_v13 = vmul.f32 %v7441_v62, %v6957_v20  ;;  %v4533_v18 = vmul.f32 %v7441_v62, %v7053_v55 }
 0x578   :  { %v7453_v24 = vrot.slane %v4512_v12, %v4515_v30  ;;  %v4534_v63 = vmul.f32 %v7441_v62, %v7064_v29  ;;  %v4535_v40 = vmul.f32 %v7441_v62, %v7069_v32  ;;  %v4536_v14 = vmul.f32 %v7441_v62, %v7080_v16 }
 0x579   :  { %v4537_v58 = vmul.f32 %v7441_v62, %v7085_v22  ;;  %v4549_v3 = vmul.f32 %v7441_v62, %v7181_v9  ;;  %v4550_v20 = vmul.f32 %v7441_v62, %v7192_v34  ;;  %v4551_v55 = vmul.f32 %v7441_v62, %v7197_v31 }
 0x57a   :  { %v4552_v29 = vmul.f32 %v7441_v62, %v7208_v2  ;;  %v4553_v32 = vmul.f32 %v7441_v62, %v7213_v42  ;;  %v4554_v16 = vmul.f32 %v7441_v62, %v7224_v54  ;;  %v4555_v22 = vmul.f32 %v7441_v62, %v7229_v17 }
 0x57b   :  { %v4556_v9 = vmul.f32 %v7441_v62, %v7240_v57  ;;  %v7489_v34 = vmul.f32 %v7441_v62, %v7425_v61  ;;  %v4603_v31 = vadd.f32 %v7453_v24, %v4533_v18  ;;  %v4587_v2 = vadd.f32 %v7453_v24, %v4517_v46 }
 0x57c   :  { %v4557_v42 = vmul.f32 %v7441_v62, %v7245_v0  ;;  %v4558_v54 = vmul.f32 %v7441_v62, %v7256_v38  ;;  %v4559_v17 = vmul.f32 %v7441_v62, %v7261_v47  ;;  %v4560_v57 = vmul.f32 %v7441_v62, %v7272_v33 }
 0x57d   :  { %v4561_v61 = vmul.f32 %v7441_v62, %v7277_v41  ;;  %v4562_v44 = vmul.f32 %v7441_v62, %v7288_v51  ;;  %v4563_v45 = vmul.f32 %v7441_v62, %v7293_v26  ;;  %4683 = vxpose.xlu1.b32.start [1/16] (narrow) %v4603_v31, 16  ;;  %4651 = vxpose.xlu0.b32.start [1/16] (narrow) %v4587_v2, 16 }
 0x57e   :  { %v4564_v0 = vmul.f32 %v7441_v62, %v7304_v53  ;;  %v4565_v38 = vmul.f32 %v7441_v62, %v7309_v15  ;;  %v4566_v47 = vmul.f32 %v7441_v62, %v7320_v10  ;;  %v4567_v33 = vmul.f32 %v7441_v62, %v7325_v21 }
 0x57f   :  { %v4568_v41 = vmul.f32 %v7441_v62, %v7336_v27  ;;  %v4569_v51 = vmul.f32 %v7441_v62, %v7341_v25  ;;  %v4604_v26 = vadd.f32 %v7453_v24, %v4534_v63  ;;  %v4588_v28 = vadd.f32 %v7453_v24, %v4518_v11 }
 0x580   :  { %v4570_v53 = vmul.f32 %v7441_v62, %v7352_v59  ;;  %v4571_v15 = vmul.f32 %v7441_v62, %v7357_v43  ;;  %v4572_v10 = vmul.f32 %v7441_v62, %v7368_v1  ;;  %v4573_v21 = vmul.f32 %v7441_v62, %v7373_v56  ;;  %v7819_v59 = vld [vmem:[#allocation26_spill] sm:$0xff] }
 0x581   :  { %v4574_v27 = vmul.f32 %v7441_v62, %v7384_v8  ;;  %v4575_v25 = vmul.f32 %v7441_v62, %v7389_v37  ;;  %v4576_v5 = vmul.f32 %v7441_v62, %v7400_v60  ;;  %4684 = vxpose.xlu1.b32.cont [2/16] (narrow) %v4604_v26, 16  ;;  %4652 = vxpose.xlu0.b32.cont [2/16] (narrow) %v4588_v28, 16  ;;  %v7825_v28 = vld [vmem:[#allocation6_spill] sm:$0xff] }
 0x582   :  { %v4577_v43 = vmul.f32 %v7441_v62, %v7819_v59  ;;  %v4578_v1 = vmul.f32 %v7441_v62, %v7820_v19  ;;  %v4605_v52 = vadd.f32 %v7453_v24, %v4535_v40  ;;  %v4589_v56 = vadd.f32 %v7453_v24, %v4519_v6  ;;  %v7828_v59 = vld [vmem:[#allocation18_spill] sm:$0xff] }
 0x583   :  { %v4606_v8 = vadd.f32 %v7453_v24, %v4536_v14  ;;  %v4590_v23 = vadd.f32 %v7453_v24, %v4520_v49  ;;  %v4607_v37 = vadd.f32 %v7453_v24, %v4537_v58  ;;  %v4591_v60 = vadd.f32 %v7453_v24, %v4521_v13 }
 0x584   :  { %v7546_v50 = vadd.f32 %v7453_v24, %v4565_v38  ;;  %v7549_v7 = vadd.f32 %v7453_v24, %v4549_v3  ;;  %v7552_v30 = vadd.f32 %v7453_v24, %v4566_v47  ;;  %v7555_v4 = vadd.f32 %v7453_v24, %v4550_v20  ;;  %v7822_v47 = vld [vmem:[#allocation15_spill] sm:$0xff] }
 0x585   :  { %4685 = vxpose.xlu1.b32.cont [3/16] (narrow) %v4605_v52, 16  ;;  %4653 = vxpose.xlu0.b32.cont [3/16] (narrow) %v4589_v56, 16  ;;  %v7558_v35 = vadd.f32 %v7453_v24, %v4567_v33  ;;  %v7561_v39 = vadd.f32 %v7453_v24, %v4551_v55  ;;  %v7564_v48 = vadd.f32 %v7453_v24, %v4568_v41  ;;  %v7823_v33 = vld [vmem:[#allocation5_spill] sm:$0xff]  ;;  %v7829_v52 = vld [vmem:[#allocation8_spill] sm:$0xff] }
 0x586   :  { %v7567_v12 = vadd.f32 %v7453_v24, %v4552_v29  ;;  %v7570_v46 = vadd.f32 %v7453_v24, %v4569_v51  ;;  %v7573_v11 = vadd.f32 %v7453_v24, %v4553_v32  ;;  %v7576_v6 = vadd.f32 %v7453_v24, %v4570_v53 }
 0x587   :  { %v7579_v49 = vadd.f32 %v7453_v24, %v4554_v16  ;;  %v7582_v13 = vadd.f32 %v7453_v24, %v4571_v15  ;;  %v7585_v18 = vadd.f32 %v7453_v24, %v4555_v22  ;;  %v7588_v63 = vadd.f32 %v7453_v24, %v4572_v10  ;;  %v7826_v15 = vld [vmem:[#allocation17_spill] sm:$0xff] }
 0x588   :  { %v7591_v40 = vadd.f32 %v7453_v24, %v4556_v9  ;;  %v7594_v14 = vadd.f32 %v7453_v24, %v4573_v21  ;;  %v7597_v58 = vadd.f32 %v7453_v24, %v4557_v42  ;;  %v7600_v3 = vadd.f32 %v7453_v24, %v4574_v27 }
 0x589   :  { %4686 = vxpose.xlu1.b32.cont [4/16] (narrow) %v4606_v8, 16  ;;  %4654 = vxpose.xlu0.b32.cont [4/16] (narrow) %v4590_v23, 16  ;;  %v7603_v20 = vadd.f32 %v7453_v24, %v4558_v54  ;;  %v7606_v55 = vadd.f32 %v7453_v24, %v4575_v25  ;;  %v7609_v29 = vadd.f32 %v7453_v24, %v4559_v17  ;;  %v7827_v25 = vld [vmem:[#allocation7_spill] sm:$0xff] }
 0x58a   :  { %v7612_v32 = vadd.f32 %v7453_v24, %v4576_v5  ;;  %v7615_v16 = vadd.f32 %v7453_v24, %v4560_v57  ;;  %v7618_v22 = vadd.f32 %v7453_v24, %v4577_v43  ;;  %v7621_v9 = vadd.f32 %v7453_v24, %v4561_v61  ;;  %v7821_v61 = vld [vmem:[#allocation4_spill] sm:$0xff]  ;;  %v7830_v8 = vld [vmem:[#allocation19_spill] sm:$0xff] }
 0x58b   :  { %v7624_v31 = vadd.f32 %v7453_v24, %v4578_v1  ;;  %v7627_v2 = vadd.f32 %v7453_v24, %v4562_v44  ;;  %v7631_v42 = vadd.f32 %v7453_v24, %v7444_v36  ;;  %v7634_v54 = vadd.f32 %v7453_v24, %v4563_v45 }
 0x58c   :  { %v7638_v17 = vadd.f32 %v7453_v24, %v7489_v34  ;;  %v7641_v57 = vadd.f32 %v7453_v24, %v4564_v0  ;;  %v4522_v38 = vmul.f32 %v7441_v62, %v7821_v61  ;;  %v4538_v44 = vmul.f32 %v7441_v62, %v7822_v47  ;;  %v7824_v34 = vld [vmem:[#allocation16_spill] sm:$0xff]  ;;  %v7831_v61 = vld [vmem:[#allocation9_spill] sm:$0xff] }
 0x58d   :  { %4687 = vxpose.xlu1.b32.cont [5/16] (narrow) %v4607_v37, 16  ;;  %4655 = vxpose.xlu0.b32.cont [5/16] (narrow) %v4591_v60, 16  ;;  %v4523_v41 = vmul.f32 %v7441_v62, %v7823_v33  ;;  %v4539_v51 = vmul.f32 %v7441_v62, %v7824_v34  ;;  %v4524_v53 = vmul.f32 %v7441_v62, %v7825_v28  ;;  %v7832_v47 = vld [vmem:[#allocation20_spill] sm:$0xff]  ;;  %v7833_v33 = vld [vmem:[#allocation10_spill] sm:$0xff]  ;;  %v7834_v34 = vld [vmem:[#allocation21_spill] sm:$0xff] }
 0x58e   :  { %v4608_v36 = vadd.f32 %v7453_v24, %v4538_v44  ;;  %v4592_v45 = vadd.f32 %v7453_v24, %v4522_v38  ;;  %v4540_v10 = vmul.f32 %v7441_v62, %v7826_v15  ;;  %v4525_v5 = vmul.f32 %v7441_v62, %v7827_v25  ;;  %v7835_v28 = vld [vmem:[#allocation11_spill] sm:$0xff]  ;;  %v7836_v15 = vld [vmem:[#allocation22_spill] sm:$0xff]  ;;  %v7837_v25 = vld [vmem:[#allocation12_spill] sm:$0xff] }
 0x58f   :  { %v4609_v0 = vadd.f32 %v7453_v24, %v4539_v51  ;;  %v4593_v26 = vadd.f32 %v7453_v24, %v4523_v41  ;;  %v4594_v27 = vadd.f32 %v7453_v24, %v4524_v53  ;;  %v4541_v43 = vmul.f32 %v7441_v62, %v7828_v59  ;;  %v7838_v59 = vld [vmem:[#allocation23_spill] sm:$0xff] }
 0x590   :  { %v4610_v21 = vadd.f32 %v7453_v24, %v4540_v10  ;;  %v4595_v1 = vadd.f32 %v7453_v24, %v4525_v5  ;;  %v4526_v56 = vmul.f32 %v7441_v62, %v7829_v52  ;;  %v4542_v23 = vmul.f32 %v7441_v62, %v7830_v8  ;;  %v7839_v52 = vld [vmem:[#allocation13_spill] sm:$0xff]  ;;  %v7840_v8 = vld [vmem:[#allocation24_spill] sm:$0xff] }
 0x591   :  { %4688 = vxpose.xlu1.b32.cont [6/16] (narrow) %v4608_v36, 16  ;;  %4656 = vxpose.xlu0.b32.cont [6/16] (narrow) %v4592_v45, 16  ;;  %v4611_v19 = vadd.f32 %v7453_v24, %v4541_v43  ;;  %v4527_v38 = vmul.f32 %v7441_v62, %v7831_v61  ;;  %v4543_v44 = vmul.f32 %v7441_v62, %v7832_v47  ;;  %v7841_v61 = vld [vmem:[#allocation14_spill] sm:$0xff]  ;;  %v7842_v47 = vld [vmem:[#allocation25_spill] sm:$0xff] }
 0x592   :  { %v4612_v37 = vadd.f32 %v7453_v24, %v4542_v23  ;;  %v4596_v60 = vadd.f32 %v7453_v24, %v4526_v56  ;;  %v4528_v41 = vmul.f32 %v7441_v62, %v7833_v33  ;;  %v4544_v51 = vmul.f32 %v7441_v62, %v7834_v34 }
 0x593   :  { %v4613_v36 = vadd.f32 %v7453_v24, %v4543_v44  ;;  %v4597_v45 = vadd.f32 %v7453_v24, %v4527_v38  ;;  %v4529_v53 = vmul.f32 %v7441_v62, %v7835_v28  ;;  %v4545_v10 = vmul.f32 %v7441_v62, %v7836_v15 }
 0x594   :  { %v4530_v5 = vmul.f32 %v7441_v62, %v7837_v25  ;;  %v4546_v43 = vmul.f32 %v7441_v62, %v7838_v59  ;;  %v4531_v56 = vmul.f32 %v7441_v62, %v7839_v52  ;;  %v4547_v23 = vmul.f32 %v7441_v62, %v7840_v8 }
 0x595   :  { %4689 = vxpose.xlu1.b32.cont [7/16] (narrow) %v4609_v0, 16  ;;  %4657 = vxpose.xlu0.b32.cont [7/16] (narrow) %v4593_v26, 16  ;;  %v4614_v0 = vadd.f32 %v7453_v24, %v4544_v51  ;;  %v4598_v26 = vadd.f32 %v7453_v24, %v4528_v41  ;;  %v4532_v38 = vmul.f32 %v7441_v62, %v7841_v61 }
 0x596   :  { %v4548_v44 = vmul.f32 %v7441_v62, %v7842_v47 }
 0x599   :  { %4690 = vxpose.xlu1.b32.cont [8/16] (narrow) %v4610_v21, 16  ;;  %4658 = vxpose.xlu0.b32.cont [8/16] (narrow) %v4594_v27, 16  ;;  %v4615_v21 = vadd.f32 %v7453_v24, %v4545_v10  ;;  %v4599_v27 = vadd.f32 %v7453_v24, %v4529_v53 }
 0x59d   :  { %4691 = vxpose.xlu1.b32.cont [9/16] (narrow) %v4611_v19, 16  ;;  %4659 = vxpose.xlu0.b32.cont [9/16] (narrow) %v4595_v1, 16  ;;  %v4616_v19 = vadd.f32 %v7453_v24, %v4546_v43  ;;  %v4600_v1 = vadd.f32 %v7453_v24, %v4530_v5 }
 0x5a1   :  { %4692 = vxpose.xlu1.b32.cont [10/16] (narrow) %v4612_v37, 16  ;;  %4660 = vxpose.xlu0.b32.cont [10/16] (narrow) %v4596_v60, 16  ;;  %v4617_v37 = vadd.f32 %v7453_v24, %v4547_v23  ;;  %v4601_v60 = vadd.f32 %v7453_v24, %v4531_v56 }
 0x5a5   :  { %4693 = vxpose.xlu1.b32.cont [11/16] (narrow) %v4613_v36, 16  ;;  %4661 = vxpose.xlu0.b32.cont [11/16] (narrow) %v4597_v45, 16  ;;  %v4618_v36 = vadd.f32 %v7453_v24, %v4548_v44  ;;  %v4602_v45 = vadd.f32 %v7453_v24, %v4532_v38 }
 0x5a9   :  { %4694 = vxpose.xlu1.b32.cont [12/16] (narrow) %v4614_v0, 16  ;;  %4662 = vxpose.xlu0.b32.cont [12/16] (narrow) %v4598_v26, 16 }
 0x5ad   :  { %4695 = vxpose.xlu1.b32.cont [13/16] (narrow) %v4615_v21, 16  ;;  %4663 = vxpose.xlu0.b32.cont [13/16] (narrow) %v4599_v27, 16 }
 0x5b1   :  { %4696 = vxpose.xlu1.b32.cont [14/16] (narrow) %v4616_v19, 16  ;;  %4664 = vxpose.xlu0.b32.cont [14/16] (narrow) %v4600_v1, 16 }
 0x5b5   :  { %4697 = vxpose.xlu1.b32.cont [15/16] (narrow) %v4617_v37, 16  ;;  %4665 = vxpose.xlu0.b32.cont [15/16] (narrow) %v4601_v60, 16 }
 0x5b9   :  { %4698 = vxpose.xlu1.b32.end [16/16] (narrow) %v4618_v36, 16  ;;  %4666 = vxpose.xlu0.b32.end [16/16] (narrow) %v4602_v45, 16 }
 0x5bd   :  { %4751 = vxpose.xlu1.b32.start [1/16] (narrow) %v7546_v50, 16  ;;  %4719 = vxpose.xlu0.b32.start [1/16] (narrow) %v7549_v7, 16 }
 0x5c1   :  { %4752 = vxpose.xlu1.b32.cont [2/16] (narrow) %v7552_v30, 16  ;;  %4720 = vxpose.xlu0.b32.cont [2/16] (narrow) %v7555_v4, 16 }
 0x5c5   :  { %4753 = vxpose.xlu1.b32.cont [3/16] (narrow) %v7558_v35, 16  ;;  %4721 = vxpose.xlu0.b32.cont [3/16] (narrow) %v7561_v39, 16 }
 0x5c9   :  { %4754 = vxpose.xlu1.b32.cont [4/16] (narrow) %v7564_v48, 16  ;;  %4722 = vxpose.xlu0.b32.cont [4/16] (narrow) %v7567_v12, 16 }
 0x5cd   :  { %4755 = vxpose.xlu1.b32.cont [5/16] (narrow) %v7570_v46, 16  ;;  %4723 = vxpose.xlu0.b32.cont [5/16] (narrow) %v7573_v11, 16 }
 0x5d1   :  { %4756 = vxpose.xlu1.b32.cont [6/16] (narrow) %v7576_v6, 16  ;;  %4724 = vxpose.xlu0.b32.cont [6/16] (narrow) %v7579_v49, 16 }
 0x5d5   :  { %4757 = vxpose.xlu1.b32.cont [7/16] (narrow) %v7582_v13, 16  ;;  %4725 = vxpose.xlu0.b32.cont [7/16] (narrow) %v7585_v18, 16 }
 0x5d9   :  { %4758 = vxpose.xlu1.b32.cont [8/16] (narrow) %v7588_v63, 16  ;;  %4726 = vxpose.xlu0.b32.cont [8/16] (narrow) %v7591_v40, 16 }
 0x5dd   :  { %4759 = vxpose.xlu1.b32.cont [9/16] (narrow) %v7594_v14, 16  ;;  %4727 = vxpose.xlu0.b32.cont [9/16] (narrow) %v7597_v58, 16 }
 0x5e1   :  { %4760 = vxpose.xlu1.b32.cont [10/16] (narrow) %v7600_v3, 16  ;;  %4728 = vxpose.xlu0.b32.cont [10/16] (narrow) %v7603_v20, 16 }
 0x5e5   :  { %4761 = vxpose.xlu1.b32.cont [11/16] (narrow) %v7606_v55, 16  ;;  %4729 = vxpose.xlu0.b32.cont [11/16] (narrow) %v7609_v29, 16 }
 0x5e9   :  { %4762 = vxpose.xlu1.b32.cont [12/16] (narrow) %v7612_v32, 16  ;;  %4730 = vxpose.xlu0.b32.cont [12/16] (narrow) %v7615_v16, 16 }
 0x5ed   :  { %4763 = vxpose.xlu1.b32.cont [13/16] (narrow) %v7618_v22, 16  ;;  %4731 = vxpose.xlu0.b32.cont [13/16] (narrow) %v7621_v9, 16 }
 0x5f1   :  { %4764 = vxpose.xlu1.b32.cont [14/16] (narrow) %v7624_v31, 16  ;;  %4732 = vxpose.xlu0.b32.cont [14/16] (narrow) %v7627_v2, 16 }
 0x5f5   :  { %4765 = vxpose.xlu1.b32.cont [15/16] (narrow) %v7631_v42, 16  ;;  %4733 = vxpose.xlu0.b32.cont [15/16] (narrow) %v7634_v54, 16 }
 0x5f9   :  { %4766 = vxpose.xlu1.b32.end [16/16] (narrow) %v7638_v17, 16  ;;  %4734 = vxpose.xlu0.b32.end [16/16] (narrow) %v7641_v57, 16  ;;  %v4699_v62 = vpop.trf.xlu1  ;;  %v4667_v24 = vpop.trf.xlu0 }
 0x5fa   :  { %4716 = vst [vmem:[%s7770_s5 + $0x8] sm:$0xff] %v4699_v62  ;;  %4715 = vst [vmem:[%s7770_s5] sm:$0xff] %v4667_v24 }
 0x5fd   :  { %v4700_v50 = vpop.trf.xlu1  ;;  %v4668_v7 = vpop.trf.xlu0 }
 0x5fe   :  { %4718 = vst [vmem:[%s7770_s5 + $0x18] sm:$0xff] %v4700_v50  ;;  %4717 = vst [vmem:[%s7770_s5 + $0x10] sm:$0xff] %v4668_v7 }
 0x639   :  { %v4767_v30 = vpop.trf.xlu1  ;;  %v4735_v4 = vpop.trf.xlu0 }
 0x63a   :  { %4859 = vst [vmem:[%s7770_s5 + $0x28] sm:$0xff] %v4767_v30  ;;  %4858 = vst [vmem:[%s7770_s5 + $0x20] sm:$0xff] %v4735_v4 }
 0x63d   :  { %v4768_v35 = vpop.trf.xlu1  ;;  %v4736_v39 = vpop.trf.xlu0 }
 0x63e   :  { %4861 = vst [vmem:[%s7770_s5 + $0x38] sm:$0xff] %v4768_v35  ;;  %4860 = vst [vmem:[%s7770_s5 + $0x30] sm:$0xff] %v4736_v39 }

</bundles_post_ra>
